<compile_context>
chip_gen: v7x
topology: tpu7x:2x2x1
jax: 0.10.0
libtpu: 0.0.40
codegen_flags: <defaults>
</compile_context>

<pallas_src>
import functools
import math

import jax
import jax.numpy as jnp
from jax import lax
from jax.experimental import pallas as pl
from jax.experimental.pallas import tpu as pltpu


# --------------------------------------------------------------------------- #
# Kernel
# --------------------------------------------------------------------------- #
def _prenorm_attn_kernel(
    x_ref,
    ln1w_ref, ln1b_ref,
    wq_ref, wk_ref, wv_ref, wy_ref,
    bq_ref, bk_ref, bv_ref, by_ref,
    ln2w_ref, ln2b_ref,
    w1_ref, b1_ref, w2_ref, b2_ref,
    o_ref,
    *, batch_tile, seq_len, num_heads, head_size, eps, compute_dtype, approx_recip,
):
    BT, S, NH, HD = batch_tile, seq_len, num_heads, head_size
    R = BT * S
    D = NH * HD
    G = BT * NH
    f32 = jnp.float32

    # (BT, S, D) -> fused (BT*S, D) row block: every matmul below sees R rows.
    x = x_ref[...].astype(f32).reshape(R, D)

    # ---------------- LayerNorm 1 (biased variance, last dim) ----------------
    mean1 = jnp.mean(x, axis=-1, keepdims=True)
    xc = x - mean1
    var1 = jnp.mean(xc * xc, axis=-1, keepdims=True)
    xn1 = xc * lax.rsqrt(var1 + eps) * ln1w_ref[...] + ln1b_ref[...]
    xn1c = xn1.astype(compute_dtype)

    # ------- Q/K/V: three lane-dense (R,D)@(D,D) matmuls, f32 accumulation -------
    # (1/sqrt(HD) and bQ were folded into wq/bq on the host.)
    q = jnp.dot(xn1c, wq_ref[...], preferred_element_type=f32) + bq_ref[...]
    k = jnp.dot(xn1c, wk_ref[...], preferred_element_type=f32) + bk_ref[...]
    v = jnp.dot(xn1c, wv_ref[...], preferred_element_type=f32) + bv_ref[...]

    def split_heads(t):  # (R, D) -> (BT*NH, S, HD)
        return (t.reshape(BT, S, NH, HD)
                 .transpose(0, 2, 1, 3)
                 .reshape(G, S, HD)
                 .astype(compute_dtype))

    qh, kh, vh = split_heads(q), split_heads(k), split_heads(v)

    # ------- attention core: one batched einsum over all (batch, head) pairs -------
    scores = jnp.einsum('gsf,gtf->gst', qh, kh, preferred_element_type=f32)
    m = jnp.max(scores, axis=-1, keepdims=True)
    p = jnp.exp(scores - m)
    denom = jnp.sum(p, axis=-1, keepdims=True)
    if approx_recip:
        p = p * pl.reciprocal(denom, approx=True)   # EUP slot (~free); bf16 path only
    else:
        p = p / denom                               # exact for the f32 parity path
    att = jnp.einsum('gst,gtf->gsf', p.astype(compute_dtype), vh,
                     preferred_element_type=f32)

    # ------- merge heads -> (R, D), single dense output projection -------
    att = att.reshape(BT, NH, S, HD).transpose(0, 2, 1, 3).reshape(R, D)
    attn_out = jnp.dot(att.astype(compute_dtype), wy_ref[...],
                       preferred_element_type=f32) + by_ref[...]

    # ---------------- residual 1 ----------------
    r1 = x + attn_out

    # ---------------- LayerNorm 2 ----------------
    mean2 = jnp.mean(r1, axis=-1, keepdims=True)
    rc = r1 - mean2
    var2 = jnp.mean(rc * rc, axis=-1, keepdims=True)
    xn2 = rc * lax.rsqrt(var2 + eps) * ln2w_ref[...] + ln2b_ref[...]

    # ---------------- MLP: Linear -> GELU(exact erf) -> Linear ----------------
    h1 = jnp.dot(xn2.astype(compute_dtype), w1_ref[...],
                 preferred_element_type=f32) + b1_ref[...]
    g = 0.5 * h1 * (1.0 + lax.erf(h1 * (1.0 / math.sqrt(2.0))))
    mlp = jnp.dot(g.astype(compute_dtype), w2_ref[...],
                  preferred_element_type=f32) + b2_ref[...]

    # ---------------- residual 2 ----------------
    o_ref[...] = (mlp + r1).reshape(BT, S, D).astype(o_ref.dtype)


# --------------------------------------------------------------------------- #
# Host-side sizing helpers (generation-aware)
# --------------------------------------------------------------------------- #
def _vmem_ceiling_bytes():
    """~75% of physical VMEM: ~48 MiB on v7x (64 MiB), ~96 MiB on v5e/v6e (128 MiB)."""
    try:
        cap = int(pltpu.get_tpu_info().vmem_capacity_bytes)
    except Exception:
        cap = 128 * 2 ** 20
    return (cap * 3) // 4


def _estimate_step_vmem(bt, S, D, H, NH, itemsize_c, weight_buffers):
    """Rough per-grid-step VMEM footprint (bytes)."""
    r = bt * S
    weights = weight_buffers * ((4 * D * D + 2 * D * H) * itemsize_c
                                + (8 * D + 2 * H) * 4)
    io = 2 * 2 * bt * S * D * 4                       # double-buffered x + out blocks (f32)
    act = 4 * (8 * r * D + 3 * r * H + 2 * bt * NH * S * S)   # live f32 activations (rough)
    return weights + io + act


def _pick_batch_tile(batch, S, D, H, NH, itemsize_c, vmem_budget, max_rows=1024):
    """Largest divisor of `batch` whose fused row block fits the VMEM budget.

    Bigger R = BT*S amortizes the ~0.35us per-grid-step overhead and fills the
    128/256-wide MXU; ideally R is a multiple of 256 (v6e/v7x) or 128 (v5e).
    """
    best = 1
    for cand in range(1, batch + 1):
        if batch % cand:
            continue
        if cand * S > max(max_rows, S):
            continue
        if _estimate_step_vmem(cand, S, D, H, NH, itemsize_c, 1) <= vmem_budget:
            best = cand
    return best


# --------------------------------------------------------------------------- #
# Wrapper
# --------------------------------------------------------------------------- #
def prenorm_attention_block(x, params, *, num_heads, eps=1e-5,
                            compute_dtype=jnp.bfloat16, batch_tile=None,
                            approx_softmax=None, single_buffer_weights=True):
    """x: (B, S, D) float32.  params: dict of weights (see init_params)."""
    B, S, D = x.shape
    H = params["W1"].shape[1]
    NH = num_heads
    assert D % NH == 0, "embed_dim must be divisible by num_heads"
    HD = D // NH

    cdt = jnp.dtype(compute_dtype)
    # Exact softmax divide on the f32 parity path, EUP reciprocal otherwise.
    approx_recip = (cdt != jnp.float32) if approx_softmax is None else approx_softmax

    vmem_ceiling = _vmem_ceiling_bytes()
    if batch_tile is None:
        BT = _pick_batch_tile(B, S, D, H, NH, cdt.itemsize,
                              vmem_budget=(vmem_ceiling * 3) // 5)
    else:
        BT = batch_tile
    assert B % BT == 0, "batch_tile must divide batch"

    # ---- host-side weight prep (once, outside the kernel) ----
    inv_sqrt_hd = 1.0 / math.sqrt(HD)
    wq = (params["WQ"] * inv_sqrt_hd).astype(cdt)   # fold 1/sqrt(HD) into WQ
    wk = params["WK"].astype(cdt)
    wv = params["WV"].astype(cdt)
    wy = params["WY"].astype(cdt)
    bq = (params["bQ"] * inv_sqrt_hd).astype(jnp.float32)
    w1 = params["W1"].astype(cdt)
    w2 = params["W2"].astype(cdt)

    kernel = functools.partial(
        _prenorm_attn_kernel,
        batch_tile=BT, seq_len=S, num_heads=NH, head_size=HD,
        eps=eps, compute_dtype=cdt, approx_recip=approx_recip,
    )

    # Advisory cost estimate: matmuls dominate FLOPs, x in/out + weights dominate bytes.
    flops = int(2 * B * S * (4 * D * D + 2 * D * H + 2 * S * D))
    transcendentals = int(B * S * (NH * S + H))
    bytes_accessed = int(2 * B * S * D * 4 + (4 * D * D + 2 * D * H) * cdt.itemsize)

    need = _estimate_step_vmem(BT, S, D, H, NH, cdt.itemsize,
                               1 if single_buffer_weights else 2)
    vmem_limit = int(min(vmem_ceiling, max(32 * 2 ** 20, 2 * need)))

    def build(use_single_buffer):
        def fixed(shape):
            zeros = (0,) * len(shape)
            index_map = lambda b, _z=zeros: _z
            if use_single_buffer:
                try:
                    # Grid-invariant operand: no need for double buffering.
                    return pl.BlockSpec(shape, index_map, pipeline_mode=pl.Buffered(1))
                except TypeError:
                    pass
            return pl.BlockSpec(shape, index_map)

        in_specs = [
            pl.BlockSpec((BT, S, D), lambda b: (b, 0, 0)),   # x
            fixed((1, D)), fixed((1, D)),                    # LN1 w/b
            fixed((D, D)), fixed((D, D)), fixed((D, D)),     # WQ, WK, WV
            fixed((D, D)),                                   # WY
            fixed((1, D)), fixed((1, D)), fixed((1, D)),     # bQ, bK, bV
            fixed((1, D)),                                   # bY
            fixed((1, D)), fixed((1, D)),                    # LN2 w/b
            fixed((D, H)), fixed((1, H)),                    # W1, b1
            fixed((H, D)), fixed((1, D)),                    # W2, b2
        ]
        out_specs = pl.BlockSpec((BT, S, D), lambda b: (b, 0, 0))

        return pl.pallas_call(
            kernel,
            out_shape=jax.ShapeDtypeStruct((B, S, D), x.dtype),
            grid=(B // BT,),
            in_specs=in_specs,
            out_specs=out_specs,
            compiler_params=pltpu.CompilerParams(
                dimension_semantics=("parallel",),   # batch-tile axis shards across TCs
                vmem_limit_bytes=vmem_limit,
            ),
            cost_estimate=pl.CostEstimate(
                flops=flops, transcendentals=transcendentals,
                bytes_accessed=bytes_accessed),
        )

    args = (
        x,
        params["ln1_w"], params["ln1_b"],
        wq, wk, wv, wy,
        bq, params["bK"], params["bV"], params["bY"],
        params["ln2_w"], params["ln2_b"],
        w1, params["b1"], w2, params["b2"],
    )

    if single_buffer_weights:
        try:
            return build(True)(*args)
        except Exception:
            pass  # pipeline_mode / Buffered(1) unsupported -> default double buffering
    return build(False)(*args)


# --------------------------------------------------------------------------- #
# Params + pure-JAX reference
# --------------------------------------------------------------------------- #
def init_params(key, embed_dim, hidden_dim):
    """Deterministic parameter init mirroring the module's __init__ shapes."""
    ks = jax.random.split(key, 6)

    def xavier_uniform(k, shape):
        fan_in, fan_out = shape
        limit = math.sqrt(6.0 / (fan_in + fan_out))
        return jax.random.uniform(k, shape, jnp.float32, -limit, limit)

    D, H = embed_dim, hidden_dim
    return {
        "ln1_w": jnp.ones((1, D), jnp.float32),
        "ln1_b": jnp.zeros((1, D), jnp.float32),
        "ln2_w": jnp.ones((1, D), jnp.float32),
        "ln2_b": jnp.zeros((1, D), jnp.float32),
        "WQ": xavier_uniform(ks[0], (D, D)),
        "WK": xavier_uniform(ks[1], (D, D)),
        "WV": xavier_uniform(ks[2], (D, D)),
        "WY": xavier_uniform(ks[3], (D, D)),
        "bQ": jnp.zeros((1, D), jnp.float32),
        "bK": jnp.zeros((1, D), jnp.float32),
        "bV": jnp.zeros((1, D), jnp.float32),
        "bY": jnp.zeros((1, D), jnp.float32),
        # MLP (stored as (in, out), i.e. already-transposed nn.Linear weights)
        "W1": xavier_uniform(ks[4], (D, H)),
        "b1": jnp.zeros((1, H), jnp.float32),
        "W2": xavier_uniform(ks[5], (H, D)),
        "b2": jnp.zeros((1, D), jnp.float32),
    }


def _reference(x, p, num_heads, eps=1e-5):
    """Pure-JAX reference matching the PyTorch forward (mask=None, eval mode)."""
    def ln(z, w, b):
        m = jnp.mean(z, axis=-1, keepdims=True)
        v = jnp.mean((z - m) ** 2, axis=-1, keepdims=True)
        return (z - m) / jnp.sqrt(v + eps) * w[0] + b[0]

    B, S, D = x.shape
    hd = D // num_heads
    xn1 = ln(x, p["ln1_w"], p["ln1_b"])
    q = xn1 @ p["WQ"] + p["bQ"][0]
    k = xn1 @ p["WK"] + p["bK"][0]
    v = xn1 @ p["WV"] + p["bV"][0]
    split = lambda t: t.reshape(B, S, num_heads, hd).transpose(0, 2, 1, 3)
    q, k, v = split(q), split(k), split(v)
    w = jax.nn.softmax(q @ k.transpose(0, 1, 3, 2) / math.sqrt(hd), axis=-1)
    y = (w @ v).transpose(0, 2, 1, 3).reshape(B, S, D)
    attn = y @ p["WY"] + p["bY"][0]
    r1 = x + attn
    xn2 = ln(r1, p["ln2_w"], p["ln2_b"])
    h1 = xn2 @ p["W1"] + p["b1"][0]
    g = 0.5 * h1 * (1.0 + lax.erf(h1 / math.sqrt(2.0)))
    return g @ p["W2"] + p["b2"][0] + r1


# --------------------------------------------------------------------------- #
# Main
# --------------------------------------------------------------------------- #
if __name__ == "__main__":
    batch, seq_len, embed_dim, hidden_dim, num_heads = 2, 8, 32, 64, 4

    key = jax.random.PRNGKey(0)
    kx, kp = jax.random.split(key)
    x = jax.random.normal(kx, (batch, seq_len, embed_dim), jnp.float32)
    params = init_params(kp, embed_dim, hidden_dim)

    ref = _reference(x, params, num_heads)

    # f32 compute path: tight parity with the PyTorch/JAX reference (exact softmax divide).
    out_f32 = jax.block_until_ready(
        prenorm_attention_block(x, params, num_heads=num_heads,
                                compute_dtype=jnp.float32))
    assert out_f32.shape == (batch, seq_len, embed_dim)
    assert jnp.allclose(out_f32, ref, atol=5e-3, rtol=5e-3), "f32 kernel mismatch vs reference"

    # bf16-matmul path (MXU-preferred configuration, EUP reciprocal in softmax).
    out_bf16 = jax.block_until_ready(
        prenorm_attention_block(x, params, num_heads=num_heads,
                                compute_dtype=jnp.bfloat16))
    assert jnp.allclose(out_bf16, ref, atol=5e-2, rtol=5e-2), "bf16 kernel mismatch vs reference"

    print("KERNEL_OK")
</pallas_src>

<mosaic_0001>
module attributes {stable_mosaic.version = 11 : i64} {
  func.func @_prenorm_attn_kernel(%arg0: i32, %arg1: memref<2x8x32xf32, #tpu.memory_space<vmem>>, %arg2: memref<1x32xf32, #tpu.memory_space<vmem>>, %arg3: memref<1x32xf32, #tpu.memory_space<vmem>>, %arg4: memref<32x32xf32, #tpu.memory_space<vmem>>, %arg5: memref<32x32xf32, #tpu.memory_space<vmem>>, %arg6: memref<32x32xf32, #tpu.memory_space<vmem>>, %arg7: memref<32x32xf32, #tpu.memory_space<vmem>>, %arg8: memref<1x32xf32, #tpu.memory_space<vmem>>, %arg9: memref<1x32xf32, #tpu.memory_space<vmem>>, %arg10: memref<1x32xf32, #tpu.memory_space<vmem>>, %arg11: memref<1x32xf32, #tpu.memory_space<vmem>>, %arg12: memref<1x32xf32, #tpu.memory_space<vmem>>, %arg13: memref<1x32xf32, #tpu.memory_space<vmem>>, %arg14: memref<32x64xf32, #tpu.memory_space<vmem>>, %arg15: memref<1x64xf32, #tpu.memory_space<vmem>>, %arg16: memref<64x32xf32, #tpu.memory_space<vmem>>, %arg17: memref<1x32xf32, #tpu.memory_space<vmem>>, %arg18: memref<2x8x32xf32, #tpu.memory_space<vmem>>) attributes {dimension_semantics = [#tpu.dimension_semantics<parallel>], iteration_bounds = array<i64: 1>, scalar_prefetch = 0 : i64, scratch_operands = 0 : i64, tpu.core_type = #tpu.core_type<tc>, window_params = [{transform_indices = @transform_0, window_bounds = array<i64: 2, 8, 32>}, {pipeline_mode = #tpu.pipeline_mode<synchronous>, transform_indices = @transform_1, window_bounds = array<i64: 1, 32>}, {pipeline_mode = #tpu.pipeline_mode<synchronous>, transform_indices = @transform_2, window_bounds = array<i64: 1, 32>}, {pipeline_mode = #tpu.pipeline_mode<synchronous>, transform_indices = @transform_3, window_bounds = array<i64: 32, 32>}, {pipeline_mode = #tpu.pipeline_mode<synchronous>, transform_indices = @transform_4, window_bounds = array<i64: 32, 32>}, {pipeline_mode = #tpu.pipeline_mode<synchronous>, transform_indices = @transform_5, window_bounds = array<i64: 32, 32>}, {pipeline_mode = #tpu.pipeline_mode<synchronous>, transform_indices = @transform_6, window_bounds = array<i64: 32, 32>}, {pipeline_mode = #tpu.pipeline_mode<synchronous>, transform_indices = @transform_7, window_bounds = array<i64: 1, 32>}, {pipeline_mode = #tpu.pipeline_mode<synchronous>, transform_indices = @transform_8, window_bounds = array<i64: 1, 32>}, {pipeline_mode = #tpu.pipeline_mode<synchronous>, transform_indices = @transform_9, window_bounds = array<i64: 1, 32>}, {pipeline_mode = #tpu.pipeline_mode<synchronous>, transform_indices = @transform_10, window_bounds = array<i64: 1, 32>}, {pipeline_mode = #tpu.pipeline_mode<synchronous>, transform_indices = @transform_11, window_bounds = array<i64: 1, 32>}, {pipeline_mode = #tpu.pipeline_mode<synchronous>, transform_indices = @transform_12, window_bounds = array<i64: 1, 32>}, {pipeline_mode = #tpu.pipeline_mode<synchronous>, transform_indices = @transform_13, window_bounds = array<i64: 32, 64>}, {pipeline_mode = #tpu.pipeline_mode<synchronous>, transform_indices = @transform_14, window_bounds = array<i64: 1, 64>}, {pipeline_mode = #tpu.pipeline_mode<synchronous>, transform_indices = @transform_15, window_bounds = array<i64: 64, 32>}, {pipeline_mode = #tpu.pipeline_mode<synchronous>, transform_indices = @transform_16, window_bounds = array<i64: 1, 32>}, {transform_indices = @transform_17, window_bounds = array<i64: 2, 8, 32>}]} {
    %c0 = arith.constant 0 : index
    %c0_0 = arith.constant 0 : index
    %c0_1 = arith.constant 0 : index
    %0 = vector.load %arg1[%c0, %c0_0, %c0_1] : memref<2x8x32xf32, #tpu.memory_space<vmem>>, vector<2x8x32xf32>
    %1 = vector.shape_cast %0 : vector<2x8x32xf32> to vector<16x32xf32>
    %cst = arith.constant dense<0.000000e+00> : vector<16xf32>
    %2 = vector.multi_reduction <add>, %1, %cst [1] : vector<16x32xf32> to vector<16xf32>
    %3 = vector.shape_cast %2 : vector<16xf32> to vector<16x1xf32>
    %cst_2 = arith.constant 3.200000e+01 : f32
    %4 = vector.broadcast %cst_2 : f32 to vector<16x1xf32>
    %5 = arith.divf %3, %4 : vector<16x1xf32>
    %6 = vector.broadcast %5 : vector<16x1xf32> to vector<16x32xf32>
    %7 = arith.subf %1, %6 : vector<16x32xf32>
    %8 = arith.mulf %7, %7 : vector<16x32xf32>
    %cst_3 = arith.constant dense<0.000000e+00> : vector<16xf32>
    %9 = vector.multi_reduction <add>, %8, %cst_3 [1] : vector<16x32xf32> to vector<16xf32>
    %10 = vector.shape_cast %9 : vector<16xf32> to vector<16x1xf32>
    %cst_4 = arith.constant 3.200000e+01 : f32
    %11 = vector.broadcast %cst_4 : f32 to vector<16x1xf32>
    %12 = arith.divf %10, %11 : vector<16x1xf32>
    %cst_5 = arith.constant 9.99999974E-6 : f32
    %13 = vector.broadcast %cst_5 : f32 to vector<16x1xf32>
    %14 = arith.addf %12, %13 : vector<16x1xf32>
    %15 = math.rsqrt %14 : vector<16x1xf32>
    %16 = vector.broadcast %15 : vector<16x1xf32> to vector<16x32xf32>
    %17 = arith.mulf %7, %16 : vector<16x32xf32>
    %c0_6 = arith.constant 0 : index
    %c0_7 = arith.constant 0 : index
    %18 = vector.load %arg2[%c0_6, %c0_7] : memref<1x32xf32, #tpu.memory_space<vmem>>, vector<1x32xf32>
    %19 = vector.broadcast %18 : vector<1x32xf32> to vector<16x32xf32>
    %20 = arith.mulf %17, %19 : vector<16x32xf32>
    %c0_8 = arith.constant 0 : index
    %c0_9 = arith.constant 0 : index
    %21 = vector.load %arg3[%c0_8, %c0_9] : memref<1x32xf32, #tpu.memory_space<vmem>>, vector<1x32xf32>
    %22 = vector.broadcast %21 : vector<1x32xf32> to vector<16x32xf32>
    %23 = arith.addf %20, %22 : vector<16x32xf32>
    %c0_10 = arith.constant 0 : index
    %c0_11 = arith.constant 0 : index
    %24 = vector.load %arg4[%c0_10, %c0_11] : memref<32x32xf32, #tpu.memory_space<vmem>>, vector<32x32xf32>
    %cst_12 = arith.constant dense<0.000000e+00> : vector<16x32xf32>
    %25 = tpu.matmul %23, %24, %cst_12 {dimension_numbers = #tpu.dot_dimension_numbers<[1], [0], [0], [1], [0, 0, 1, 1], [], []>} : vector<16x32xf32>, vector<32x32xf32>, vector<16x32xf32> -> vector<16x32xf32>
    %c0_13 = arith.constant 0 : index
    %c0_14 = arith.constant 0 : index
    %26 = vector.load %arg8[%c0_13, %c0_14] : memref<1x32xf32, #tpu.memory_space<vmem>>, vector<1x32xf32>
    %27 = vector.broadcast %26 : vector<1x32xf32> to vector<16x32xf32>
    %28 = arith.addf %25, %27 : vector<16x32xf32>
    %c0_15 = arith.constant 0 : index
    %c0_16 = arith.constant 0 : index
    %29 = vector.load %arg5[%c0_15, %c0_16] : memref<32x32xf32, #tpu.memory_space<vmem>>, vector<32x32xf32>
    %cst_17 = arith.constant dense<0.000000e+00> : vector<16x32xf32>
    %30 = tpu.matmul %23, %29, %cst_17 {dimension_numbers = #tpu.dot_dimension_numbers<[1], [0], [0], [1], [0, 0, 1, 1], [], []>} : vector<16x32xf32>, vector<32x32xf32>, vector<16x32xf32> -> vector<16x32xf32>
    %c0_18 = arith.constant 0 : index
    %c0_19 = arith.constant 0 : index
    %31 = vector.load %arg9[%c0_18, %c0_19] : memref<1x32xf32, #tpu.memory_space<vmem>>, vector<1x32xf32>
    %32 = vector.broadcast %31 : vector<1x32xf32> to vector<16x32xf32>
    %33 = arith.addf %30, %32 : vector<16x32xf32>
    %c0_20 = arith.constant 0 : index
    %c0_21 = arith.constant 0 : index
    %34 = vector.load %arg6[%c0_20, %c0_21] : memref<32x32xf32, #tpu.memory_space<vmem>>, vector<32x32xf32>
    %cst_22 = arith.constant dense<0.000000e+00> : vector<16x32xf32>
    %35 = tpu.matmul %23, %34, %cst_22 {dimension_numbers = #tpu.dot_dimension_numbers<[1], [0], [0], [1], [0, 0, 1, 1], [], []>} : vector<16x32xf32>, vector<32x32xf32>, vector<16x32xf32> -> vector<16x32xf32>
    %c0_23 = arith.constant 0 : index
    %c0_24 = arith.constant 0 : index
    %36 = vector.load %arg10[%c0_23, %c0_24] : memref<1x32xf32, #tpu.memory_space<vmem>>, vector<1x32xf32>
    %37 = vector.broadcast %36 : vector<1x32xf32> to vector<16x32xf32>
    %38 = arith.addf %35, %37 : vector<16x32xf32>
    %39 = vector.shape_cast %28 : vector<16x32xf32> to vector<2x8x4x8xf32>
    %40 = tpu.transpose %39, [0, 2, 1, 3] : vector<2x8x4x8xf32> -> vector<2x4x8x8xf32>
    %41 = vector.shape_cast %40 : vector<2x4x8x8xf32> to vector<8x8x8xf32>
    %42 = vector.shape_cast %33 : vector<16x32xf32> to vector<2x8x4x8xf32>
    %43 = tpu.transpose %42, [0, 2, 1, 3] : vector<2x8x4x8xf32> -> vector<2x4x8x8xf32>
    %44 = vector.shape_cast %43 : vector<2x4x8x8xf32> to vector<8x8x8xf32>
    %45 = vector.shape_cast %38 : vector<16x32xf32> to vector<2x8x4x8xf32>
    %46 = tpu.transpose %45, [0, 2, 1, 3] : vector<2x8x4x8xf32> -> vector<2x4x8x8xf32>
    %47 = vector.shape_cast %46 : vector<2x4x8x8xf32> to vector<8x8x8xf32>
    "tpu.trace_start"() <{level = 10 : i32, message = "gsf,gtf->gst"}> : () -> ()
    %cst_25 = arith.constant dense<0.000000e+00> : vector<8x8x8xf32>
    %48 = tpu.matmul %41, %44, %cst_25 {dimension_numbers = #tpu.dot_dimension_numbers<[2], [2], [1], [1], [0, 0, 0, 1, 1, 1], [0], [0]>} : vector<8x8x8xf32>, vector<8x8x8xf32>, vector<8x8x8xf32> -> vector<8x8x8xf32>
    "tpu.trace_stop"() : () -> ()
    %cst_26 = arith.constant dense<0xFF800000> : vector<8x8xf32>
    %49 = vector.multi_reduction <maximumf>, %48, %cst_26 [2] : vector<8x8x8xf32> to vector<8x8xf32>
    %50 = vector.shape_cast %49 : vector<8x8xf32> to vector<8x8x1xf32>
    %51 = vector.broadcast %50 : vector<8x8x1xf32> to vector<8x8x8xf32>
    %52 = arith.subf %48, %51 : vector<8x8x8xf32>
    %53 = math.exp %52 : vector<8x8x8xf32>
    %cst_27 = arith.constant dense<0.000000e+00> : vector<8x8xf32>
    %54 = vector.multi_reduction <add>, %53, %cst_27 [2] : vector<8x8x8xf32> to vector<8x8xf32>
    %55 = vector.shape_cast %54 : vector<8x8xf32> to vector<8x8x1xf32>
    %56 = vector.broadcast %55 : vector<8x8x1xf32> to vector<8x8x8xf32>
    %57 = arith.divf %53, %56 : vector<8x8x8xf32>
    "tpu.trace_start"() <{level = 10 : i32, message = "gst,gtf->gsf"}> : () -> ()
    %cst_28 = arith.constant dense<0.000000e+00> : vector<8x8x8xf32>
    %58 = tpu.matmul %57, %47, %cst_28 {dimension_numbers = #tpu.dot_dimension_numbers<[2], [1], [1], [2], [0, 0, 0, 1, 1, 2], [0], [0]>} : vector<8x8x8xf32>, vector<8x8x8xf32>, vector<8x8x8xf32> -> vector<8x8x8xf32>
    "tpu.trace_stop"() : () -> ()
    %59 = vector.shape_cast %58 : vector<8x8x8xf32> to vector<2x4x8x8xf32>
    %60 = tpu.transpose %59, [0, 2, 1, 3] : vector<2x4x8x8xf32> -> vector<2x8x4x8xf32>
    %61 = vector.shape_cast %60 : vector<2x8x4x8xf32> to vector<16x32xf32>
    %c0_29 = arith.constant 0 : index
    %c0_30 = arith.constant 0 : index
    %62 = vector.load %arg7[%c0_29, %c0_30] : memref<32x32xf32, #tpu.memory_space<vmem>>, vector<32x32xf32>
    %cst_31 = arith.constant dense<0.000000e+00> : vector<16x32xf32>
    %63 = tpu.matmul %61, %62, %cst_31 {dimension_numbers = #tpu.dot_dimension_numbers<[1], [0], [0], [1], [0, 0, 1, 1], [], []>} : vector<16x32xf32>, vector<32x32xf32>, vector<16x32xf32> -> vector<16x32xf32>
    %c0_32 = arith.constant 0 : index
    %c0_33 = arith.constant 0 : index
    %64 = vector.load %arg11[%c0_32, %c0_33] : memref<1x32xf32, #tpu.memory_space<vmem>>, vector<1x32xf32>
    %65 = vector.broadcast %64 : vector<1x32xf32> to vector<16x32xf32>
    %66 = arith.addf %63, %65 : vector<16x32xf32>
    %67 = arith.addf %1, %66 : vector<16x32xf32>
    %cst_34 = arith.constant dense<0.000000e+00> : vector<16xf32>
    %68 = vector.multi_reduction <add>, %67, %cst_34 [1] : vector<16x32xf32> to vector<16xf32>
    %69 = vector.shape_cast %68 : vector<16xf32> to vector<16x1xf32>
    %cst_35 = arith.constant 3.200000e+01 : f32
    %70 = vector.broadcast %cst_35 : f32 to vector<16x1xf32>
    %71 = arith.divf %69, %70 : vector<16x1xf32>
    %72 = vector.broadcast %71 : vector<16x1xf32> to vector<16x32xf32>
    %73 = arith.subf %67, %72 : vector<16x32xf32>
    %74 = arith.mulf %73, %73 : vector<16x32xf32>
    %cst_36 = arith.constant dense<0.000000e+00> : vector<16xf32>
    %75 = vector.multi_reduction <add>, %74, %cst_36 [1] : vector<16x32xf32> to vector<16xf32>
    %76 = vector.shape_cast %75 : vector<16xf32> to vector<16x1xf32>
    %cst_37 = arith.constant 3.200000e+01 : f32
    %77 = vector.broadcast %cst_37 : f32 to vector<16x1xf32>
    %78 = arith.divf %76, %77 : vector<16x1xf32>
    %cst_38 = arith.constant 9.99999974E-6 : f32
    %79 = vector.broadcast %cst_38 : f32 to vector<16x1xf32>
    %80 = arith.addf %78, %79 : vector<16x1xf32>
    %81 = math.rsqrt %80 : vector<16x1xf32>
    %82 = vector.broadcast %81 : vector<16x1xf32> to vector<16x32xf32>
    %83 = arith.mulf %73, %82 : vector<16x32xf32>
    %c0_39 = arith.constant 0 : index
    %c0_40 = arith.constant 0 : index
    %84 = vector.load %arg12[%c0_39, %c0_40] : memref<1x32xf32, #tpu.memory_space<vmem>>, vector<1x32xf32>
    %85 = vector.broadcast %84 : vector<1x32xf32> to vector<16x32xf32>
    %86 = arith.mulf %83, %85 : vector<16x32xf32>
    %c0_41 = arith.constant 0 : index
    %c0_42 = arith.constant 0 : index
    %87 = vector.load %arg13[%c0_41, %c0_42] : memref<1x32xf32, #tpu.memory_space<vmem>>, vector<1x32xf32>
    %88 = vector.broadcast %87 : vector<1x32xf32> to vector<16x32xf32>
    %89 = arith.addf %86, %88 : vector<16x32xf32>
    %c0_43 = arith.constant 0 : index
    %c0_44 = arith.constant 0 : index
    %90 = vector.load %arg14[%c0_43, %c0_44] : memref<32x64xf32, #tpu.memory_space<vmem>>, vector<32x64xf32>
    %cst_45 = arith.constant dense<0.000000e+00> : vector<16x64xf32>
    %91 = tpu.matmul %89, %90, %cst_45 {dimension_numbers = #tpu.dot_dimension_numbers<[1], [0], [0], [1], [0, 0, 1, 1], [], []>} : vector<16x32xf32>, vector<32x64xf32>, vector<16x64xf32> -> vector<16x64xf32>
    %c0_46 = arith.constant 0 : index
    %c0_47 = arith.constant 0 : index
    %92 = vector.load %arg15[%c0_46, %c0_47] : memref<1x64xf32, #tpu.memory_space<vmem>>, vector<1x64xf32>
    %93 = vector.broadcast %92 : vector<1x64xf32> to vector<16x64xf32>
    %94 = arith.addf %91, %93 : vector<16x64xf32>
    %cst_48 = arith.constant 5.000000e-01 : f32
    %95 = vector.broadcast %cst_48 : f32 to vector<16x64xf32>
    %96 = arith.mulf %95, %94 : vector<16x64xf32>
    %cst_49 = arith.constant 0.707106769 : f32
    %97 = vector.broadcast %cst_49 : f32 to vector<16x64xf32>
    %98 = arith.mulf %94, %97 : vector<16x64xf32>
    %99 = math.erf %98 : vector<16x64xf32>
    %cst_50 = arith.constant 1.000000e+00 : f32
    %100 = vector.broadcast %cst_50 : f32 to vector<16x64xf32>
    %101 = arith.addf %100, %99 : vector<16x64xf32>
    %102 = arith.mulf %96, %101 : vector<16x64xf32>
    %c0_51 = arith.constant 0 : index
    %c0_52 = arith.constant 0 : index
    %103 = vector.load %arg16[%c0_51, %c0_52] : memref<64x32xf32, #tpu.memory_space<vmem>>, vector<64x32xf32>
    %cst_53 = arith.constant dense<0.000000e+00> : vector<16x32xf32>
    %104 = tpu.matmul %102, %103, %cst_53 {dimension_numbers = #tpu.dot_dimension_numbers<[1], [0], [0], [1], [0, 0, 1, 1], [], []>} : vector<16x64xf32>, vector<64x32xf32>, vector<16x32xf32> -> vector<16x32xf32>
    %c0_54 = arith.constant 0 : index
    %c0_55 = arith.constant 0 : index
    %105 = vector.load %arg17[%c0_54, %c0_55] : memref<1x32xf32, #tpu.memory_space<vmem>>, vector<1x32xf32>
    %106 = vector.broadcast %105 : vector<1x32xf32> to vector<16x32xf32>
    %107 = arith.addf %104, %106 : vector<16x32xf32>
    %108 = arith.addf %107, %67 : vector<16x32xf32>
    %109 = vector.shape_cast %108 : vector<16x32xf32> to vector<2x8x32xf32>
    %c0_56 = arith.constant 0 : index
    %c0_57 = arith.constant 0 : index
    %c0_58 = arith.constant 0 : index
    %110 = vector.load %arg18[%c0_56, %c0_57, %c0_58] : memref<2x8x32xf32, #tpu.memory_space<vmem>>, vector<2x8x32xf32>
    tpu.vector_store %arg18[%c0_56, %c0_57, %c0_58], %109 {strides = array<i32>} : memref<2x8x32xf32, #tpu.memory_space<vmem>>, vector<2x8x32xf32>,
    return
  }
  func.func @transform_0(%arg0: i32) -> (i32, i32, i32) {
    %c0_i32 = arith.constant 0 : i32
    %c0_i32_0 = arith.constant 0 : i32
    %c0_i32_1 = arith.constant 0 : i32
    return %arg0, %c0_i32, %c0_i32_0 : i32, i32, i32
  }
  func.func @transform_1(%arg0: i32) -> (i32, i32) {
    %c0_i32 = arith.constant 0 : i32
    %c0_i32_0 = arith.constant 0 : i32
    %c0_i32_1 = arith.constant 0 : i32
    return %c0_i32, %c0_i32_0 : i32, i32
  }
  func.func @transform_2(%arg0: i32) -> (i32, i32) {
    %c0_i32 = arith.constant 0 : i32
    %c0_i32_0 = arith.constant 0 : i32
    %c0_i32_1 = arith.constant 0 : i32
    return %c0_i32, %c0_i32_0 : i32, i32
  }
  func.func @transform_3(%arg0: i32) -> (i32, i32) {
    %c0_i32 = arith.constant 0 : i32
    %c0_i32_0 = arith.constant 0 : i32
    %c0_i32_1 = arith.constant 0 : i32
    return %c0_i32, %c0_i32_0 : i32, i32
  }
  func.func @transform_4(%arg0: i32) -> (i32, i32) {
    %c0_i32 = arith.constant 0 : i32
    %c0_i32_0 = arith.constant 0 : i32
    %c0_i32_1 = arith.constant 0 : i32
    return %c0_i32, %c0_i32_0 : i32, i32
  }
  func.func @transform_5(%arg0: i32) -> (i32, i32) {
    %c0_i32 = arith.constant 0 : i32
    %c0_i32_0 = arith.constant 0 : i32
    %c0_i32_1 = arith.constant 0 : i32
    return %c0_i32, %c0_i32_0 : i32, i32
  }
  func.func @transform_6(%arg0: i32) -> (i32, i32) {
    %c0_i32 = arith.constant 0 : i32
    %c0_i32_0 = arith.constant 0 : i32
    %c0_i32_1 = arith.constant 0 : i32
    return %c0_i32, %c0_i32_0 : i32, i32
  }
  func.func @transform_7(%arg0: i32) -> (i32, i32) {
    %c0_i32 = arith.constant 0 : i32
    %c0_i32_0 = arith.constant 0 : i32
    %c0_i32_1 = arith.constant 0 : i32
    return %c0_i32, %c0_i32_0 : i32, i32
  }
  func.func @transform_8(%arg0: i32) -> (i32, i32) {
    %c0_i32 = arith.constant 0 : i32
    %c0_i32_0 = arith.constant 0 : i32
    %c0_i32_1 = arith.constant 0 : i32
    return %c0_i32, %c0_i32_0 : i32, i32
  }
  func.func @transform_9(%arg0: i32) -> (i32, i32) {
    %c0_i32 = arith.constant 0 : i32
    %c0_i32_0 = arith.constant 0 : i32
    %c0_i32_1 = arith.constant 0 : i32
    return %c0_i32, %c0_i32_0 : i32, i32
  }
  func.func @transform_10(%arg0: i32) -> (i32, i32) {
    %c0_i32 = arith.constant 0 : i32
    %c0_i32_0 = arith.constant 0 : i32
    %c0_i32_1 = arith.constant 0 : i32
    return %c0_i32, %c0_i32_0 : i32, i32
  }
  func.func @transform_11(%arg0: i32) -> (i32, i32) {
    %c0_i32 = arith.constant 0 : i32
    %c0_i32_0 = arith.constant 0 : i32
    %c0_i32_1 = arith.constant 0 : i32
    return %c0_i32, %c0_i32_0 : i32, i32
  }
  func.func @transform_12(%arg0: i32) -> (i32, i32) {
    %c0_i32 = arith.constant 0 : i32
    %c0_i32_0 = arith.constant 0 : i32
    %c0_i32_1 = arith.constant 0 : i32
    return %c0_i32, %c0_i32_0 : i32, i32
  }
  func.func @transform_13(%arg0: i32) -> (i32, i32) {
    %c0_i32 = arith.constant 0 : i32
    %c0_i32_0 = arith.constant 0 : i32
    %c0_i32_1 = arith.constant 0 : i32
    return %c0_i32, %c0_i32_0 : i32, i32
  }
  func.func @transform_14(%arg0: i32) -> (i32, i32) {
    %c0_i32 = arith.constant 0 : i32
    %c0_i32_0 = arith.constant 0 : i32
    %c0_i32_1 = arith.constant 0 : i32
    return %c0_i32, %c0_i32_0 : i32, i32
  }
  func.func @transform_15(%arg0: i32) -> (i32, i32) {
    %c0_i32 = arith.constant 0 : i32
    %c0_i32_0 = arith.constant 0 : i32
    %c0_i32_1 = arith.constant 0 : i32
    return %c0_i32, %c0_i32_0 : i32, i32
  }
  func.func @transform_16(%arg0: i32) -> (i32, i32) {
    %c0_i32 = arith.constant 0 : i32
    %c0_i32_0 = arith.constant 0 : i32
    %c0_i32_1 = arith.constant 0 : i32
    return %c0_i32, %c0_i32_0 : i32, i32
  }
  func.func @transform_17(%arg0: i32) -> (i32, i32, i32) {
    %c0_i32 = arith.constant 0 : i32
    %c0_i32_0 = arith.constant 0 : i32
    %c0_i32_1 = arith.constant 0 : i32
    return %arg0, %c0_i32, %c0_i32_0 : i32, i32, i32
  }
}

module attributes {stable_mosaic.version = 11 : i64} {
  func.func @_prenorm_attn_kernel(%arg0: i32, %arg1: memref<2x8x32xf32, #tpu.memory_space<vmem>>, %arg2: memref<1x32xf32, #tpu.memory_space<vmem>>, %arg3: memref<1x32xf32, #tpu.memory_space<vmem>>, %arg4: memref<32x32xf32, #tpu.memory_space<vmem>>, %arg5: memref<32x32xf32, #tpu.memory_space<vmem>>, %arg6: memref<32x32xf32, #tpu.memory_space<vmem>>, %arg7: memref<32x32xf32, #tpu.memory_space<vmem>>, %arg8: memref<1x32xf32, #tpu.memory_space<vmem>>, %arg9: memref<1x32xf32, #tpu.memory_space<vmem>>, %arg10: memref<1x32xf32, #tpu.memory_space<vmem>>, %arg11: memref<1x32xf32, #tpu.memory_space<vmem>>, %arg12: memref<1x32xf32, #tpu.memory_space<vmem>>, %arg13: memref<1x32xf32, #tpu.memory_space<vmem>>, %arg14: memref<32x64xf32, #tpu.memory_space<vmem>>, %arg15: memref<1x64xf32, #tpu.memory_space<vmem>>, %arg16: memref<64x32xf32, #tpu.memory_space<vmem>>, %arg17: memref<1x32xf32, #tpu.memory_space<vmem>>, %arg18: memref<2x8x32xf32, #tpu.memory_space<vmem>>) attributes {dimension_semantics = [#tpu.dimension_semantics<parallel>], iteration_bounds = array<i64: 1>, scalar_prefetch = 0 : i64, scratch_operands = 0 : i64, tpu.core_type = #tpu.core_type<tc>, window_params = [{transform_indices = @transform_0, window_bounds = array<i64: 2, 8, 32>}, {pipeline_mode = #tpu.pipeline_mode<synchronous>, transform_indices = @transform_1, window_bounds = array<i64: 1, 32>}, {pipeline_mode = #tpu.pipeline_mode<synchronous>, transform_indices = @transform_2, window_bounds = array<i64: 1, 32>}, {pipeline_mode = #tpu.pipeline_mode<synchronous>, transform_indices = @transform_3, window_bounds = array<i64: 32, 32>}, {pipeline_mode = #tpu.pipeline_mode<synchronous>, transform_indices = @transform_4, window_bounds = array<i64: 32, 32>}, {pipeline_mode = #tpu.pipeline_mode<synchronous>, transform_indices = @transform_5, window_bounds = array<i64: 32, 32>}, {pipeline_mode = #tpu.pipeline_mode<synchronous>, transform_indices = @transform_6, window_bounds = array<i64: 32, 32>}, {pipeline_mode = #tpu.pipeline_mode<synchronous>, transform_indices = @transform_7, window_bounds = array<i64: 1, 32>}, {pipeline_mode = #tpu.pipeline_mode<synchronous>, transform_indices = @transform_8, window_bounds = array<i64: 1, 32>}, {pipeline_mode = #tpu.pipeline_mode<synchronous>, transform_indices = @transform_9, window_bounds = array<i64: 1, 32>}, {pipeline_mode = #tpu.pipeline_mode<synchronous>, transform_indices = @transform_10, window_bounds = array<i64: 1, 32>}, {pipeline_mode = #tpu.pipeline_mode<synchronous>, transform_indices = @transform_11, window_bounds = array<i64: 1, 32>}, {pipeline_mode = #tpu.pipeline_mode<synchronous>, transform_indices = @transform_12, window_bounds = array<i64: 1, 32>}, {pipeline_mode = #tpu.pipeline_mode<synchronous>, transform_indices = @transform_13, window_bounds = array<i64: 32, 64>}, {pipeline_mode = #tpu.pipeline_mode<synchronous>, transform_indices = @transform_14, window_bounds = array<i64: 1, 64>}, {pipeline_mode = #tpu.pipeline_mode<synchronous>, transform_indices = @transform_15, window_bounds = array<i64: 64, 32>}, {pipeline_mode = #tpu.pipeline_mode<synchronous>, transform_indices = @transform_16, window_bounds = array<i64: 1, 32>}, {transform_indices = @transform_17, window_bounds = array<i64: 2, 8, 32>}]} {
    %c0 = arith.constant 0 : index
    %c0_0 = arith.constant 0 : index
    %c0_1 = arith.constant 0 : index
    %0 = vector.load %arg1[%c0, %c0_0, %c0_1] : memref<2x8x32xf32, #tpu.memory_space<vmem>>, vector<2x8x32xf32>
    %1 = vector.shape_cast %0 : vector<2x8x32xf32> to vector<16x32xf32>
    %cst = arith.constant dense<0.000000e+00> : vector<16xf32>
    %2 = vector.multi_reduction <add>, %1, %cst [1] : vector<16x32xf32> to vector<16xf32>
    %3 = vector.shape_cast %2 : vector<16xf32> to vector<16x1xf32>
    %cst_2 = arith.constant 3.200000e+01 : f32
    %4 = vector.broadcast %cst_2 : f32 to vector<16x1xf32>
    %5 = arith.divf %3, %4 : vector<16x1xf32>
    %6 = vector.broadcast %5 : vector<16x1xf32> to vector<16x32xf32>
    %7 = arith.subf %1, %6 : vector<16x32xf32>
    %8 = arith.mulf %7, %7 : vector<16x32xf32>
    %cst_3 = arith.constant dense<0.000000e+00> : vector<16xf32>
    %9 = vector.multi_reduction <add>, %8, %cst_3 [1] : vector<16x32xf32> to vector<16xf32>
    %10 = vector.shape_cast %9 : vector<16xf32> to vector<16x1xf32>
    %cst_4 = arith.constant 3.200000e+01 : f32
    %11 = vector.broadcast %cst_4 : f32 to vector<16x1xf32>
    %12 = arith.divf %10, %11 : vector<16x1xf32>
    %cst_5 = arith.constant 9.99999974E-6 : f32
    %13 = vector.broadcast %cst_5 : f32 to vector<16x1xf32>
    %14 = arith.addf %12, %13 : vector<16x1xf32>
    %15 = math.rsqrt %14 : vector<16x1xf32>
    %16 = vector.broadcast %15 : vector<16x1xf32> to vector<16x32xf32>
    %17 = arith.mulf %7, %16 : vector<16x32xf32>
    %c0_6 = arith.constant 0 : index
    %c0_7 = arith.constant 0 : index
    %18 = vector.load %arg2[%c0_6, %c0_7] : memref<1x32xf32, #tpu.memory_space<vmem>>, vector<1x32xf32>
    %19 = vector.broadcast %18 : vector<1x32xf32> to vector<16x32xf32>
    %20 = arith.mulf %17, %19 : vector<16x32xf32>
    %c0_8 = arith.constant 0 : index
    %c0_9 = arith.constant 0 : index
    %21 = vector.load %arg3[%c0_8, %c0_9] : memref<1x32xf32, #tpu.memory_space<vmem>>, vector<1x32xf32>
    %22 = vector.broadcast %21 : vector<1x32xf32> to vector<16x32xf32>
    %23 = arith.addf %20, %22 : vector<16x32xf32>
    %c0_10 = arith.constant 0 : index
    %c0_11 = arith.constant 0 : index
    %24 = vector.load %arg4[%c0_10, %c0_11] : memref<32x32xf32, #tpu.memory_space<vmem>>, vector<32x32xf32>
    %cst_12 = arith.constant dense<0.000000e+00> : vector<16x32xf32>
    %25 = tpu.matmul %23, %24, %cst_12 {dimension_numbers = #tpu.dot_dimension_numbers<[1], [0], [0], [1], [0, 0, 1, 1], [], []>} : vector<16x32xf32>, vector<32x32xf32>, vector<16x32xf32> -> vector<16x32xf32>
    %c0_13 = arith.constant 0 : index
    %c0_14 = arith.constant 0 : index
    %26 = vector.load %arg8[%c0_13, %c0_14] : memref<1x32xf32, #tpu.memory_space<vmem>>, vector<1x32xf32>
    %27 = vector.broadcast %26 : vector<1x32xf32> to vector<16x32xf32>
    %28 = arith.addf %25, %27 : vector<16x32xf32>
    %c0_15 = arith.constant 0 : index
    %c0_16 = arith.constant 0 : index
    %29 = vector.load %arg5[%c0_15, %c0_16] : memref<32x32xf32, #tpu.memory_space<vmem>>, vector<32x32xf32>
    %cst_17 = arith.constant dense<0.000000e+00> : vector<16x32xf32>
    %30 = tpu.matmul %23, %29, %cst_17 {dimension_numbers = #tpu.dot_dimension_numbers<[1], [0], [0], [1], [0, 0, 1, 1], [], []>} : vector<16x32xf32>, vector<32x32xf32>, vector<16x32xf32> -> vector<16x32xf32>
    %c0_18 = arith.constant 0 : index
    %c0_19 = arith.constant 0 : index
    %31 = vector.load %arg9[%c0_18, %c0_19] : memref<1x32xf32, #tpu.memory_space<vmem>>, vector<1x32xf32>
    %32 = vector.broadcast %31 : vector<1x32xf32> to vector<16x32xf32>
    %33 = arith.addf %30, %32 : vector<16x32xf32>
    %c0_20 = arith.constant 0 : index
    %c0_21 = arith.constant 0 : index
    %34 = vector.load %arg6[%c0_20, %c0_21] : memref<32x32xf32, #tpu.memory_space<vmem>>, vector<32x32xf32>
    %cst_22 = arith.constant dense<0.000000e+00> : vector<16x32xf32>
    %35 = tpu.matmul %23, %34, %cst_22 {dimension_numbers = #tpu.dot_dimension_numbers<[1], [0], [0], [1], [0, 0, 1, 1], [], []>} : vector<16x32xf32>, vector<32x32xf32>, vector<16x32xf32> -> vector<16x32xf32>
    %c0_23 = arith.constant 0 : index
    %c0_24 = arith.constant 0 : index
    %36 = vector.load %arg10[%c0_23, %c0_24] : memref<1x32xf32, #tpu.memory_space<vmem>>, vector<1x32xf32>
    %37 = vector.broadcast %36 : vector<1x32xf32> to vector<16x32xf32>
    %38 = arith.addf %35, %37 : vector<16x32xf32>
    %39 = vector.shape_cast %28 : vector<16x32xf32> to vector<2x8x4x8xf32>
    %40 = tpu.transpose %39, [0, 2, 1, 3] : vector<2x8x4x8xf32> -> vector<2x4x8x8xf32>
    %41 = vector.shape_cast %40 : vector<2x4x8x8xf32> to vector<8x8x8xf32>
    %42 = vector.shape_cast %33 : vector<16x32xf32> to vector<2x8x4x8xf32>
    %43 = tpu.transpose %42, [0, 2, 1, 3] : vector<2x8x4x8xf32> -> vector<2x4x8x8xf32>
    %44 = vector.shape_cast %43 : vector<2x4x8x8xf32> to vector<8x8x8xf32>
    %45 = vector.shape_cast %38 : vector<16x32xf32> to vector<2x8x4x8xf32>
    %46 = tpu.transpose %45, [0, 2, 1, 3] : vector<2x8x4x8xf32> -> vector<2x4x8x8xf32>
    %47 = vector.shape_cast %46 : vector<2x4x8x8xf32> to vector<8x8x8xf32>
    "tpu.trace_start"() <{level = 10 : i32, message = "gsf,gtf->gst"}> : () -> ()
    %cst_25 = arith.constant dense<0.000000e+00> : vector<8x8x8xf32>
    %48 = tpu.matmul %41, %44, %cst_25 {dimension_numbers = #tpu.dot_dimension_numbers<[2], [2], [1], [1], [0, 0, 0, 1, 1, 1], [0], [0]>} : vector<8x8x8xf32>, vector<8x8x8xf32>, vector<8x8x8xf32> -> vector<8x8x8xf32>
    "tpu.trace_stop"() : () -> ()
    %cst_26 = arith.constant dense<0xFF800000> : vector<8x8xf32>
    %49 = vector.multi_reduction <maximumf>, %48, %cst_26 [2] : vector<8x8x8xf32> to vector<8x8xf32>
    %50 = vector.shape_cast %49 : vector<8x8xf32> to vector<8x8x1xf32>
    %51 = vector.broadcast %50 : vector<8x8x1xf32> to vector<8x8x8xf32>
    %52 = arith.subf %48, %51 : vector<8x8x8xf32>
    %53 = math.exp %52 : vector<8x8x8xf32>
    %cst_27 = arith.constant dense<0.000000e+00> : vector<8x8xf32>
    %54 = vector.multi_reduction <add>, %53, %cst_27 [2] : vector<8x8x8xf32> to vector<8x8xf32>
    %55 = vector.shape_cast %54 : vector<8x8xf32> to vector<8x8x1xf32>
    %56 = vector.broadcast %55 : vector<8x8x1xf32> to vector<8x8x8xf32>
    %57 = arith.divf %53, %56 : vector<8x8x8xf32>
    "tpu.trace_start"() <{level = 10 : i32, message = "gst,gtf->gsf"}> : () -> ()
    %cst_28 = arith.constant dense<0.000000e+00> : vector<8x8x8xf32>
    %58 = tpu.matmul %57, %47, %cst_28 {dimension_numbers = #tpu.dot_dimension_numbers<[2], [1], [1], [2], [0, 0, 0, 1, 1, 2], [0], [0]>} : vector<8x8x8xf32>, vector<8x8x8xf32>, vector<8x8x8xf32> -> vector<8x8x8xf32>
    "tpu.trace_stop"() : () -> ()
    %59 = vector.shape_cast %58 : vector<8x8x8xf32> to vector<2x4x8x8xf32>
    %60 = tpu.transpose %59, [0, 2, 1, 3] : vector<2x4x8x8xf32> -> vector<2x8x4x8xf32>
    %61 = vector.shape_cast %60 : vector<2x8x4x8xf32> to vector<16x32xf32>
    %c0_29 = arith.constant 0 : index
    %c0_30 = arith.constant 0 : index
    %62 = vector.load %arg7[%c0_29, %c0_30] : memref<32x32xf32, #tpu.memory_space<vmem>>, vector<32x32xf32>
    %cst_31 = arith.constant dense<0.000000e+00> : vector<16x32xf32>
    %63 = tpu.matmul %61, %62, %cst_31 {dimension_numbers = #tpu.dot_dimension_numbers<[1], [0], [0], [1], [0, 0, 1, 1], [], []>} : vector<16x32xf32>, vector<32x32xf32>, vector<16x32xf32> -> vector<16x32xf32>
    %c0_32 = arith.constant 0 : index
    %c0_33 = arith.constant 0 : index
    %64 = vector.load %arg11[%c0_32, %c0_33] : memref<1x32xf32, #tpu.memory_space<vmem>>, vector<1x32xf32>
    %65 = vector.broadcast %64 : vector<1x32xf32> to vector<16x32xf32>
    %66 = arith.addf %63, %65 : vector<16x32xf32>
    %67 = arith.addf %1, %66 : vector<16x32xf32>
    %cst_34 = arith.constant dense<0.000000e+00> : vector<16xf32>
    %68 = vector.multi_reduction <add>, %67, %cst_34 [1] : vector<16x32xf32> to vector<16xf32>
    %69 = vector.shape_cast %68 : vector<16xf32> to vector<16x1xf32>
    %cst_35 = arith.constant 3.200000e+01 : f32
    %70 = vector.broadcast %cst_35 : f32 to vector<16x1xf32>
    %71 = arith.divf %69, %70 : vector<16x1xf32>
    %72 = vector.broadcast %71 : vector<16x1xf32> to vector<16x32xf32>
    %73 = arith.subf %67, %72 : vector<16x32xf32>
    %74 = arith.mulf %73, %73 : vector<16x32xf32>
    %cst_36 = arith.constant dense<0.000000e+00> : vector<16xf32>
    %75 = vector.multi_reduction <add>, %74, %cst_36 [1] : vector<16x32xf32> to vector<16xf32>
    %76 = vector.shape_cast %75 : vector<16xf32> to vector<16x1xf32>
    %cst_37 = arith.constant 3.200000e+01 : f32
    %77 = vector.broadcast %cst_37 : f32 to vector<16x1xf32>
    %78 = arith.divf %76, %77 : vector<16x1xf32>
    %cst_38 = arith.constant 9.99999974E-6 : f32
    %79 = vector.broadcast %cst_38 : f32 to vector<16x1xf32>
    %80 = arith.addf %78, %79 : vector<16x1xf32>
    %81 = math.rsqrt %80 : vector<16x1xf32>
    %82 = vector.broadcast %81 : vector<16x1xf32> to vector<16x32xf32>
    %83 = arith.mulf %73, %82 : vector<16x32xf32>
    %c0_39 = arith.constant 0 : index
    %c0_40 = arith.constant 0 : index
    %84 = vector.load %arg12[%c0_39, %c0_40] : memref<1x32xf32, #tpu.memory_space<vmem>>, vector<1x32xf32>
    %85 = vector.broadcast %84 : vector<1x32xf32> to vector<16x32xf32>
    %86 = arith.mulf %83, %85 : vector<16x32xf32>
    %c0_41 = arith.constant 0 : index
    %c0_42 = arith.constant 0 : index
    %87 = vector.load %arg13[%c0_41, %c0_42] : memref<1x32xf32, #tpu.memory_space<vmem>>, vector<1x32xf32>
    %88 = vector.broadcast %87 : vector<1x32xf32> to vector<16x32xf32>
    %89 = arith.addf %86, %88 : vector<16x32xf32>
    %c0_43 = arith.constant 0 : index
    %c0_44 = arith.constant 0 : index
    %90 = vector.load %arg14[%c0_43, %c0_44] : memref<32x64xf32, #tpu.memory_space<vmem>>, vector<32x64xf32>
    %cst_45 = arith.constant dense<0.000000e+00> : vector<16x64xf32>
    %91 = tpu.matmul %89, %90, %cst_45 {dimension_numbers = #tpu.dot_dimension_numbers<[1], [0], [0], [1], [0, 0, 1, 1], [], []>} : vector<16x32xf32>, vector<32x64xf32>, vector<16x64xf32> -> vector<16x64xf32>
    %c0_46 = arith.constant 0 : index
    %c0_47 = arith.constant 0 : index
    %92 = vector.load %arg15[%c0_46, %c0_47] : memref<1x64xf32, #tpu.memory_space<vmem>>, vector<1x64xf32>
    %93 = vector.broadcast %92 : vector<1x64xf32> to vector<16x64xf32>
    %94 = arith.addf %91, %93 : vector<16x64xf32>
    %cst_48 = arith.constant 5.000000e-01 : f32
    %95 = vector.broadcast %cst_48 : f32 to vector<16x64xf32>
    %96 = arith.mulf %95, %94 : vector<16x64xf32>
    %cst_49 = arith.constant 0.707106769 : f32
    %97 = vector.broadcast %cst_49 : f32 to vector<16x64xf32>
    %98 = arith.mulf %94, %97 : vector<16x64xf32>
    %99 = math.erf %98 : vector<16x64xf32>
    %cst_50 = arith.constant 1.000000e+00 : f32
    %100 = vector.broadcast %cst_50 : f32 to vector<16x64xf32>
    %101 = arith.addf %100, %99 : vector<16x64xf32>
    %102 = arith.mulf %96, %101 : vector<16x64xf32>
    %c0_51 = arith.constant 0 : index
    %c0_52 = arith.constant 0 : index
    %103 = vector.load %arg16[%c0_51, %c0_52] : memref<64x32xf32, #tpu.memory_space<vmem>>, vector<64x32xf32>
    %cst_53 = arith.constant dense<0.000000e+00> : vector<16x32xf32>
    %104 = tpu.matmul %102, %103, %cst_53 {dimension_numbers = #tpu.dot_dimension_numbers<[1], [0], [0], [1], [0, 0, 1, 1], [], []>} : vector<16x64xf32>, vector<64x32xf32>, vector<16x32xf32> -> vector<16x32xf32>
    %c0_54 = arith.constant 0 : index
    %c0_55 = arith.constant 0 : index
    %105 = vector.load %arg17[%c0_54, %c0_55] : memref<1x32xf32, #tpu.memory_space<vmem>>, vector<1x32xf32>
    %106 = vector.broadcast %105 : vector<1x32xf32> to vector<16x32xf32>
    %107 = arith.addf %104, %106 : vector<16x32xf32>
    %108 = arith.addf %107, %67 : vector<16x32xf32>
    %109 = vector.shape_cast %108 : vector<16x32xf32> to vector<2x8x32xf32>
    %c0_56 = arith.constant 0 : index
    %c0_57 = arith.constant 0 : index
    %c0_58 = arith.constant 0 : index
    %110 = vector.load %arg18[%c0_56, %c0_57, %c0_58] : memref<2x8x32xf32, #tpu.memory_space<vmem>>, vector<2x8x32xf32>
    tpu.vector_store %arg18[%c0_56, %c0_57, %c0_58], %109 {strides = array<i32>} : memref<2x8x32xf32, #tpu.memory_space<vmem>>, vector<2x8x32xf32>,
    return
  }
  func.func @transform_0(%arg0: i32) -> (i32, i32, i32) {
    %c0_i32 = arith.constant 0 : i32
    %c0_i32_0 = arith.constant 0 : i32
    %c0_i32_1 = arith.constant 0 : i32
    return %arg0, %c0_i32, %c0_i32_0 : i32, i32, i32
  }
  func.func @transform_1(%arg0: i32) -> (i32, i32) {
    %c0_i32 = arith.constant 0 : i32
    %c0_i32_0 = arith.constant 0 : i32
    %c0_i32_1 = arith.constant 0 : i32
    return %c0_i32, %c0_i32_0 : i32, i32
  }
  func.func @transform_2(%arg0: i32) -> (i32, i32) {
    %c0_i32 = arith.constant 0 : i32
    %c0_i32_0 = arith.constant 0 : i32
    %c0_i32_1 = arith.constant 0 : i32
    return %c0_i32, %c0_i32_0 : i32, i32
  }
  func.func @transform_3(%arg0: i32) -> (i32, i32) {
    %c0_i32 = arith.constant 0 : i32
    %c0_i32_0 = arith.constant 0 : i32
    %c0_i32_1 = arith.constant 0 : i32
    return %c0_i32, %c0_i32_0 : i32, i32
  }
  func.func @transform_4(%arg0: i32) -> (i32, i32) {
    %c0_i32 = arith.constant 0 : i32
    %c0_i32_0 = arith.constant 0 : i32
    %c0_i32_1 = arith.constant 0 : i32
    return %c0_i32, %c0_i32_0 : i32, i32
  }
  func.func @transform_5(%arg0: i32) -> (i32, i32) {
    %c0_i32 = arith.constant 0 : i32
    %c0_i32_0 = arith.constant 0 : i32
    %c0_i32_1 = arith.constant 0 : i32
    return %c0_i32, %c0_i32_0 : i32, i32
  }
  func.func @transform_6(%arg0: i32) -> (i32, i32) {
    %c0_i32 = arith.constant 0 : i32
    %c0_i32_0 = arith.constant 0 : i32
    %c0_i32_1 = arith.constant 0 : i32
    return %c0_i32, %c0_i32_0 : i32, i32
  }
  func.func @transform_7(%arg0: i32) -> (i32, i32) {
    %c0_i32 = arith.constant 0 : i32
    %c0_i32_0 = arith.constant 0 : i32
    %c0_i32_1 = arith.constant 0 : i32
    return %c0_i32, %c0_i32_0 : i32, i32
  }
  func.func @transform_8(%arg0: i32) -> (i32, i32) {
    %c0_i32 = arith.constant 0 : i32
    %c0_i32_0 = arith.constant 0 : i32
    %c0_i32_1 = arith.constant 0 : i32
    return %c0_i32, %c0_i32_0 : i32, i32
  }
  func.func @transform_9(%arg0: i32) -> (i32, i32) {
    %c0_i32 = arith.constant 0 : i32
    %c0_i32_0 = arith.constant 0 : i32
    %c0_i32_1 = arith.constant 0 : i32
    return %c0_i32, %c0_i32_0 : i32, i32
  }
  func.func @transform_10(%arg0: i32) -> (i32, i32) {
    %c0_i32 = arith.constant 0 : i32
    %c0_i32_0 = arith.constant 0 : i32
    %c0_i32_1 = arith.constant 0 : i32
    return %c0_i32, %c0_i32_0 : i32, i32
  }
  func.func @transform_11(%arg0: i32) -> (i32, i32) {
    %c0_i32 = arith.constant 0 : i32
    %c0_i32_0 = arith.constant 0 : i32
    %c0_i32_1 = arith.constant 0 : i32
    return %c0_i32, %c0_i32_0 : i32, i32
  }
  func.func @transform_12(%arg0: i32) -> (i32, i32) {
    %c0_i32 = arith.constant 0 : i32
    %c0_i32_0 = arith.constant 0 : i32
    %c0_i32_1 = arith.constant 0 : i32
    return %c0_i32, %c0_i32_0 : i32, i32
  }
  func.func @transform_13(%arg0: i32) -> (i32, i32) {
    %c0_i32 = arith.constant 0 : i32
    %c0_i32_0 = arith.constant 0 : i32
    %c0_i32_1 = arith.constant 0 : i32
    return %c0_i32, %c0_i32_0 : i32, i32
  }
  func.func @transform_14(%arg0: i32) -> (i32, i32) {
    %c0_i32 = arith.constant 0 : i32
    %c0_i32_0 = arith.constant 0 : i32
    %c0_i32_1 = arith.constant 0 : i32
    return %c0_i32, %c0_i32_0 : i32, i32
  }
  func.func @transform_15(%arg0: i32) -> (i32, i32) {
    %c0_i32 = arith.constant 0 : i32
    %c0_i32_0 = arith.constant 0 : i32
    %c0_i32_1 = arith.constant 0 : i32
    return %c0_i32, %c0_i32_0 : i32, i32
  }
  func.func @transform_16(%arg0: i32) -> (i32, i32) {
    %c0_i32 = arith.constant 0 : i32
    %c0_i32_0 = arith.constant 0 : i32
    %c0_i32_1 = arith.constant 0 : i32
    return %c0_i32, %c0_i32_0 : i32, i32
  }
  func.func @transform_17(%arg0: i32) -> (i32, i32, i32) {
    %c0_i32 = arith.constant 0 : i32
    %c0_i32_0 = arith.constant 0 : i32
    %c0_i32_1 = arith.constant 0 : i32
    return %arg0, %c0_i32, %c0_i32_0 : i32, i32, i32
  }
}

</mosaic_0001>

<bundles_post_ra>
// kernel: tpu_custom_call.1
= control target key start
LH: loop header
LB: loop body
LE: loop exit
PB: predicated region body
PF: predicated region fallthrough
CT: control target
= control target key end

     0   :  { %s4390_s0 = inlined_call_operand.hbm [shape: f32[2,8,32], index: 0, kind: input, shape index: {}]   ;;  %s4391_s1 = inlined_call_operand.vmem [shape: f32[1,32], index: 1, kind: input, shape index: {}]   ;;  %s4392_s2 = inlined_call_operand.vmem [shape: f32[1,32], index: 2, kind: input, shape index: {}]   ;;  %s4393_s3 = inlined_call_operand.vmem [shape: f32[32,32], index: 3, kind: input, shape index: {}]   ;;  %s4394_s4 = inlined_call_operand.vmem [shape: f32[32,32], index: 4, kind: input, shape index: {}]   ;;  %s4395_s5 = inlined_call_operand.vmem [shape: f32[32,32], index: 5, kind: input, shape index: {}]   ;;  %s4396_s6 = inlined_call_operand.hbm [shape: f32[32,32], index: 6, kind: input, shape index: {}]   ;;  %s4397_s7 = inlined_call_operand.vmem [shape: f32[1,32], index: 7, kind: input, shape index: {}]   ;;  %s4398_s8 = inlined_call_operand.vmem [shape: f32[1,32], index: 8, kind: input, shape index: {}]   ;;  %s4399_s9 = inlined_call_operand.vmem [shape: f32[1,32], index: 9, kind: input, shape index: {}]   ;;  %s4400_s10 = inlined_call_operand.vmem [shape: f32[1,32], index: 10, kind: input, shape index: {}]   ;;  %s4401_s11 = inlined_call_operand.vmem [shape: f32[1,32], index: 11, kind: input, shape index: {}]   ;;  %s4402_s12 = inlined_call_operand.vmem [shape: f32[1,32], index: 12, kind: input, shape index: {}]   ;;  %s4403_s13 = inlined_call_operand.hbm [shape: f32[32,64], index: 13, kind: input, shape index: {}]   ;;  %s4404_s14 = inlined_call_operand.vmem [shape: f32[1,64], index: 14, kind: input, shape index: {}]   ;;  %s4405_s15 = inlined_call_operand.vmem [shape: f32[64,32], index: 15, kind: input, shape index: {}]   ;;  %s4406_s16 = inlined_call_operand.vmem [shape: f32[1,32], index: 16, kind: input, shape index: {}]   ;;  %s4407_s17 = inlined_call_operand.hbm [shape: f32[2,8,32], index: 17, kind: output, shape index: {}]  }
   0x1   :  { %4409 = sst [smem:[#allocation12_spill]] %s4390_s0 }
   0x2   :  { %4410 = sst [smem:[#allocation13_spill]] %s4391_s1 }
   0x3   :  { %22 = vsyncpa [#allocation3], 0 }
   0x4   :  { %23 = vsyncpa [#allocation6], 0 }
   0x5   :  { %24 = vsyncpa [#allocation4], 0  ;;  %s3729_s24 = smov [#allocation5]   ;;  %s3730_s26 = smov [#allocation2]  }
   0x6   :  { %s52_s25 = sshll.u32 %s3729_s24, 4  ;;  %s30_s27 = sshll.u32 %s3730_s26, 4  ;;  %s53_s25 = int_to_ptr.vmem [resolvable:$true] %s52_s25  ;;  %s3834_s27 = int_to_ptr.vmem [resolvable:$true] %s30_s27 }
   0x7   :  { %s3635_s0 = scalar_lea.hbm %s4396_s6, 512 }
   0x8   :  { %p3636_p0 = scmp.ne.s32.totalorder %s4396_s6, %s3635_s0  ;;  %p3639_p1 = scmp.lt.u32.totalorder %s3635_s0, %s4396_s6 }
   0xa   :  { %p3641_p2 = pnand %p3639_p1, %p3636_p0 }
   0xc   :  { %3644 = shalt.err (!%p3641_p2)
}
   0xd   :  { %s3645_s20 = scalar_lea.vmem %s53_s25, 512  ;;  %p3650_p4 = scmp.lt.s32.totalorder %s53_s25, %s53_s25 }
   0xe   :  { %p3646_p3 = scmp.ne.s32.totalorder %s53_s25, %s3645_s20  ;;  %p3651_p5 = scmp.lt.s32.totalorder %s3645_s20, %s3645_s20 }
  0x10   :  { %p3652_p6 = por %p3651_p5, %p3650_p4 }
  0x12   :  { %p3653_p7 = pnand %p3652_p6, %p3646_p3 }
  0x14   :  { %3656 = shalt.err (!%p3653_p7)
}
  0x15   :  { %s3731_s21 = smov 128   ;;  %s3732_s22 = smov 8  }
  0x16   :  { %58 = dma.hbm_to_vmem [thread:$0]  %s4396_s6, 512, %s53_s25, [#allocation6], %s3731_s21, %s3731_s21, %s3732_s22  }
  0x17   :  { %s4411_s29 = sld [smem:[#allocation12_spill]] }
  0x1d   :  { %s3657_s0 = scalar_lea.hbm %s4411_s29, 256 }
  0x1e   :  { %p3658_p8 = scmp.ne.s32.totalorder %s4411_s29, %s3657_s0  ;;  %p3661_p9 = scmp.lt.u32.totalorder %s3657_s0, %s4411_s29 }
  0x20   :  { %p3663_p10 = pnand %p3661_p9, %p3658_p8 }
  0x22   :  { %3666 = shalt.err (!%p3663_p10)
}
  0x23   :  { %s3667_s20 = scalar_lea.vmem %s3834_s27, 256  ;;  %p3672_p12 = scmp.lt.s32.totalorder %s3834_s27, %s3834_s27 }
  0x24   :  { %p3668_p11 = scmp.ne.s32.totalorder %s3834_s27, %s3667_s20  ;;  %p3673_p13 = scmp.lt.s32.totalorder %s3667_s20, %s3667_s20 }
  0x26   :  { %p3674_p0 = por %p3673_p13, %p3672_p12 }
  0x28   :  { %p3675_p1 = pnand %p3674_p0, %p3668_p11 }
  0x2a   :  { %3678 = shalt.err (!%p3675_p1)
}
  0x2b   :  { %36 = dma.hbm_to_vmem [thread:$0]  %s4411_s29, 256, %s3834_s27, [#allocation3], %s3731_s21, %s3731_s21, %s3732_s22  }
  0x2c   :  { %s3733_s23 = smov [#allocation7]   ;;  %s3679_s0 = scalar_lea.hbm %s4403_s13, 512 }
  0x2d   :  { %s76_s24 = sshll.u32 %s3733_s23, 4  ;;  %p3680_p2 = scmp.ne.s32.totalorder %s4403_s13, %s3679_s0  ;;  %s77_s24 = int_to_ptr.vmem [resolvable:$true] %s76_s24 }
  0x2e   :  { %p3683_p3 = scmp.lt.u32.totalorder %s3679_s0, %s4403_s13 }
  0x30   :  { %p3685_p4 = pnand %p3683_p3, %p3680_p2 }
  0x32   :  { %3688 = shalt.err (!%p3685_p4)
}
  0x33   :  { %s3689_s20 = scalar_lea.vmem %s77_s24, 512  ;;  %p3694_p6 = scmp.lt.s32.totalorder %s77_s24, %s77_s24 }
  0x34   :  { %p3690_p5 = scmp.ne.s32.totalorder %s77_s24, %s3689_s20  ;;  %p3695_p7 = scmp.lt.s32.totalorder %s3689_s20, %s3689_s20 }
  0x36   :  { %p3696_p8 = por %p3695_p7, %p3694_p6 }
  0x38   :  { %p3697_p9 = pnand %p3696_p8, %p3690_p5 }
  0x3a   :  { %3700 = shalt.err (!%p3697_p9)
}
  0x3b   :  { %82 = dma.hbm_to_vmem [thread:$0]  %s4403_s13, 512, %s77_s24, [#allocation6], %s3731_s21, %s3731_s21, %s3732_s22  }
  0x3c   :  { %3723 = dma.done.wait [#allocation3], 256  }
  0x3d   :  { %3724 = vsyncadd [#allocation3], 4294967040 }
  0x3e   :  { %3725 = dma.done.wait [#allocation6], 1024  }
  0x3f   :  { %3726 = vsyncadd [#allocation6], 4294966272  ;;  %vm100_vm0 = vcmask 261120   ;;  %v98_v0 = vld [vmem:[#allocation2] sm:$0xff]  ;;  %v99_v1 = vld [vmem:[#allocation2 + $0x8] sm:$0xff]  ;;  %s4412_s26 = sld [smem:[#allocation13_spill]]  ;;  %v435_v63 = vlaneseq }
  0x40   :  { %v101_v2 = vsel %vm100_vm0, %v98_v0, 0.0  ;;  %v104_v3 = vsel %vm100_vm0, %v99_v1, 0.0  ;;  %v146_v14 = vld [vmem:[%s4393_s3] sm:$0xff]  ;;  %v147_v15 = vld [vmem:[%s4393_s3 + $0x8] sm:$0xff]  ;;  %v148_v19 = vld [vmem:[%s4393_s3 + $0x10] sm:$0xff]  ;;  %s3734_s20 = smov 120  }
  0x41   :  { %102 = vadd.xlane.f32.xlu0 %v101_v2  ;;  %v324_v16 = vld [vmem:[%s4395_s5] sm:$0xff]  ;;  %v3518_v17 = vpack.c.bf16 %v147_v15, %v146_v14  ;;  %v325_v18 = vld [vmem:[%s4395_s5 + $0x8] sm:$0xff]  ;;  %v149_v20 = vld [vmem:[%s4393_s3 + $0x18] sm:$0xff]  ;;  %s3736_s13 = smov 104   ;;  %v3737_v60 = vmov 0.0   ;;  %vm3738_vm1 = vmmov 0  }
  0x42   :  { %v3534_v21 = vpack.c.bf16 %v325_v18, %v324_v16  ;;  %v3522_v22 = vpack.c.bf16 %v149_v20, %v148_v19  ;;  %v326_v23 = vld [vmem:[%s4395_s5 + $0x10] sm:$0xff]  ;;  %v327_v24 = vld [vmem:[%s4395_s5 + $0x18] sm:$0xff]  ;;  %v238_v26 = vld [vmem:[%s4394_s4] sm:$0xff]  ;;  %v3739_v61 = vmov 1983009808   ;;  %vm1286_vm2 = vcmask 64512  }
  0x43   :  { %3519 = vmatprep.subr.bf16.mxu1 %v3518_v17  ;;  %v3538_v25 = vpack.c.bf16 %v327_v24, %v326_v23  ;;  %v239_v27 = vld [vmem:[%s4394_s4 + $0x8] sm:$0xff]  ;;  %v3231_v38 = vld [vmem:[%s4392_s2] ss:$0 sm:$0xff]  ;;  %v240_v43 = vld [vmem:[%s4394_s4 + $0x10] sm:$0xff]  ;;  %v433_v62 = vunpack.c.l.s4 %v3739_v61  ;;  %s3742_s3 = smov 24   ;;  %vm2865_vm3 = vcmask 130048  }
  0x44   :  { %3521 = vmatpush3.bf16.msra.mxu1 %v3518_v17  ;;  %3535 = vmatprep.subr.bf16.mxu0 %v3534_v21  ;;  %v3526_v28 = vpack.c.bf16 %v239_v27, %v238_v26  ;;  %v241_v44 = vld [vmem:[%s4394_s4 + $0x18] sm:$0xff]  ;;  %v3232_v48 = vld [vmem:[%s4397_s7] ss:$0 sm:$0xff]  ;;  %s3735_s7 = smov 112   ;;  %vm2868_vm4 = vcmask 195584   ;;  %vm3126_vm5 = vcmask 523264  }
  0x45   :  { %105 = vadd.xlane.f32.xlu0 %v104_v3  ;;  %3537 = vmatpush3.bf16.msra.mxu0 %v3534_v21  ;;  %v3230_v36 = vld [vmem:[%s4412_s26] ss:$0 sm:$0xff]  ;;  %v3530_v47 = vpack.c.bf16 %v241_v44, %v240_v43  ;;  %v434_v3 = vunpack.c.0.s8 %v433_v62 }
  0x46   :  { %3523 = vmatprep.subr.bf16.mxu1 %v3522_v22  ;;  %3539 = vmatprep.subr.bf16.mxu0 %v3538_v25  ;;  %v3235_v54 = vld [vmem:[%s4398_s8] ss:$0 sm:$0xff] }
  0x48   :  { %3525 = vmatpush3.bf16.msra.mxu1 %v3522_v22 }
  0x49   :  { %3541 = vmatpush3.bf16.msra.mxu0 %v3538_v25  ;;  %3527 = vmatprep.subr.bf16.mxu1 %v3526_v28 }
  0x4a   :  { %3407 = vmatprep.subr.mxu0 %v3737_v60 }
  0xce   :  { %v103_v4 = vpop.xlane.xlu0 %102 }
  0xcf   :  { %v108_v5 = vmul.f32 0.03125, %v103_v4  ;;  %v436_v4 = vshrl.u32 %v435_v63, 7 }
  0xd1   :  { %v110_v6 = vsub.f32 %v98_v0, %v108_v5 }
  0xd2   :  { %v106_v7 = vpop.xlane.xlu0 %105 }
  0xd3   :  { %v109_v8 = vmul.f32 0.03125, %v106_v7  ;;  %v112_v9 = vmul.f32 %v110_v6, %v110_v6 }
  0xd5   :  { %v111_v10 = vsub.f32 %v99_v1, %v109_v8  ;;  %v114_v11 = vsel %vm100_vm0, %v112_v9, 0.0  ;;  %v3740_v1 = vmov 1934713408   ;;  %v3981_v8 = vsub.s32 %v434_v3, %v436_v4 }
  0xd6   :  { %115 = vadd.xlane.f32.xlu1 %v114_v11  ;;  %v465_v2 = vunpack.c.l.s4 %v3740_v1 }
  0xd7   :  { %v113_v12 = vmul.f32 %v111_v10, %v111_v10 }
  0xd8   :  { %v466_v7 = vunpack.c.0.s8 %v465_v2 }
  0xd9   :  { %v117_v13 = vsel %vm100_vm0, %v113_v12, 0.0 }
  0xda   :  { %118 = vadd.xlane.f32.xlu1 %v117_v13  ;;  %v3983_v15 = vsub.s32 %v466_v7, %v436_v4 }
 0x163   :  { %v116_v29 = vpop.xlane.xlu1 %115 }
 0x164   :  { %v120_v30 = vmul.f32 0.03125, %v116_v29 }
 0x166   :  { %v122_v31 = vadd.f32 1e-05, %v120_v30 }
 0x167   :  { %v119_v32 = vpop.xlane.xlu1 %118 }
 0x168   :  { %3589 = vrsqrt.f32 %v122_v31  ;;  %v121_v33 = vmul.f32 0.03125, %v119_v32 }
 0x16a   :  { %v123_v34 = vadd.f32 1e-05, %v121_v33 }
 0x16c   :  { %3591 = vrsqrt.f32 %v123_v34 }
 0x172   :  { %v3590_v35 = vpop.eup %3589 }
 0x173   :  { %v126_v37 = vmul.f32 %v3590_v35, %v110_v6 }
 0x175   :  { %v135_v39 = vmul.f32 %v3230_v36, %v126_v37 }
 0x176   :  { %v3592_v40 = vpop.eup %3591 }
 0x177   :  { %v127_v41 = vmul.f32 %v3592_v40, %v111_v10  ;;  %v144_v42 = vadd.f32 %v3231_v38, %v135_v39 }
 0x179   :  { %v136_v45 = vmul.f32 %v3230_v36, %v127_v41  ;;  %3372 = vmatprep.mubr.msk.f32.mxu1 %vm100_vm0, %v144_v42  ;;  %3394 = vmatprep.mubr.msk.f32.mxu0 %vm100_vm0, %v144_v42 }
 0x17b   :  { %v145_v46 = vadd.f32 %v3231_v38, %v136_v45 }
 0x17d   :  { %3373 = vmatmul.mubr.msk.f32.vlgmr.msra.gmra.mrb[0].mxu1 %vm100_vm0, %v145_v46  ;;  %3395 = vmatmul.mubr.msk.f32.vlgmr.msra.gmra.mrb[0].mxu0 %vm100_vm0, %v145_v46 }
 0x17e   :  { %3529 = vmatpush3.bf16.msra.mxu1 %v3526_v28  ;;  %3383 = vmatprep.mubr.msk.f32.mxu1 %vm100_vm0, %v144_v42 }
 0x17f   :  { %3531 = vmatprep.subr.bf16.mxu1 %v3530_v47  ;;  %3409 = vmatprep.mubr.msk.f32.mxu0 %vm3738_vm1, %v3737_v60 }
 0x182   :  { %3533 = vmatpush3.bf16.msra.mxu1 %v3530_v47 }
 0x183   :  { %3397 = vmatprep.subr.mxu1 %v3737_v60 }
 0x185   :  { %3384 = vmatmul.mubr.msk.f32.vlgmr.msra.gmra.mrb[2].mxu1 %vm100_vm0, %v145_v46 }
 0x186   :  { %3399 = vmatprep.mubr.msk.f32.mxu1 %vm3738_vm1, %v3737_v60 }
 0x250   :  { %v3374_v49 = vpop.f32.mrb[0].mxu1  ;;  %v3941_v50 = vpop.f32.mrb[0].mxu0 }
 0x251   :  { %v229_v51 = vpop.f32.mrb[1].mxu1  ;;  %v3943_v52 = vpop.f32.mrb[1].mxu0  ;;  %v3967_v59 = vadd.f32 %v3374_v49, %v3232_v48 }
 0x252   :  { %v3945_v53 = vadd.f32 %v3232_v48, %v229_v51 }
 0x254   :  { %412 = vrot.lane.b32.xlu1 %v3945_v53, %s3734_s20 }
 0x258   :  { %v3385_v55 = vpop.f32.mrb[2].mxu1 }
 0x259   :  { %v315_v56 = vpop.f32.mrb[3].mxu1  ;;  %v3957_v58 = vadd.f32 %v3385_v55, %v3235_v54 }
 0x25a   :  { %v316_v57 = vadd.f32 %v3235_v54, %v315_v56 }
 0x25c   :  { %704 = vrot.lane.b32.xlu0 %v316_v57, %s3734_s20  ;;  %710 = vrot.lane.b32.xlu1 %v316_v57, %s3735_s7 }
 0x260   :  { %418 = vrot.lane.b32.xlu0 %v3945_v53, %s3735_s7  ;;  %716 = vrot.lane.b32.xlu1 %v316_v57, %s3736_s13 }
 0x264   :  { %706 = vrot.lane.b32.xlu0 %v3957_v58, %s3734_s20  ;;  %424 = vrot.lane.b32.xlu1 %v3945_v53, %s3736_s13 }
 0x268   :  { %718 = vrot.lane.b32.xlu0 %v3957_v58, %s3736_s13  ;;  %712 = vrot.lane.b32.xlu1 %v3957_v58, %s3735_s7 }
 0x26c   :  { %420 = vrot.lane.b32.xlu0 %v3967_v59, %s3735_s7  ;;  %414 = vrot.lane.b32.xlu1 %v3967_v59, %s3734_s20 }
 0x270   :  { %426 = vrot.lane.b32.xlu1 %v3967_v59, %s3736_s13 }
 0x2c6   :  { %v413_v0 = vpop.permute.xlu1 %412 }
 0x2ce   :  { %v705_v5 = vpop.permute.xlu0 %704  ;;  %v711_v6 = vpop.permute.xlu1 %710 }
 0x2cf   :  { %v722_v9 = vcombine.low %v316_v57, %v711_v6  ;;  %v723_v10 = vcombine.high %v316_v57, %v711_v6 }
 0x2d1   :  { %v730_v16 = vrot.slane %v722_v9, %v3981_v8  ;;  %v737_v17 = vrot.slane %v723_v10, %v3981_v8 }
 0x2d2   :  { %v419_v11 = vpop.permute.xlu0 %418  ;;  %v717_v12 = vpop.permute.xlu1 %716 }
 0x2d3   :  { %v738_v13 = vcombine.low %v705_v5, %v717_v12  ;;  %v739_v14 = vcombine.high %v705_v5, %v717_v12  ;;  %v430_v20 = vcombine.low %v3945_v53, %v419_v11  ;;  %v431_v21 = vcombine.high %v3945_v53, %v419_v11 }
 0x2d5   :  { %v746_v18 = vrot.slane %v738_v13, %v3981_v8  ;;  %v753_v19 = vrot.slane %v739_v14, %v3981_v8  ;;  %v438_v34 = vrot.slane %v430_v20, %v3981_v8  ;;  %v445_v35 = vrot.slane %v431_v21, %v3981_v8 }
 0x2d6   :  { %v425_v22 = vpop.permute.xlu1 %424  ;;  %v707_v27 = vpop.permute.xlu0 %706 }
 0x2d7   :  { %v754_v23 = vcombine.low %v730_v16, %v746_v18  ;;  %v755_v24 = vcombine.high %v730_v16, %v746_v18  ;;  %v770_v25 = vcombine.low %v737_v17, %v753_v19  ;;  %v771_v26 = vcombine.high %v737_v17, %v753_v19 }
 0x2d8   :  { %v446_v28 = vcombine.low %v413_v0, %v425_v22  ;;  %v447_v29 = vcombine.high %v413_v0, %v425_v22 }
 0x2d9   :  { %v762_v30 = vrot.slane %v754_v23, %v3983_v15  ;;  %v769_v31 = vrot.slane %v755_v24, %v3983_v15  ;;  %v778_v32 = vrot.slane %v770_v25, %v3983_v15  ;;  %v785_v33 = vrot.slane %v771_v26, %v3983_v15 }
 0x2da   :  { %v454_v36 = vrot.slane %v446_v28, %v3981_v8  ;;  %v461_v37 = vrot.slane %v447_v29, %v3981_v8  ;;  %v713_v38 = vpop.permute.xlu1 %712  ;;  %v719_v53 = vpop.permute.xlu0 %718 }
 0x2db   :  { %v858_v39 = vcombine.low %v762_v30, %v769_v31  ;;  %v3245_v40 = vcombine.high %v762_v30, %v769_v31  ;;  %v874_v41 = vcombine.low %v778_v32, %v785_v33  ;;  %v3246_v42 = vcombine.high %v778_v32, %v785_v33 }
 0x2dc   :  { %v462_v43 = vcombine.low %v438_v34, %v454_v36  ;;  %v463_v44 = vcombine.high %v438_v34, %v454_v36  ;;  %v478_v45 = vcombine.low %v445_v35, %v461_v37  ;;  %v479_v46 = vcombine.high %v445_v35, %v461_v37 }
 0x2dd   :  { %v4000_v47 = vrot.slane %v858_v39, %v3981_v8  ;;  %v4003_v48 = vrot.slane %v3245_v40, %v3981_v8  ;;  %v4006_v49 = vrot.slane %v874_v41, %v3981_v8  ;;  %v4009_v51 = vrot.slane %v3246_v42, %v3981_v8 }
 0x2de   :  { %v470_v54 = vrot.slane %v462_v43, %v3983_v15  ;;  %v477_v55 = vrot.slane %v463_v44, %v3983_v15  ;;  %v486_v56 = vrot.slane %v478_v45, %v3983_v15  ;;  %v493_v57 = vrot.slane %v479_v46, %v3983_v15  ;;  %v415_v61 = vpop.permute.xlu1 %414  ;;  %v421_v17 = vpop.permute.xlu0 %420 }
 0x2df   :  { %v890_v62 = vcombine.low %v4000_v47, %v4003_v48  ;;  %v891_v63 = vcombine.high %v4000_v47, %v4003_v48  ;;  %v806_v4 = vcombine.low %v707_v27, %v719_v53  ;;  %v807_v5 = vcombine.high %v707_v27, %v719_v53 }
 0x2e0   :  { %v566_v0 = vcombine.low %v470_v54, %v477_v55  ;;  %v3241_v1 = vcombine.high %v470_v54, %v477_v55  ;;  %v582_v2 = vcombine.low %v486_v56, %v493_v57  ;;  %v3242_v3 = vcombine.high %v486_v56, %v493_v57 }
 0x2e1   :  { %v790_v6 = vcombine.low %v3957_v58, %v713_v38  ;;  %v791_v7 = vcombine.high %v3957_v58, %v713_v38  ;;  %v906_v9 = vcombine.low %v4006_v49, %v4009_v51  ;;  %v907_v10 = vcombine.high %v4006_v49, %v4009_v51 }
 0x2e2   :  { %v4026_v11 = vrot.slane %v566_v0, %v3981_v8  ;;  %v4029_v12 = vrot.slane %v3241_v1, %v3981_v8  ;;  %v814_v13 = vrot.slane %v806_v4, %v3981_v8  ;;  %v821_v14 = vrot.slane %v807_v5, %v3981_v8  ;;  %v427_v18 = vpop.permute.xlu1 %426 }
 0x2e3   :  { %v798_v16 = vrot.slane %v790_v6, %v3981_v8  ;;  %v805_v58 = vrot.slane %v791_v7, %v3981_v8  ;;  %v4036_v19 = vrot.slane %v582_v2, %v3981_v8  ;;  %v4039_v20 = vrot.slane %v3242_v3, %v3981_v8 }
 0x2e4   :  { %v598_v21 = vcombine.low %v4026_v11, %v4029_v12  ;;  %v599_v22 = vcombine.high %v4026_v11, %v4029_v12  ;;  %v498_v27 = vcombine.low %v3967_v59, %v421_v17  ;;  %v499_v28 = vcombine.high %v3967_v59, %v421_v17 }
 0x2e5   :  { %v822_v23 = vcombine.low %v798_v16, %v814_v13  ;;  %v823_v24 = vcombine.high %v798_v16, %v814_v13  ;;  %v838_v25 = vcombine.low %v805_v58, %v821_v14  ;;  %v839_v26 = vcombine.high %v805_v58, %v821_v14 }
 0x2e6   :  { %v514_v29 = vcombine.low %v415_v61, %v427_v18  ;;  %v515_v30 = vcombine.high %v415_v61, %v427_v18  ;;  %v506_v35 = vrot.slane %v498_v27, %v3981_v8  ;;  %v513_v36 = vrot.slane %v499_v28, %v3981_v8 }
 0x2e7   :  { %v830_v31 = vrot.slane %v822_v23, %v3983_v15  ;;  %v837_v32 = vrot.slane %v823_v24, %v3983_v15  ;;  %v846_v33 = vrot.slane %v838_v25, %v3983_v15  ;;  %v853_v34 = vrot.slane %v839_v26, %v3983_v15 }
 0x2e8   :  { %v522_v37 = vrot.slane %v514_v29, %v3981_v8  ;;  %v529_v38 = vrot.slane %v515_v30, %v3981_v8  ;;  %v614_v61 = vcombine.low %v4036_v19, %v4039_v20  ;;  %v615_v0 = vcombine.high %v4036_v19, %v4039_v20 }
 0x2e9   :  { %v926_v59 = vcombine.low %v830_v31, %v837_v32  ;;  %v3247_v39 = vcombine.high %v830_v31, %v837_v32  ;;  %v942_v40 = vcombine.low %v846_v33, %v853_v34  ;;  %v3248_v41 = vcombine.high %v846_v33, %v853_v34 }
 0x2ea   :  { %v530_v42 = vcombine.low %v506_v35, %v522_v37  ;;  %v531_v43 = vcombine.high %v506_v35, %v522_v37  ;;  %v546_v44 = vcombine.low %v513_v36, %v529_v38  ;;  %v547_v45 = vcombine.high %v513_v36, %v529_v38 }
 0x2eb   :  { %v933_v46 = vrot.slane %v926_v59, %v3981_v8  ;;  %v941_v49 = vrot.slane %v3247_v39, %v3981_v8  ;;  %v949_v51 = vrot.slane %v942_v40, %v3981_v8  ;;  %v957_v53 = vrot.slane %v3248_v41, %v3981_v8 }
 0x2ec   :  { %v538_v54 = vrot.slane %v530_v42, %v3983_v15  ;;  %v545_v55 = vrot.slane %v531_v43, %v3983_v15  ;;  %v554_v56 = vrot.slane %v546_v44, %v3983_v15  ;;  %v561_v57 = vrot.slane %v547_v45, %v3983_v15 }
 0x2ed   :  { %v958_v1 = vcombine.low %v933_v46, %v941_v49  ;;  %v974_v2 = vcombine.low %v949_v51, %v957_v53  ;;  %v898_v7 = vrot.slane %v890_v62, %v3983_v15  ;;  %v914_v11 = vrot.slane %v906_v9, %v3983_v15 }
 0x2ee   :  { %v634_v3 = vcombine.low %v538_v54, %v545_v55  ;;  %v3243_v4 = vcombine.high %v538_v54, %v545_v55  ;;  %v650_v5 = vcombine.low %v554_v56, %v561_v57  ;;  %v3244_v6 = vcombine.high %v554_v56, %v561_v57 }
 0x2ef   :  { %v905_v12 = vrot.slane %v891_v63, %v3983_v15  ;;  %v921_v13 = vrot.slane %v907_v10, %v3983_v15  ;;  %v922_v18 = vcombine.low %v898_v7, %v914_v11  ;;  %v606_v62 = vrot.slane %v598_v21, %v3983_v15 }
 0x2f0   :  { %v641_v14 = vrot.slane %v634_v3, %v3981_v8  ;;  %v649_v16 = vrot.slane %v3243_v4, %v3981_v8  ;;  %v657_v58 = vrot.slane %v650_v5, %v3981_v8  ;;  %v665_v17 = vrot.slane %v3244_v6, %v3981_v8 }
 0x2f1   :  { %v924_v19 = vcombine.low %v905_v12, %v921_v13  ;;  %v622_v9 = vrot.slane %v614_v61, %v3983_v15  ;;  %v959_v20 = vcombine.high %v933_v46, %v941_v49  ;;  %v975_v48 = vcombine.high %v949_v51, %v957_v53  ;;  %3398 = vmatpush3.xpose.msk.msra.mxu1 %vm1286_vm2, %v922_v18 }
 0x2f2   :  { %v666_v23 = vcombine.low %v641_v14, %v649_v16  ;;  %v682_v47 = vcombine.low %v657_v58, %v665_v17  ;;  %v613_v10 = vrot.slane %v599_v22, %v3983_v15  ;;  %3402 = vmatprep.subr.mxu1 %v3737_v60  ;;  %v923_v24 = vcombine.high %v898_v7, %v914_v11 }
 0x2f3   :  { %3408 = vmatpush3.xpose.msk.msra.mxu0 %vm1286_vm2, %v924_v19  ;;  %v630_v63 = vcombine.low %v606_v62, %v622_v9  ;;  %v629_v25 = vrot.slane %v615_v0, %v3983_v15  ;;  %v966_v21 = vrot.slane %v958_v1, %v3983_v15  ;;  %v982_v26 = vrot.slane %v974_v2, %v3983_v15 }
 0x2f4   :  { %3417 = vmatprep.subr.mxu0 %v3737_v60  ;;  %v674_v27 = vrot.slane %v666_v23, %v3983_v15  ;;  %v690_v28 = vrot.slane %v682_v47, %v3983_v15  ;;  %v667_v29 = vcombine.high %v641_v14, %v649_v16  ;;  %v683_v30 = vcombine.high %v657_v58, %v665_v17  ;;  %v3238_v16 = vld [vmem:[%s4399_s9] ss:$0 sm:$0xff]  ;;  %s3741_s9 = smov 16  }
 0x2f5   :  { %3400 = vmatmul.mubr.msk.f32.vlgmr.msra.gmra.mrb[4].mxu1 %vm1286_vm2, %v630_v63  ;;  %v632_v22 = vcombine.low %v613_v10, %v629_v25  ;;  %v990_v31 = vcombine.low %v966_v21, %v982_v26  ;;  %v973_v32 = vrot.slane %v959_v20, %v3983_v15  ;;  %v989_v33 = vrot.slane %v975_v48, %v3983_v15 }
 0x2f6   :  { %3403 = vmatpush3.xpose.msk.msra.mxu1 %vm1286_vm2, %v923_v24  ;;  %3404 = vmatprep.mubr.msk.f32.mxu1 %vm3738_vm1, %v3737_v60  ;;  %v631_v34 = vcombine.high %v606_v62, %v622_v9  ;;  %v698_v35 = vcombine.low %v674_v27, %v690_v28  ;;  %v925_v36 = vcombine.high %v905_v12, %v921_v13 }
 0x2f7   :  { %3410 = vmatmul.mubr.msk.f32.vlgmr.msra.gmra.mrb[2].mxu0 %vm1286_vm2, %v632_v22  ;;  %3412 = vmatprep.subr.mxu1 %v3737_v60  ;;  %v681_v37 = vrot.slane %v667_v29, %v3983_v15  ;;  %v697_v38 = vrot.slane %v683_v30, %v3983_v15  ;;  %v992_v59 = vcombine.low %v973_v32, %v989_v33 }
 0x2f8   :  { %3418 = vmatpush3.xpose.msk.msra.mxu0 %vm1286_vm2, %v990_v31  ;;  %3419 = vmatprep.mubr.msk.f32.mxu0 %vm3738_vm1, %v3737_v60  ;;  %v633_v39 = vcombine.high %v613_v10, %v629_v25  ;;  %v991_v40 = vcombine.high %v966_v21, %v982_v26  ;;  %v699_v41 = vcombine.high %v674_v27, %v690_v28 }
 0x2f9   :  { %3405 = vmatmul.mubr.msk.f32.vlgmr.msra.gmra.mrb[6].mxu1 %vm1286_vm2, %v631_v34  ;;  %3427 = vmatprep.subr.mxu0 %v3737_v60  ;;  %v700_v42 = vcombine.low %v681_v37, %v697_v38  ;;  %v993_v43 = vcombine.high %v973_v32, %v989_v33  ;;  %v701_v44 = vcombine.high %v681_v37, %v697_v38 }
 0x2fa   :  { %3413 = vmatpush3.xpose.msk.msra.mxu1 %vm1286_vm2, %v925_v36  ;;  %3414 = vmatprep.mubr.msk.f32.mxu1 %vm3738_vm1, %v3737_v60  ;;  %v402_v58 = vadd.f32 %v3238_v16, %v3943_v52  ;;  %v4155_v19 = vadd.f32 %v3941_v50, %v3238_v16 }
 0x2fb   :  { %3422 = vmatprep.subr.mxu1 %v3737_v60  ;;  %3420 = vmatmul.mubr.msk.f32.vlgmr.msra.gmra.mrb[4].mxu0 %vm1286_vm2, %v698_v35 }
 0x2fc   :  { %3428 = vmatpush3.xpose.msk.msra.mxu0 %vm1286_vm2, %v992_v59  ;;  %3429 = vmatprep.mubr.msk.f32.mxu0 %vm3738_vm1, %v3737_v60 }
 0x2fd   :  { %3415 = vmatmul.mubr.msk.f32.vlgmr.msra.gmra.mrb[8].mxu1 %vm1286_vm2, %v633_v39  ;;  %3437 = vmatprep.subr.mxu0 %v3737_v60 }
 0x2fe   :  { %3423 = vmatpush3.xpose.msk.msra.mxu1 %vm1286_vm2, %v991_v40  ;;  %3424 = vmatprep.mubr.msk.f32.mxu1 %vm3738_vm1, %v3737_v60 }
 0x2ff   :  { %3432 = vmatprep.subr.mxu1 %v3737_v60  ;;  %3430 = vmatmul.mubr.msk.f32.vlgmr.msra.gmra.mrb[6].mxu0 %vm1286_vm2, %v700_v42 }
 0x300   :  { %3439 = vmatprep.mubr.msk.f32.mxu0 %vm3738_vm1, %v3737_v60 }
 0x301   :  { %3425 = vmatmul.mubr.msk.f32.vlgmr.msra.gmra.mrb[10].mxu1 %vm1286_vm2, %v699_v41 }
 0x302   :  { %3433 = vmatpush3.xpose.msk.msra.mxu1 %vm1286_vm2, %v993_v43  ;;  %3434 = vmatprep.mubr.msk.f32.mxu1 %vm3738_vm1, %v3737_v60 }
 0x303   :  { %3442 = vmatprep.subr.mxu1 %v3737_v60 }
 0x305   :  { %3435 = vmatmul.mubr.msk.f32.vlgmr.msra.gmra.mrb[12].mxu1 %vm1286_vm2, %v701_v44 }
 0x306   :  { %3444 = vmatprep.mubr.msk.f32.mxu1 %vm3738_vm1, %v3737_v60 }
 0x3c8   :  { %v1359_v45 = vpop.f32.mrb[4].mxu1 }
 0x3c9   :  { %v3401_v46 = vpop.f32.mrb[5].mxu1  ;;  %v1895_v49 = vsel %vm1286_vm2, %v1359_v45, -inf }
 0x3ca   :  { %v1511_v51 = vpop.f32.mrb[2].mxu0  ;;  %1896 = vmax.xlane.f32.xlu0 %v1895_v49 }
 0x3cb   :  { %v3411_v53 = vpop.f32.mrb[3].mxu0  ;;  %v1901_v56 = vsel %vm1286_vm2, %v1511_v51, -inf }
 0x3cc   :  { %v1435_v54 = vpop.f32.mrb[6].mxu1 }
 0x3cd   :  { %v3406_v55 = vpop.f32.mrb[7].mxu1  ;;  %v1898_v57 = vsel %vm1286_vm2, %v1435_v54, -inf }
 0x3ce   :  { %1902 = vmax.xlane.f32.xlu0 %v1901_v56  ;;  %1899 = vmax.xlane.f32.xlu1 %v1898_v57  ;;  %v1663_v61 = vpop.f32.mrb[4].mxu0 }
 0x3cf   :  { %v3421_v0 = vpop.f32.mrb[5].mxu0  ;;  %v1907_v1 = vsel %vm1286_vm2, %v1663_v61, -inf }
 0x3d0   :  { %v1587_v2 = vpop.f32.mrb[8].mxu1 }
 0x3d1   :  { %v3416_v3 = vpop.f32.mrb[9].mxu1  ;;  %v1904_v11 = vsel %vm1286_vm2, %v1587_v2, -inf }
 0x3d2   :  { %1908 = vmax.xlane.f32.xlu0 %v1907_v1  ;;  %v1815_v4 = vpop.f32.mrb[6].mxu0 }
 0x3d3   :  { %v3431_v5 = vpop.f32.mrb[7].mxu0  ;;  %v1913_v14 = vsel %vm1286_vm2, %v1815_v4, -inf }
 0x3d4   :  { %v4137_v6 = vpop.f32.mrb[10].mxu1 }
 0x3d5   :  { %v3426_v7 = vpop.f32.mrb[11].mxu1  ;;  %v1910_v17 = vsel %vm1286_vm2, %v4137_v6, -inf }
 0x3d6   :  { %1905 = vmax.xlane.f32.xlu0 %v1904_v11 }
 0x3d8   :  { %v4140_v12 = vpop.f32.mrb[12].mxu1 }
 0x3d9   :  { %v3436_v13 = vpop.f32.mrb[13].mxu1  ;;  %v1916_v18 = vsel %vm1286_vm2, %v4140_v12, -inf }
 0x3da   :  { %1914 = vmax.xlane.f32.xlu0 %v1913_v14 }
 0x3df   :  { %1002 = vrot.lane.b32.xlu1 %v402_v58, %s3735_s7 }
 0x3e3   :  { %1008 = vrot.lane.b32.xlu1 %v402_v58, %s3736_s13 }
 0x3f0   :  { %996 = vrot.lane.b32.xlu0 %v402_v58, %s3734_s20 }
 0x407   :  { %1911 = vmax.xlane.f32.xlu1 %v1910_v17 }
 0x40b   :  { %1917 = vmax.xlane.f32.xlu1 %v1916_v18 }
 0x41c   :  { %998 = vrot.lane.b32.xlu1 %v4155_v19, %s3734_s20 }
 0x457   :  { %v1897_v52 = vpop.xlane.xlu0 %1896 }
 0x458   :  { %v1919_v62 = vsub.f32 %v1359_v45, %v1897_v52 }
 0x45a   :  { %v1927_v9 = vmul.f32 1.442695, %v1919_v62 }
 0x45b   :  { %v1903_v20 = vpop.xlane.xlu0 %1902  ;;  %v1900_v23 = vpop.xlane.xlu1 %1899 }
 0x45c   :  { %3593 = vpow2.f32 %v1927_v9  ;;  %v1921_v47 = vsub.f32 %v1511_v51, %v1903_v20  ;;  %v1920_v48 = vsub.f32 %v1435_v54, %v1900_v23 }
 0x45e   :  { %v1931_v63 = vmul.f32 1.442695, %v1921_v47  ;;  %v1929_v10 = vmul.f32 1.442695, %v1920_v48 }
 0x45f   :  { %v1909_v24 = vpop.xlane.xlu0 %1908  ;;  %v1003_v27 = vpop.permute.xlu1 %1002 }
 0x460   :  { %3595 = vpow2.f32 %v1931_v63  ;;  %v1923_v25 = vsub.f32 %v1663_v61, %v1909_v24  ;;  %v1014_v33 = vcombine.low %v402_v58, %v1003_v27  ;;  %v1015_v34 = vcombine.high %v402_v58, %v1003_v27 }
 0x461   :  { %3597 = vpow2.f32 %v1929_v10 }
 0x462   :  { %v1935_v21 = vmul.f32 1.442695, %v1923_v25  ;;  %v1022_v43 = vrot.slane %v1014_v33, %v3981_v8  ;;  %v1029_v44 = vrot.slane %v1015_v34, %v3981_v8 }
 0x463   :  { %v1906_v50 = vpop.xlane.xlu0 %1905  ;;  %v1009_v37 = vpop.permute.xlu1 %1008 }
 0x464   :  { %3599 = vpow2.f32 %v1935_v21  ;;  %v1922_v26 = vsub.f32 %v1587_v2, %v1906_v50 }
 0x466   :  { %v4159_v28 = vpop.eup %3593  ;;  %v1933_v29 = vmul.f32 1.442695, %v1922_v26 }
 0x467   :  { %v1943_v30 = vsel %vm1286_vm2, %v4159_v28, 0.0  ;;  %v1915_v22 = vpop.xlane.xlu0 %1914 }
 0x468   :  { %3601 = vpow2.f32 %v1933_v29  ;;  %1944 = vadd.xlane.f32.xlu0 %v1943_v30  ;;  %v1925_v31 = vsub.f32 %v1815_v4, %v1915_v22 }
 0x46a   :  { %v4163_v32 = vpop.eup %3595  ;;  %v1939_v35 = vmul.f32 1.442695, %v1925_v31 }
 0x46b   :  { %v4165_v36 = vpop.eup %3597  ;;  %v1949_v38 = vsel %vm1286_vm2, %v4163_v32, 0.0  ;;  %v997_v59 = vpop.permute.xlu0 %996 }
 0x46c   :  { %3603 = vpow2.f32 %v1939_v35  ;;  %1950 = vadd.xlane.f32.xlu0 %v1949_v38  ;;  %v1946_v39 = vsel %vm1286_vm2, %v4165_v36, 0.0  ;;  %v1030_v40 = vcombine.low %v997_v59, %v1009_v37  ;;  %v1031_v41 = vcombine.high %v997_v59, %v1009_v37 }
 0x46d   :  { %1947 = vadd.xlane.f32.xlu1 %v1946_v39 }
 0x46e   :  { %v4171_v42 = vpop.eup %3599  ;;  %v1038_v45 = vrot.slane %v1030_v40, %v3981_v8  ;;  %v1045_v46 = vrot.slane %v1031_v41, %v3981_v8 }
 0x46f   :  { %v1955_v49 = vsel %vm1286_vm2, %v4171_v42, 0.0 }
 0x470   :  { %v1046_v51 = vcombine.low %v1022_v43, %v1038_v45  ;;  %v1047_v53 = vcombine.high %v1022_v43, %v1038_v45  ;;  %v1062_v54 = vcombine.low %v1029_v44, %v1045_v46  ;;  %v1063_v55 = vcombine.high %v1029_v44, %v1045_v46 }
 0x471   :  { %1956 = vadd.xlane.f32.xlu1 %v1955_v49 }
 0x472   :  { %v4179_v56 = vpop.eup %3601  ;;  %v1054_v57 = vrot.slane %v1046_v51, %v3983_v15  ;;  %v1061_v61 = vrot.slane %v1047_v53, %v3983_v15  ;;  %v1070_v0 = vrot.slane %v1062_v54, %v3983_v15  ;;  %v1077_v1 = vrot.slane %v1063_v55, %v3983_v15 }
 0x473   :  { %v1952_v2 = vsel %vm1286_vm2, %v4179_v56, 0.0 }
 0x474   :  { %v1150_v3 = vcombine.low %v1054_v57, %v1061_v61  ;;  %v3249_v4 = vcombine.high %v1054_v57, %v1061_v61  ;;  %v1166_v5 = vcombine.low %v1070_v0, %v1077_v1  ;;  %v3250_v7 = vcombine.high %v1070_v0, %v1077_v1 }
 0x475   :  { %1953 = vadd.xlane.f32.xlu1 %v1952_v2 }
 0x476   :  { %v4187_v11 = vpop.eup %3603  ;;  %v1157_v13 = vrot.slane %v1150_v3, %v3981_v8  ;;  %v1165_v14 = vrot.slane %v3249_v4, %v3981_v8  ;;  %v1173_v16 = vrot.slane %v1166_v5, %v3981_v8  ;;  %v1181_v58 = vrot.slane %v3250_v7, %v3981_v8 }
 0x477   :  { %v1961_v17 = vsel %vm1286_vm2, %v4187_v11, 0.0 }
 0x478   :  { %1962 = vadd.xlane.f32.xlu0 %v1961_v17  ;;  %v1182_v18 = vcombine.low %v1157_v13, %v1165_v14  ;;  %v1198_v52 = vcombine.low %v1173_v16, %v1181_v58  ;;  %v1183_v62 = vcombine.high %v1157_v13, %v1165_v14  ;;  %v1199_v9 = vcombine.high %v1173_v16, %v1181_v58 }
 0x47a   :  { %v1190_v20 = vrot.slane %v1182_v18, %v3983_v15  ;;  %v1206_v23 = vrot.slane %v1198_v52, %v3983_v15  ;;  %v1197_v47 = vrot.slane %v1183_v62, %v3983_v15  ;;  %v1213_v48 = vrot.slane %v1199_v9, %v3983_v15 }
 0x47c   :  { %v1214_v63 = vcombine.low %v1190_v20, %v1206_v23  ;;  %v1215_v10 = vcombine.high %v1190_v20, %v1206_v23  ;;  %v1216_v24 = vcombine.low %v1197_v47, %v1213_v48  ;;  %v1217_v25 = vcombine.high %v1197_v47, %v1213_v48 }
 0x47e   :  { %3438 = vmatpush3.msra.mxu0 %v1214_v63  ;;  %3443 = vmatpush3.msra.mxu1 %v1215_v10 }
 0x47f   :  { %3447 = vmatprep.subr.mxu0 %v3737_v60  ;;  %3452 = vmatprep.subr.mxu1 %v3737_v60 }
 0x486   :  { %1010 = vrot.lane.b32.xlu1 %v4155_v19, %s3736_s13 }
 0x494   :  { %v1912_v21 = vpop.xlane.xlu1 %1911 }
 0x495   :  { %v1924_v50 = vsub.f32 %v4137_v6, %v1912_v21 }
 0x497   :  { %v1937_v26 = vmul.f32 1.442695, %v1924_v50 }
 0x498   :  { %v1918_v27 = vpop.xlane.xlu1 %1917 }
 0x499   :  { %3605 = vpow2.f32 %v1937_v26  ;;  %v1926_v29 = vsub.f32 %v4140_v12, %v1918_v27 }
 0x49b   :  { %v1941_v30 = vmul.f32 1.442695, %v1926_v29 }
 0x49c   :  { %v999_v35 = vpop.permute.xlu1 %998 }
 0x49d   :  { %3607 = vpow2.f32 %v1941_v30 }
 0x4a3   :  { %v4205_v22 = vpop.eup %3605 }
 0x4a4   :  { %v1958_v31 = vsel %vm1286_vm2, %v4205_v22, 0.0 }
 0x4a5   :  { %1959 = vadd.xlane.f32.xlu0 %v1958_v31 }
 0x4a7   :  { %v4209_v33 = vpop.eup %3607 }
 0x4a8   :  { %v1964_v34 = vsel %vm1286_vm2, %v4209_v33, 0.0 }
 0x4a9   :  { %1965 = vadd.xlane.f32.xlu0 %v1964_v34 }
 0x4bf   :  { %1004 = vrot.lane.b32.xlu0 %v4155_v19, %s3735_s7 }
 0x4f5   :  { %v1945_v6 = vpop.xlane.xlu0 %1944 }
 0x4f6   :  { %3609 = vrcp.f32 %v1945_v6 }
 0x4f9   :  { %v1951_v12 = vpop.xlane.xlu0 %1950 }
 0x4fa   :  { %3611 = vrcp.f32 %v1951_v12  ;;  %v1948_v37 = vpop.xlane.xlu1 %1947 }
 0x4fb   :  { %3613 = vrcp.f32 %v1948_v37 }
 0x4fe   :  { %v1957_v38 = vpop.xlane.xlu1 %1956 }
 0x500   :  { %v3610_v59 = vpop.eup %3609 }
 0x501   :  { %v1968_v39 = vmul.f32 %v3610_v59, %v4159_v28 }
 0x502   :  { %v1954_v40 = vpop.xlane.xlu1 %1953 }
 0x503   :  { %3440 = vmatmul.mubr.msk.f32.vlgmr.msra.gmra.mrb[8].mxu0 %vm1286_vm2, %v1968_v39  ;;  %3615 = vrcp.f32 %v1954_v40 }
 0x504   :  { %v3612_v41 = vpop.eup %3611  ;;  %3448 = vmatpush3.msra.mxu0 %v1216_v24  ;;  %3449 = vmatprep.mubr.msk.f32.mxu0 %vm3738_vm1, %v3737_v60  ;;  %3617 = vrcp.f32 %v1957_v38 }
 0x505   :  { %v3614_v43 = vpop.eup %3613  ;;  %v1972_v44 = vmul.f32 %v3612_v41, %v4163_v32  ;;  %3457 = vmatprep.subr.mxu0 %v3737_v60 }
 0x506   :  { %v1970_v45 = vmul.f32 %v3614_v43, %v4165_v36  ;;  %v1963_v36 = vpop.xlane.xlu0 %1962  ;;  %v1011_v49 = vpop.permute.xlu1 %1010 }
 0x507   :  { %3450 = vmatmul.mubr.msk.f32.vlgmr.msra.gmra.mrb[10].mxu0 %vm1286_vm2, %v1972_v44  ;;  %v1098_v53 = vcombine.low %v999_v35, %v1011_v49  ;;  %v1099_v54 = vcombine.high %v999_v35, %v1011_v49 }
 0x508   :  { %3445 = vmatmul.mubr.msk.f32.vlgmr.msra.gmra.mrb[14].mxu1 %vm1286_vm2, %v1970_v45  ;;  %3459 = vmatprep.mubr.msk.f32.mxu0 %vm3738_vm1, %v3737_v60 }
 0x509   :  { %3453 = vmatpush3.msra.mxu1 %v1217_v25  ;;  %3454 = vmatprep.mubr.msk.f32.mxu1 %vm3738_vm1, %v3737_v60  ;;  %v1106_v0 = vrot.slane %v1098_v53, %v3981_v8 }
 0x50a   :  { %3462 = vmatprep.subr.mxu1 %v3737_v60 }
 0x50d   :  { %v3616_v28 = vpop.eup %3615 }
 0x50e   :  { %v1974_v32 = vmul.f32 %v3616_v28, %v4179_v56  ;;  %v1113_v56 = vrot.slane %v1099_v54, %v3981_v8  ;;  %v3618_v47 = vpop.eup %3617 }
 0x50f   :  { %v1976_v6 = vmul.f32 %v3618_v47, %v4171_v42 }
 0x510   :  { %3455 = vmatmul.mubr.msk.f32.vlgmr.msra.gmra.mrb[16].mxu1 %vm1286_vm2, %v1974_v32 }
 0x511   :  { %3464 = vmatprep.mubr.msk.f32.mxu1 %vm3738_vm1, %v3737_v60 }
 0x532   :  { %v1960_v46 = vpop.xlane.xlu0 %1959 }
 0x533   :  { %3619 = vrcp.f32 %v1960_v46 }
 0x534   :  { %3621 = vrcp.f32 %v1963_v36 }
 0x536   :  { %v1966_v51 = vpop.xlane.xlu0 %1965 }
 0x537   :  { %3623 = vrcp.f32 %v1966_v51 }
 0x53a   :  { %v1005_v55 = vpop.permute.xlu0 %1004 }
 0x53b   :  { %v1082_v57 = vcombine.low %v4155_v19, %v1005_v55  ;;  %v1083_v61 = vcombine.high %v4155_v19, %v1005_v55 }
 0x53d   :  { %v1090_v1 = vrot.slane %v1082_v57, %v3981_v8  ;;  %v1097_v2 = vrot.slane %v1083_v61, %v3981_v8  ;;  %v3620_v25 = vpop.eup %3619 }
 0x53e   :  { %v3622_v26 = vpop.eup %3621  ;;  %v1978_v35 = vmul.f32 %v3620_v25, %v4205_v22 }
 0x53f   :  { %v1114_v3 = vcombine.low %v1090_v1, %v1106_v0  ;;  %v1115_v4 = vcombine.high %v1090_v1, %v1106_v0  ;;  %v1130_v5 = vcombine.low %v1097_v2, %v1113_v56  ;;  %v1131_v7 = vcombine.high %v1097_v2, %v1113_v56 }
 0x540   :  { %v1980_v38 = vmul.f32 %v3622_v26, %v4187_v11 }
 0x541   :  { %v1122_v13 = vrot.slane %v1114_v3, %v3983_v15  ;;  %v1129_v14 = vrot.slane %v1115_v4, %v3983_v15  ;;  %v1138_v19 = vrot.slane %v1130_v5, %v3983_v15  ;;  %v1145_v16 = vrot.slane %v1131_v7, %v3983_v15  ;;  %v3624_v34 = vpop.eup %3623 }
 0x542   :  { %v1982_v59 = vmul.f32 %v3624_v34, %v4209_v33 }
 0x543   :  { %v1218_v58 = vcombine.low %v1122_v13, %v1129_v14  ;;  %v3251_v17 = vcombine.high %v1122_v13, %v1129_v14  ;;  %v1234_v18 = vcombine.low %v1138_v19, %v1145_v16  ;;  %v3252_v52 = vcombine.high %v1138_v19, %v1145_v16 }
 0x545   :  { %v1225_v62 = vrot.slane %v1218_v58, %v3981_v8  ;;  %v1233_v9 = vrot.slane %v3251_v17, %v3981_v8  ;;  %v1241_v20 = vrot.slane %v1234_v18, %v3981_v8  ;;  %v1249_v23 = vrot.slane %v3252_v52, %v3981_v8 }
 0x547   :  { %v1250_v48 = vcombine.low %v1225_v62, %v1233_v9  ;;  %v1266_v63 = vcombine.low %v1241_v20, %v1249_v23  ;;  %v1251_v10 = vcombine.high %v1225_v62, %v1233_v9  ;;  %v1267_v24 = vcombine.high %v1241_v20, %v1249_v23 }
 0x549   :  { %v1258_v21 = vrot.slane %v1250_v48, %v3983_v15  ;;  %v1274_v50 = vrot.slane %v1266_v63, %v3983_v15  ;;  %v1265_v27 = vrot.slane %v1251_v10, %v3983_v15  ;;  %v1281_v29 = vrot.slane %v1267_v24, %v3983_v15 }
 0x54b   :  { %v1282_v30 = vcombine.low %v1258_v21, %v1274_v50  ;;  %v1283_v31 = vcombine.high %v1258_v21, %v1274_v50  ;;  %v1284_v12 = vcombine.low %v1265_v27, %v1281_v29  ;;  %v1285_v37 = vcombine.high %v1265_v27, %v1281_v29 }
 0x54d   :  { %3458 = vmatpush3.msra.mxu0 %v1282_v30  ;;  %3463 = vmatpush3.msra.mxu1 %v1283_v31 }
 0x54e   :  { %3460 = vmatmul.mubr.msk.f32.vlgmr.msra.gmra.mrb[12].mxu0 %vm1286_vm2, %v1976_v6  ;;  %3465 = vmatmul.mubr.msk.f32.vlgmr.msra.gmra.mrb[18].mxu1 %vm1286_vm2, %v1978_v35 }
 0x54f   :  { %3467 = vmatprep.subr.mxu0 %v3737_v60  ;;  %3472 = vmatprep.subr.mxu1 %v3737_v60 }
 0x550   :  { %3468 = vmatpush3.msra.mxu0 %v1284_v12  ;;  %3473 = vmatpush3.msra.mxu1 %v1285_v37 }
 0x551   :  { %3469 = vmatprep.mubr.msk.f32.mxu0 %vm3738_vm1, %v3737_v60  ;;  %3474 = vmatprep.mubr.msk.f32.mxu1 %vm3738_vm1, %v3737_v60 }
 0x552   :  { %3470 = vmatmul.mubr.msk.f32.vlgmr.msra.gmra.mrb[14].mxu0 %vm1286_vm2, %v1980_v38  ;;  %3475 = vmatmul.mubr.msk.f32.vlgmr.msra.gmra.mrb[20].mxu1 %vm1286_vm2, %v1982_v59 }
 0x5d6   :  { %v2052_v42 = vpop.f32.mrb[8].mxu0 }
 0x5d7   :  { %v3441_v22 = vpop.f32.mrb[9].mxu0 }
 0x5da   :  { %v2198_v39 = vpop.f32.mrb[10].mxu0 }
 0x5db   :  { %v2125_v40 = vpop.f32.mrb[14].mxu1  ;;  %v2567_v41 = vcombine.low %v2052_v42, %v2198_v39  ;;  %v2568_v11 = vcombine.high %v2052_v42, %v2198_v39  ;;  %v3451_v43 = vpop.f32.mrb[11].mxu0  ;;  %v2871_v39 = vld [vmem:[#allocation5] sm:$0xff] }
 0x5dc   :  { %v3446_v33 = vpop.f32.mrb[15].mxu1 }
 0x5dd   :  { %v2575_v36 = vrot.slane %v2567_v41, %v3981_v8  ;;  %v2582_v60 = vrot.slane %v2568_v11, %v3981_v8 }
 0x5e3   :  { %v2271_v44 = vpop.f32.mrb[16].mxu1 }
 0x5e4   :  { %v2583_v45 = vcombine.low %v2125_v40, %v2271_v44  ;;  %v2584_v28 = vcombine.high %v2125_v40, %v2271_v44  ;;  %v3456_v32 = vpop.f32.mrb[17].mxu1  ;;  %v2872_v40 = vld [vmem:[#allocation5 + $0x8] sm:$0xff] }
 0x5e5   :  { %v3542_v44 = vpack.c.bf16 %v2872_v40, %v2871_v39  ;;  %v3010_v39 = vld [vmem:[#allocation7 + $0x8] sm:$0xff] }
 0x5e6   :  { %v2591_v46 = vrot.slane %v2583_v45, %v3981_v8  ;;  %v2598_v49 = vrot.slane %v2584_v28, %v3981_v8 }
 0x5e7   :  { %3543 = vmatprep.subr.bf16.mxu0 %v3542_v44 }
 0x5e8   :  { %v2599_v51 = vcombine.low %v2575_v36, %v2591_v46  ;;  %v2600_v53 = vcombine.high %v2575_v36, %v2591_v46  ;;  %v2615_v54 = vcombine.low %v2582_v60, %v2598_v49  ;;  %v2616_v55 = vcombine.high %v2582_v60, %v2598_v49  ;;  %v2873_v60 = vld [vmem:[#allocation5 + $0x10] sm:$0xff]  ;;  %v2874_v46 = vld [vmem:[#allocation5 + $0x18] sm:$0xff]  ;;  %3545 = vmatpush3.bf16.msra.mxu0 %v3542_v44 }
 0x5ea   :  { %v2607_v57 = vrot.slane %v2599_v51, %v3983_v15  ;;  %v2614_v61 = vrot.slane %v2600_v53, %v3983_v15  ;;  %v2623_v0 = vrot.slane %v2615_v54, %v3983_v15  ;;  %v2630_v56 = vrot.slane %v2616_v55, %v3983_v15 }
 0x5eb   :  { %v3546_v55 = vpack.c.bf16 %v2874_v46, %v2873_v60  ;;  %v3284_v46 = vld [vmem:[%s4401_s11] ss:$0 sm:$0xff] }
 0x5ec   :  { %v2703_v1 = vcombine.low %v2607_v57, %v2614_v61  ;;  %v3277_v2 = vcombine.high %v2607_v57, %v2614_v61  ;;  %v2719_v3 = vcombine.low %v2623_v0, %v2630_v56  ;;  %v3278_v4 = vcombine.high %v2623_v0, %v2630_v56 }
 0x5ed   :  { %3547 = vmatprep.subr.bf16.mxu0 %v3546_v55 }
 0x5ee   :  { %v2710_v5 = vrot.slane %v2703_v1, %v3981_v8  ;;  %v2718_v7 = vrot.slane %v3277_v2, %v3981_v8  ;;  %v2726_v13 = vrot.slane %v2719_v3, %v3981_v8  ;;  %v2734_v14 = vrot.slane %v3278_v4, %v3981_v8  ;;  %3549 = vmatpush3.bf16.msra.mxu0 %v3546_v55 }
 0x5f0   :  { %v2736_v19 = vcombine.high %v2710_v5, %v2718_v7  ;;  %v2752_v16 = vcombine.high %v2726_v13, %v2734_v14  ;;  %v2735_v58 = vcombine.low %v2710_v5, %v2718_v7  ;;  %v2751_v17 = vcombine.low %v2726_v13, %v2734_v14 }
 0x5f2   :  { %v2750_v18 = vrot.slane %v2736_v19, %v3983_v15  ;;  %v2766_v52 = vrot.slane %v2752_v16, %v3983_v15  ;;  %v4280_v62 = vrot.slane %v2735_v58, %v3983_v15  ;;  %v4283_v9 = vrot.slane %v2751_v17, %v3983_v15 }
 0x5f4   :  { %v2769_v20 = vcombine.low %v2750_v18, %v2766_v52  ;;  %v2768_v23 = vcombine.high %v4280_v62, %v4283_v9  ;;  %v2767_v47 = vcombine.low %v4280_v62, %v4283_v9  ;;  %v2770_v48 = vcombine.high %v2750_v18, %v2766_v52  ;;  %v3281_v62 = vld [vmem:[%s4400_s10] ss:$0 sm:$0xff] }
 0x5f6   :  { %2849 = vrot.lane.b32.xlu0 %v2769_v20, %s3741_s9  ;;  %2841 = vrot.lane.b32.xlu1 %v2768_v23, %s3732_s22 }
 0x5fa   :  { %2857 = vrot.lane.b32.xlu0 %v2770_v48, %s3742_s3 }
 0x621   :  { %v2344_v63 = vpop.f32.mrb[12].mxu0  ;;  %v2417_v10 = vpop.f32.mrb[18].mxu1 }
 0x622   :  { %v3461_v24 = vpop.f32.mrb[13].mxu0  ;;  %v3466_v25 = vpop.f32.mrb[19].mxu1 }
 0x623   :  { %v3633_v25 = vld [vmem:[#allocation2 + $0x8] sm:$0xff] }
 0x625   :  { %v2490_v21 = vpop.f32.mrb[14].mxu0  ;;  %v2563_v50 = vpop.f32.mrb[20].mxu1 }
 0x626   :  { %v2635_v26 = vcombine.low %v2344_v63, %v2490_v21  ;;  %v2636_v27 = vcombine.high %v2344_v63, %v2490_v21  ;;  %v2651_v29 = vcombine.low %v2417_v10, %v2563_v50  ;;  %v2652_v30 = vcombine.high %v2417_v10, %v2563_v50  ;;  %v3471_v31 = vpop.f32.mrb[15].mxu0  ;;  %v3476_v34 = vpop.f32.mrb[21].mxu1  ;;  %v3634_v50 = vld [vmem:[#allocation2] sm:$0xff] }
 0x628   :  { %v2643_v6 = vrot.slane %v2635_v26, %v3981_v8  ;;  %v2650_v35 = vrot.slane %v2636_v27, %v3981_v8  ;;  %v2659_v12 = vrot.slane %v2651_v29, %v3981_v8  ;;  %v2666_v37 = vrot.slane %v2652_v30, %v3981_v8 }
 0x62a   :  { %v2667_v38 = vcombine.low %v2643_v6, %v2659_v12  ;;  %v2668_v59 = vcombine.high %v2643_v6, %v2659_v12  ;;  %v2683_v42 = vcombine.low %v2650_v35, %v2666_v37  ;;  %v2684_v22 = vcombine.high %v2650_v35, %v2666_v37 }
 0x62c   :  { %v2675_v41 = vrot.slane %v2667_v38, %v3983_v15  ;;  %v2682_v11 = vrot.slane %v2668_v59, %v3983_v15  ;;  %v2691_v43 = vrot.slane %v2683_v42, %v3983_v15  ;;  %v2698_v33 = vrot.slane %v2684_v22, %v3983_v15  ;;  %v3009_v22 = vld [vmem:[#allocation7] sm:$0xff] }
 0x62d   :  { %v3550_v40 = vpack.c.bf16 %v3010_v39, %v3009_v22 }
 0x62e   :  { %v2771_v45 = vcombine.low %v2675_v41, %v2682_v11  ;;  %v3279_v28 = vcombine.high %v2675_v41, %v2682_v11  ;;  %v2787_v32 = vcombine.low %v2691_v43, %v2698_v33  ;;  %v3280_v36 = vcombine.high %v2691_v43, %v2698_v33  ;;  %v3011_v41 = vld [vmem:[#allocation7 + $0x10] sm:$0xff]  ;;  %v3012_v11 = vld [vmem:[#allocation7 + $0x18] sm:$0xff] }
 0x62f   :  { %v3554_v43 = vpack.c.bf16 %v3012_v11, %v3011_v41  ;;  %3551 = vmatprep.subr.bf16.mxu1 %v3550_v40 }
 0x630   :  { %v2778_v49 = vrot.slane %v2771_v45, %v3981_v8  ;;  %v2786_v51 = vrot.slane %v3279_v28, %v3981_v8  ;;  %v2794_v53 = vrot.slane %v2787_v32, %v3981_v8  ;;  %v2802_v54 = vrot.slane %v3280_v36, %v3981_v8  ;;  %3553 = vmatpush3.bf16.msra.mxu1 %v3550_v40 }
 0x631   :  { %3555 = vmatprep.subr.bf16.mxu1 %v3554_v43 }
 0x632   :  { %v2803_v57 = vcombine.low %v2778_v49, %v2786_v51  ;;  %v2819_v61 = vcombine.low %v2794_v53, %v2802_v54  ;;  %v2804_v0 = vcombine.high %v2778_v49, %v2786_v51  ;;  %v2820_v56 = vcombine.high %v2794_v53, %v2802_v54  ;;  %v3285_v51 = vld [vmem:[%s4402_s12] ss:$0 sm:$0xff] }
 0x634   :  { %v2811_v1 = vrot.slane %v2803_v57, %v3983_v15  ;;  %v2827_v2 = vrot.slane %v2819_v61, %v3983_v15  ;;  %v2818_v3 = vrot.slane %v2804_v0, %v3983_v15  ;;  %v2834_v4 = vrot.slane %v2820_v56, %v3983_v15  ;;  %3557 = vmatpush3.bf16.msra.mxu1 %v3554_v43  ;;  %v3111_v56 = vld [vmem:[%s4405_s15] sm:$0xff] }
 0x636   :  { %v2836_v5 = vcombine.high %v2811_v1, %v2827_v2  ;;  %v2835_v7 = vcombine.low %v2811_v1, %v2827_v2  ;;  %v2837_v13 = vcombine.low %v2818_v3, %v2834_v4  ;;  %v2838_v8 = vcombine.high %v2818_v3, %v2834_v4  ;;  %v3112_v1 = vld [vmem:[%s4405_s15 + $0x8] sm:$0xff]  ;;  %v3113_v3 = vld [vmem:[%s4405_s15 + $0x10] sm:$0xff]  ;;  %v3114_v4 = vld [vmem:[%s4405_s15 + $0x18] sm:$0xff] }
 0x637   :  { %v3558_v2 = vpack.c.bf16 %v3112_v1, %v3111_v56 }
 0x638   :  { %2843 = vrot.lane.b32.xlu1 %v2836_v5, %s3732_s22  ;;  %v3562_v5 = vpack.c.bf16 %v3114_v4, %v3113_v3 }
 0x639   :  { %3559 = vmatprep.subr.bf16.mxu0 %v3558_v2 }
 0x63c   :  { %2851 = vrot.lane.b32.xlu1 %v2837_v13, %s3741_s9  ;;  %v3116_v13 = vld [vmem:[%s4405_s15 + $0x28] sm:$0xff] }
 0x640   :  { %2859 = vrot.lane.b32.xlu1 %v2838_v8, %s3742_s3  ;;  %s3743_s3 = smov [#allocation8]  }
 0x641   :  { %s3217_s25 = sshll.u32 %s3743_s3, 4  ;;  %s3218_s25 = int_to_ptr.vmem [resolvable:$true] %s3217_s25 }
 0x642   :  { %s3701_s23 = scalar_lea.vmem %s3218_s25, 256  ;;  %p3706_p11 = scmp.lt.s32.totalorder %s3218_s25, %s3218_s25 }
 0x643   :  { %p3702_p10 = scmp.ne.s32.totalorder %s3218_s25, %s3701_s23  ;;  %p3707_p12 = scmp.lt.s32.totalorder %s3701_s23, %s3701_s23 }
 0x645   :  { %p3708_p13 = por %p3707_p12, %p3706_p11 }
 0x647   :  { %p3709_p0 = pnand %p3708_p13, %p3702_p10 }
 0x668   :  { %v2850_v14 = vpop.permute.xlu0 %2849  ;;  %v2842_v19 = vpop.permute.xlu1 %2841 }
 0x669   :  { %v2863_v16 = vsel %vm1286_vm2, %v2767_v47, %v2842_v19  ;;  %v3118_v19 = vld [vmem:[%s4405_s15 + $0x38] sm:$0xff] }
 0x66a   :  { %v2866_v58 = vsel %vm2865_vm3, %v2863_v16, %v2850_v14  ;;  %v3117_v14 = vld [vmem:[%s4405_s15 + $0x30] sm:$0xff] }
 0x66b   :  { %v3570_v16 = vpack.c.bf16 %v3118_v19, %v3117_v14 }
 0x66c   :  { %v2858_v15 = vpop.permute.xlu0 %2857 }
 0x66d   :  { %v2869_v17 = vsel %vm2868_vm4, %v2866_v58, %v2858_v15  ;;  %v3286_v15 = vld [vmem:[%s4404_s14] ss:$0 sm:$0xff] }
 0x66e   :  { %3485 = vmatprep.mubr.msk.f32.mxu0 %vm100_vm0, %v2869_v17 }
 0x6aa   :  { %v2844_v18 = vpop.permute.xlu1 %2843 }
 0x6ab   :  { %v2864_v20 = vsel %vm1286_vm2, %v2835_v7, %v2844_v18  ;;  %v3115_v7 = vld [vmem:[%s4405_s15 + $0x20] sm:$0xff] }
 0x6ac   :  { %v3566_v8 = vpack.c.bf16 %v3116_v13, %v3115_v7 }
 0x6ae   :  { %v2852_v52 = vpop.permute.xlu1 %2851 }
 0x6af   :  { %v2867_v23 = vsel %vm2865_vm3, %v2864_v20, %v2852_v52 }
 0x6b2   :  { %v2860_v48 = vpop.permute.xlu1 %2859 }
 0x6b3   :  { %v2870_v63 = vsel %vm2868_vm4, %v2867_v23, %v2860_v48 }
 0x6b4   :  { %3486 = vmatmul.mubr.msk.f32.vlgmr.msra.gmra.mrb[16].mxu0 %vm100_vm0, %v2870_v63 }
 0x6b5   :  { %3561 = vmatpush3.bf16.msra.mxu0 %v3558_v2 }
 0x6b6   :  { %3563 = vmatprep.subr.bf16.mxu0 %v3562_v5 }
 0x6b9   :  { %3565 = vmatpush3.bf16.msra.mxu0 %v3562_v5 }
 0x6ba   :  { %3567 = vmatprep.subr.bf16.mxu0 %v3566_v8 }
 0x6bd   :  { %3569 = vmatpush3.bf16.msra.mxu0 %v3566_v8 }
 0x6be   :  { %3571 = vmatprep.subr.bf16.mxu0 %v3570_v16 }
 0x6c1   :  { %3573 = vmatpush3.bf16.msra.mxu0 %v3570_v16 }
 0x787   :  { %v3487_v9 = vpop.f32.mrb[16].mxu0 }
 0x788   :  { %v2960_v47 = vadd.f32 %v3487_v9, %v3281_v62  ;;  %v2954_v10 = vpop.f32.mrb[17].mxu0 }
 0x789   :  { %v2955_v24 = vadd.f32 %v3281_v62, %v2954_v10 }
 0x78a   :  { %v4321_v21 = vadd.f32 %v3633_v25, %v2960_v47 }
 0x78b   :  { %v4323_v26 = vadd.f32 %v3634_v50, %v2955_v24  ;;  %v3289_v50 = vld [vmem:[%s4406_s16] ss:$0 sm:$0xff] }
 0x78c   :  { %v2968_v27 = vsel %vm100_vm0, %v4321_v21, 0.0 }
 0x78d   :  { %2969 = vadd.xlane.f32.xlu1 %v2968_v27  ;;  %v2965_v29 = vsel %vm100_vm0, %v4323_v26, 0.0 }
 0x78e   :  { %2966 = vadd.xlane.f32.xlu0 %v2965_v29 }
 0x81a   :  { %v2970_v30 = vpop.xlane.xlu1 %2969 }
 0x81b   :  { %v2972_v31 = vmul.f32 0.03125, %v2970_v30  ;;  %v2967_v34 = vpop.xlane.xlu0 %2966 }
 0x81c   :  { %v2971_v6 = vmul.f32 0.03125, %v2967_v34 }
 0x81d   :  { %v2974_v35 = vsub.f32 %v4321_v21, %v2972_v31 }
 0x81e   :  { %v2973_v12 = vsub.f32 %v4323_v26, %v2971_v6 }
 0x81f   :  { %v2976_v59 = vmul.f32 %v2974_v35, %v2974_v35 }
 0x820   :  { %v2975_v37 = vmul.f32 %v2973_v12, %v2973_v12 }
 0x821   :  { %v2980_v42 = vsel %vm100_vm0, %v2976_v59, 0.0 }
 0x822   :  { %v2977_v38 = vsel %vm100_vm0, %v2975_v37, 0.0 }
 0x823   :  { %2978 = vadd.xlane.f32.xlu0 %v2977_v38 }
 0x827   :  { %2981 = vadd.xlane.f32.xlu0 %v2980_v42 }
 0x8b0   :  { %v2979_v33 = vpop.xlane.xlu0 %2978 }
 0x8b1   :  { %v2983_v44 = vmul.f32 0.03125, %v2979_v33 }
 0x8b3   :  { %v2985_v45 = vadd.f32 1e-05, %v2983_v44 }
 0x8b4   :  { %v2982_v28 = vpop.xlane.xlu0 %2981 }
 0x8b5   :  { %3625 = vrsqrt.f32 %v2985_v45  ;;  %v2984_v32 = vmul.f32 0.03125, %v2982_v28 }
 0x8b7   :  { %v2986_v36 = vadd.f32 1e-05, %v2984_v32 }
 0x8b9   :  { %3627 = vrsqrt.f32 %v2986_v36 }
 0x8bf   :  { %v3626_v60 = vpop.eup %3625 }
 0x8c0   :  { %v2989_v49 = vmul.f32 %v3626_v60, %v2973_v12 }
 0x8c2   :  { %v2998_v53 = vmul.f32 %v3284_v46, %v2989_v49 }
 0x8c3   :  { %v3628_v54 = vpop.eup %3627 }
 0x8c4   :  { %v2990_v55 = vmul.f32 %v3628_v54, %v2974_v35  ;;  %v3007_v57 = vadd.f32 %v3285_v51, %v2998_v53 }
 0x8c6   :  { %v2999_v61 = vmul.f32 %v3284_v46, %v2990_v55  ;;  %3496 = vmatprep.mubr.msk.f32.mxu1 %vm100_vm0, %v3007_v57 }
 0x8c8   :  { %v3008_v0 = vadd.f32 %v3285_v51, %v2999_v61 }
 0x8ca   :  { %3497 = vmatmul.mubr.msk.f32.vlgmr.msra.gmra.mrb[22].mxu1 %vm100_vm0, %v3008_v0 }
 0x99d   :  { %v3498_v58 = vpop.f32.mrb[22].mxu1 }
 0x99e   :  { %v3098_v17 = vadd.f32 %v3498_v58, %v3286_v15  ;;  %v3092_v18 = vpop.f32.mrb[23].mxu1 }
 0x99f   :  { %v3093_v52 = vadd.f32 %v3286_v15, %v3092_v18 }
 0x9a0   :  { %v3104_v20 = vmul.f32 0.70710677, %v3098_v17  ;;  %v3102_v10 = vmul.f32 0.5, %v3098_v17 }
 0x9a1   :  { %v3103_v23 = vmul.f32 0.70710677, %v3093_v52  ;;  %v3101_v9 = vmul.f32 0.5, %v3093_v52 }
 0x9a2   :  { %3629 = verf.f32 %v3104_v20 }
 0x9a3   :  { %3631 = verf.f32 %v3103_v23 }
 0x9ac   :  { %v3630_v48 = vpop.eup %3629 }
 0x9ad   :  { %v3632_v63 = vpop.eup %3631  ;;  %v3108_v62 = vadd.f32 1.0, %v3630_v48 }
 0x9ae   :  { %v3107_v47 = vadd.f32 1.0, %v3632_v63 }
 0x9af   :  { %v3110_v25 = vmul.f32 %v3108_v62, %v3102_v10 }
 0x9b0   :  { %v3109_v24 = vmul.f32 %v3107_v47, %v3101_v9 }
 0x9b2   :  { %3515 = vmatprep.mubr.msk.f32.mxu0 %vm3126_vm5, %v3109_v24 }
 0x9b3   :  { %3516 = vmatmul.mubr.msk.f32.vlgmr.msra.gmra.mrb[18].mxu0 %vm3126_vm5, %v3110_v25 }
 0xa86   :  { %v3517_v27 = vpop.f32.mrb[18].mxu0 }
 0xa87   :  { %v3205_v29 = vadd.f32 %v3517_v27, %v3289_v50  ;;  %v3199_v30 = vpop.f32.mrb[19].mxu0 }
 0xa88   :  { %v3200_v31 = vadd.f32 %v3289_v50, %v3199_v30 }
 0xa89   :  { %v3209_v34 = vadd.f32 %v3205_v29, %v4321_v21 }
 0xa8a   :  { %v3208_v6 = vadd.f32 %v3200_v31, %v4323_v26 }
 0xa8b   :  { %3211 = vst.msk [vmem:[#allocation8 + $0x8] sm:$0xff] %vm100_vm0, %v3209_v34 }
 0xa8c   :  { %3210 = vst.msk [vmem:[#allocation8] sm:$0xff] %vm100_vm0, %v3208_v6 }
 0xa8d   :  { %3712 = shalt.err (!%p3709_p0)
}
 0xa8e   :  { %s3713_s5 = scalar_lea.hbm %s4407_s17, 256 }
 0xa8f   :  { %p3714_p1 = scmp.ne.s32.totalorder %s4407_s17, %s3713_s5  ;;  %p3717_p2 = scmp.lt.u32.totalorder %s3713_s5, %s4407_s17 }
 0xa91   :  { %p3719_p3 = pnand %p3717_p2, %p3714_p1 }
 0xa93   :  { %3722 = shalt.err (!%p3719_p3)
}
 0xa94   :  { %3223 = dma.vmem_to_hbm [thread:$0]  %s3218_s25, 256, %s4407_s17, [#allocation4], %s3731_s21, %s3731_s21, %s3732_s22  }
 0xa95   :  { %3727 = dma.done.wait [#allocation4], 256  }
 0xa96   :  { %3728 = vsyncadd [#allocation4], 4294967040 }
 0xa97   :  { %3227 = vsyncpa [#allocation3], 1 }
 0xa98   :  { %3228 = vsyncpa [#allocation6], 1 }
 0xa99   :  { %3229 = vsyncpa [#allocation4], 1 }

// kernel: tpu_custom_call.1
= control target key start
LH: loop header
LB: loop body
LE: loop exit
PB: predicated region body
PF: predicated region fallthrough
CT: control target
= control target key end

     0   :  { %s4390_s0 = inlined_call_operand.hbm [shape: f32[2,8,32], index: 0, kind: input, shape index: {}]   ;;  %s4391_s1 = inlined_call_operand.vmem [shape: f32[1,32], index: 1, kind: input, shape index: {}]   ;;  %s4392_s2 = inlined_call_operand.vmem [shape: f32[1,32], index: 2, kind: input, shape index: {}]   ;;  %s4393_s3 = inlined_call_operand.vmem [shape: f32[32,32], index: 3, kind: input, shape index: {}]   ;;  %s4394_s4 = inlined_call_operand.vmem [shape: f32[32,32], index: 4, kind: input, shape index: {}]   ;;  %s4395_s5 = inlined_call_operand.vmem [shape: f32[32,32], index: 5, kind: input, shape index: {}]   ;;  %s4396_s6 = inlined_call_operand.hbm [shape: f32[32,32], index: 6, kind: input, shape index: {}]   ;;  %s4397_s7 = inlined_call_operand.vmem [shape: f32[1,32], index: 7, kind: input, shape index: {}]   ;;  %s4398_s8 = inlined_call_operand.vmem [shape: f32[1,32], index: 8, kind: input, shape index: {}]   ;;  %s4399_s9 = inlined_call_operand.vmem [shape: f32[1,32], index: 9, kind: input, shape index: {}]   ;;  %s4400_s10 = inlined_call_operand.vmem [shape: f32[1,32], index: 10, kind: input, shape index: {}]   ;;  %s4401_s11 = inlined_call_operand.vmem [shape: f32[1,32], index: 11, kind: input, shape index: {}]   ;;  %s4402_s12 = inlined_call_operand.vmem [shape: f32[1,32], index: 12, kind: input, shape index: {}]   ;;  %s4403_s13 = inlined_call_operand.hbm [shape: f32[32,64], index: 13, kind: input, shape index: {}]   ;;  %s4404_s14 = inlined_call_operand.vmem [shape: f32[1,64], index: 14, kind: input, shape index: {}]   ;;  %s4405_s15 = inlined_call_operand.vmem [shape: f32[64,32], index: 15, kind: input, shape index: {}]   ;;  %s4406_s16 = inlined_call_operand.vmem [shape: f32[1,32], index: 16, kind: input, shape index: {}]   ;;  %s4407_s17 = inlined_call_operand.hbm [shape: f32[2,8,32], index: 17, kind: output, shape index: {}]  }
   0x1   :  { %4409 = sst [smem:[#allocation12_spill]] %s4390_s0 }
   0x2   :  { %4410 = sst [smem:[#allocation13_spill]] %s4391_s1 }
   0x3   :  { %22 = vsyncpa [#allocation3], 0 }
   0x4   :  { %23 = vsyncpa [#allocation6], 0 }
   0x5   :  { %24 = vsyncpa [#allocation4], 0  ;;  %s3729_s24 = smov [#allocation5]   ;;  %s3730_s26 = smov [#allocation2]  }
   0x6   :  { %s52_s25 = sshll.u32 %s3729_s24, 4  ;;  %s30_s27 = sshll.u32 %s3730_s26, 4  ;;  %s53_s25 = int_to_ptr.vmem [resolvable:$true] %s52_s25  ;;  %s3834_s27 = int_to_ptr.vmem [resolvable:$true] %s30_s27 }
   0x7   :  { %s3635_s0 = scalar_lea.hbm %s4396_s6, 512 }
   0x8   :  { %p3636_p0 = scmp.ne.s32.totalorder %s4396_s6, %s3635_s0  ;;  %p3639_p1 = scmp.lt.u32.totalorder %s3635_s0, %s4396_s6 }
   0xa   :  { %p3641_p2 = pnand %p3639_p1, %p3636_p0 }
   0xc   :  { %3644 = shalt.err (!%p3641_p2)
}
   0xd   :  { %s3645_s20 = scalar_lea.vmem %s53_s25, 512  ;;  %p3650_p4 = scmp.lt.s32.totalorder %s53_s25, %s53_s25 }
   0xe   :  { %p3646_p3 = scmp.ne.s32.totalorder %s53_s25, %s3645_s20  ;;  %p3651_p5 = scmp.lt.s32.totalorder %s3645_s20, %s3645_s20 }
  0x10   :  { %p3652_p6 = por %p3651_p5, %p3650_p4 }
  0x12   :  { %p3653_p7 = pnand %p3652_p6, %p3646_p3 }
  0x14   :  { %3656 = shalt.err (!%p3653_p7)
}
  0x15   :  { %s3731_s21 = smov 128   ;;  %s3732_s22 = smov 8  }
  0x16   :  { %58 = dma.hbm_to_vmem [thread:$0]  %s4396_s6, 512, %s53_s25, [#allocation6], %s3731_s21, %s3731_s21, %s3732_s22  }
  0x17   :  { %s4411_s29 = sld [smem:[#allocation12_spill]] }
  0x1d   :  { %s3657_s0 = scalar_lea.hbm %s4411_s29, 256 }
  0x1e   :  { %p3658_p8 = scmp.ne.s32.totalorder %s4411_s29, %s3657_s0  ;;  %p3661_p9 = scmp.lt.u32.totalorder %s3657_s0, %s4411_s29 }
  0x20   :  { %p3663_p10 = pnand %p3661_p9, %p3658_p8 }
  0x22   :  { %3666 = shalt.err (!%p3663_p10)
}
  0x23   :  { %s3667_s20 = scalar_lea.vmem %s3834_s27, 256  ;;  %p3672_p12 = scmp.lt.s32.totalorder %s3834_s27, %s3834_s27 }
  0x24   :  { %p3668_p11 = scmp.ne.s32.totalorder %s3834_s27, %s3667_s20  ;;  %p3673_p13 = scmp.lt.s32.totalorder %s3667_s20, %s3667_s20 }
  0x26   :  { %p3674_p0 = por %p3673_p13, %p3672_p12 }
  0x28   :  { %p3675_p1 = pnand %p3674_p0, %p3668_p11 }
  0x2a   :  { %3678 = shalt.err (!%p3675_p1)
}
  0x2b   :  { %36 = dma.hbm_to_vmem [thread:$0]  %s4411_s29, 256, %s3834_s27, [#allocation3], %s3731_s21, %s3731_s21, %s3732_s22  }
  0x2c   :  { %s3733_s23 = smov [#allocation7]   ;;  %s3679_s0 = scalar_lea.hbm %s4403_s13, 512 }
  0x2d   :  { %s76_s24 = sshll.u32 %s3733_s23, 4  ;;  %p3680_p2 = scmp.ne.s32.totalorder %s4403_s13, %s3679_s0  ;;  %s77_s24 = int_to_ptr.vmem [resolvable:$true] %s76_s24 }
  0x2e   :  { %p3683_p3 = scmp.lt.u32.totalorder %s3679_s0, %s4403_s13 }
  0x30   :  { %p3685_p4 = pnand %p3683_p3, %p3680_p2 }
  0x32   :  { %3688 = shalt.err (!%p3685_p4)
}
  0x33   :  { %s3689_s20 = scalar_lea.vmem %s77_s24, 512  ;;  %p3694_p6 = scmp.lt.s32.totalorder %s77_s24, %s77_s24 }
  0x34   :  { %p3690_p5 = scmp.ne.s32.totalorder %s77_s24, %s3689_s20  ;;  %p3695_p7 = scmp.lt.s32.totalorder %s3689_s20, %s3689_s20 }
  0x36   :  { %p3696_p8 = por %p3695_p7, %p3694_p6 }
  0x38   :  { %p3697_p9 = pnand %p3696_p8, %p3690_p5 }
  0x3a   :  { %3700 = shalt.err (!%p3697_p9)
}
  0x3b   :  { %82 = dma.hbm_to_vmem [thread:$0]  %s4403_s13, 512, %s77_s24, [#allocation6], %s3731_s21, %s3731_s21, %s3732_s22  }
  0x3c   :  { %3723 = dma.done.wait [#allocation3], 256  }
  0x3d   :  { %3724 = vsyncadd [#allocation3], 4294967040 }
  0x3e   :  { %3725 = dma.done.wait [#allocation6], 1024  }
  0x3f   :  { %3726 = vsyncadd [#allocation6], 4294966272  ;;  %vm100_vm0 = vcmask 261120   ;;  %v98_v0 = vld [vmem:[#allocation2] sm:$0xff]  ;;  %v99_v1 = vld [vmem:[#allocation2 + $0x8] sm:$0xff]  ;;  %s4412_s26 = sld [smem:[#allocation13_spill]]  ;;  %v435_v63 = vlaneseq }
  0x40   :  { %v101_v2 = vsel %vm100_vm0, %v98_v0, 0.0  ;;  %v104_v3 = vsel %vm100_vm0, %v99_v1, 0.0  ;;  %v146_v14 = vld [vmem:[%s4393_s3] sm:$0xff]  ;;  %v147_v15 = vld [vmem:[%s4393_s3 + $0x8] sm:$0xff]  ;;  %v148_v19 = vld [vmem:[%s4393_s3 + $0x10] sm:$0xff]  ;;  %s3734_s20 = smov 120  }
  0x41   :  { %102 = vadd.xlane.f32.xlu0 %v101_v2  ;;  %v324_v16 = vld [vmem:[%s4395_s5] sm:$0xff]  ;;  %v3518_v17 = vpack.c.bf16 %v147_v15, %v146_v14  ;;  %v325_v18 = vld [vmem:[%s4395_s5 + $0x8] sm:$0xff]  ;;  %v149_v20 = vld [vmem:[%s4393_s3 + $0x18] sm:$0xff]  ;;  %s3736_s13 = smov 104   ;;  %v3737_v60 = vmov 0.0   ;;  %vm3738_vm1 = vmmov 0  }
  0x42   :  { %v3534_v21 = vpack.c.bf16 %v325_v18, %v324_v16  ;;  %v3522_v22 = vpack.c.bf16 %v149_v20, %v148_v19  ;;  %v326_v23 = vld [vmem:[%s4395_s5 + $0x10] sm:$0xff]  ;;  %v327_v24 = vld [vmem:[%s4395_s5 + $0x18] sm:$0xff]  ;;  %v238_v26 = vld [vmem:[%s4394_s4] sm:$0xff]  ;;  %v3739_v61 = vmov 1983009808   ;;  %vm1286_vm2 = vcmask 64512  }
  0x43   :  { %3519 = vmatprep.subr.bf16.mxu1 %v3518_v17  ;;  %v3538_v25 = vpack.c.bf16 %v327_v24, %v326_v23  ;;  %v239_v27 = vld [vmem:[%s4394_s4 + $0x8] sm:$0xff]  ;;  %v3231_v38 = vld [vmem:[%s4392_s2] ss:$0 sm:$0xff]  ;;  %v240_v43 = vld [vmem:[%s4394_s4 + $0x10] sm:$0xff]  ;;  %v433_v62 = vunpack.c.l.s4 %v3739_v61  ;;  %s3742_s3 = smov 24   ;;  %vm2865_vm3 = vcmask 130048  }
  0x44   :  { %3521 = vmatpush3.bf16.msra.mxu1 %v3518_v17  ;;  %3535 = vmatprep.subr.bf16.mxu0 %v3534_v21  ;;  %v3526_v28 = vpack.c.bf16 %v239_v27, %v238_v26  ;;  %v241_v44 = vld [vmem:[%s4394_s4 + $0x18] sm:$0xff]  ;;  %v3232_v48 = vld [vmem:[%s4397_s7] ss:$0 sm:$0xff]  ;;  %s3735_s7 = smov 112   ;;  %vm2868_vm4 = vcmask 195584   ;;  %vm3126_vm5 = vcmask 523264  }
  0x45   :  { %105 = vadd.xlane.f32.xlu0 %v104_v3  ;;  %3537 = vmatpush3.bf16.msra.mxu0 %v3534_v21  ;;  %v3230_v36 = vld [vmem:[%s4412_s26] ss:$0 sm:$0xff]  ;;  %v3530_v47 = vpack.c.bf16 %v241_v44, %v240_v43  ;;  %v434_v3 = vunpack.c.0.s8 %v433_v62 }
  0x46   :  { %3523 = vmatprep.subr.bf16.mxu1 %v3522_v22  ;;  %3539 = vmatprep.subr.bf16.mxu0 %v3538_v25  ;;  %v3235_v54 = vld [vmem:[%s4398_s8] ss:$0 sm:$0xff] }
  0x48   :  { %3525 = vmatpush3.bf16.msra.mxu1 %v3522_v22 }
  0x49   :  { %3541 = vmatpush3.bf16.msra.mxu0 %v3538_v25  ;;  %3527 = vmatprep.subr.bf16.mxu1 %v3526_v28 }
  0x4a   :  { %3407 = vmatprep.subr.mxu0 %v3737_v60 }
  0xce   :  { %v103_v4 = vpop.xlane.xlu0 %102 }
  0xcf   :  { %v108_v5 = vmul.f32 0.03125, %v103_v4  ;;  %v436_v4 = vshrl.u32 %v435_v63, 7 }
  0xd1   :  { %v110_v6 = vsub.f32 %v98_v0, %v108_v5 }
  0xd2   :  { %v106_v7 = vpop.xlane.xlu0 %105 }
  0xd3   :  { %v109_v8 = vmul.f32 0.03125, %v106_v7  ;;  %v112_v9 = vmul.f32 %v110_v6, %v110_v6 }
  0xd5   :  { %v111_v10 = vsub.f32 %v99_v1, %v109_v8  ;;  %v114_v11 = vsel %vm100_vm0, %v112_v9, 0.0  ;;  %v3740_v1 = vmov 1934713408   ;;  %v3981_v8 = vsub.s32 %v434_v3, %v436_v4 }
  0xd6   :  { %115 = vadd.xlane.f32.xlu1 %v114_v11  ;;  %v465_v2 = vunpack.c.l.s4 %v3740_v1 }
  0xd7   :  { %v113_v12 = vmul.f32 %v111_v10, %v111_v10 }
  0xd8   :  { %v466_v7 = vunpack.c.0.s8 %v465_v2 }
  0xd9   :  { %v117_v13 = vsel %vm100_vm0, %v113_v12, 0.0 }
  0xda   :  { %118 = vadd.xlane.f32.xlu1 %v117_v13  ;;  %v3983_v15 = vsub.s32 %v466_v7, %v436_v4 }
 0x163   :  { %v116_v29 = vpop.xlane.xlu1 %115 }
 0x164   :  { %v120_v30 = vmul.f32 0.03125, %v116_v29 }
 0x166   :  { %v122_v31 = vadd.f32 1e-05, %v120_v30 }
 0x167   :  { %v119_v32 = vpop.xlane.xlu1 %118 }
 0x168   :  { %3589 = vrsqrt.f32 %v122_v31  ;;  %v121_v33 = vmul.f32 0.03125, %v119_v32 }
 0x16a   :  { %v123_v34 = vadd.f32 1e-05, %v121_v33 }
 0x16c   :  { %3591 = vrsqrt.f32 %v123_v34 }
 0x172   :  { %v3590_v35 = vpop.eup %3589 }
 0x173   :  { %v126_v37 = vmul.f32 %v3590_v35, %v110_v6 }
 0x175   :  { %v135_v39 = vmul.f32 %v3230_v36, %v126_v37 }
 0x176   :  { %v3592_v40 = vpop.eup %3591 }
 0x177   :  { %v127_v41 = vmul.f32 %v3592_v40, %v111_v10  ;;  %v144_v42 = vadd.f32 %v3231_v38, %v135_v39 }
 0x179   :  { %v136_v45 = vmul.f32 %v3230_v36, %v127_v41  ;;  %3372 = vmatprep.mubr.msk.f32.mxu1 %vm100_vm0, %v144_v42  ;;  %3394 = vmatprep.mubr.msk.f32.mxu0 %vm100_vm0, %v144_v42 }
 0x17b   :  { %v145_v46 = vadd.f32 %v3231_v38, %v136_v45 }
 0x17d   :  { %3373 = vmatmul.mubr.msk.f32.vlgmr.msra.gmra.mrb[0].mxu1 %vm100_vm0, %v145_v46  ;;  %3395 = vmatmul.mubr.msk.f32.vlgmr.msra.gmra.mrb[0].mxu0 %vm100_vm0, %v145_v46 }
 0x17e   :  { %3529 = vmatpush3.bf16.msra.mxu1 %v3526_v28  ;;  %3383 = vmatprep.mubr.msk.f32.mxu1 %vm100_vm0, %v144_v42 }
 0x17f   :  { %3531 = vmatprep.subr.bf16.mxu1 %v3530_v47  ;;  %3409 = vmatprep.mubr.msk.f32.mxu0 %vm3738_vm1, %v3737_v60 }
 0x182   :  { %3533 = vmatpush3.bf16.msra.mxu1 %v3530_v47 }
 0x183   :  { %3397 = vmatprep.subr.mxu1 %v3737_v60 }
 0x185   :  { %3384 = vmatmul.mubr.msk.f32.vlgmr.msra.gmra.mrb[2].mxu1 %vm100_vm0, %v145_v46 }
 0x186   :  { %3399 = vmatprep.mubr.msk.f32.mxu1 %vm3738_vm1, %v3737_v60 }
 0x250   :  { %v3374_v49 = vpop.f32.mrb[0].mxu1  ;;  %v3941_v50 = vpop.f32.mrb[0].mxu0 }
 0x251   :  { %v229_v51 = vpop.f32.mrb[1].mxu1  ;;  %v3943_v52 = vpop.f32.mrb[1].mxu0  ;;  %v3967_v59 = vadd.f32 %v3374_v49, %v3232_v48 }
 0x252   :  { %v3945_v53 = vadd.f32 %v3232_v48, %v229_v51 }
 0x254   :  { %412 = vrot.lane.b32.xlu1 %v3945_v53, %s3734_s20 }
 0x258   :  { %v3385_v55 = vpop.f32.mrb[2].mxu1 }
 0x259   :  { %v315_v56 = vpop.f32.mrb[3].mxu1  ;;  %v3957_v58 = vadd.f32 %v3385_v55, %v3235_v54 }
 0x25a   :  { %v316_v57 = vadd.f32 %v3235_v54, %v315_v56 }
 0x25c   :  { %704 = vrot.lane.b32.xlu0 %v316_v57, %s3734_s20  ;;  %710 = vrot.lane.b32.xlu1 %v316_v57, %s3735_s7 }
 0x260   :  { %418 = vrot.lane.b32.xlu0 %v3945_v53, %s3735_s7  ;;  %716 = vrot.lane.b32.xlu1 %v316_v57, %s3736_s13 }
 0x264   :  { %706 = vrot.lane.b32.xlu0 %v3957_v58, %s3734_s20  ;;  %424 = vrot.lane.b32.xlu1 %v3945_v53, %s3736_s13 }
 0x268   :  { %718 = vrot.lane.b32.xlu0 %v3957_v58, %s3736_s13  ;;  %712 = vrot.lane.b32.xlu1 %v3957_v58, %s3735_s7 }
 0x26c   :  { %420 = vrot.lane.b32.xlu0 %v3967_v59, %s3735_s7  ;;  %414 = vrot.lane.b32.xlu1 %v3967_v59, %s3734_s20 }
 0x270   :  { %426 = vrot.lane.b32.xlu1 %v3967_v59, %s3736_s13 }
 0x2c6   :  { %v413_v0 = vpop.permute.xlu1 %412 }
 0x2ce   :  { %v705_v5 = vpop.permute.xlu0 %704  ;;  %v711_v6 = vpop.permute.xlu1 %710 }
 0x2cf   :  { %v722_v9 = vcombine.low %v316_v57, %v711_v6  ;;  %v723_v10 = vcombine.high %v316_v57, %v711_v6 }
 0x2d1   :  { %v730_v16 = vrot.slane %v722_v9, %v3981_v8  ;;  %v737_v17 = vrot.slane %v723_v10, %v3981_v8 }
 0x2d2   :  { %v419_v11 = vpop.permute.xlu0 %418  ;;  %v717_v12 = vpop.permute.xlu1 %716 }
 0x2d3   :  { %v738_v13 = vcombine.low %v705_v5, %v717_v12  ;;  %v739_v14 = vcombine.high %v705_v5, %v717_v12  ;;  %v430_v20 = vcombine.low %v3945_v53, %v419_v11  ;;  %v431_v21 = vcombine.high %v3945_v53, %v419_v11 }
 0x2d5   :  { %v746_v18 = vrot.slane %v738_v13, %v3981_v8  ;;  %v753_v19 = vrot.slane %v739_v14, %v3981_v8  ;;  %v438_v34 = vrot.slane %v430_v20, %v3981_v8  ;;  %v445_v35 = vrot.slane %v431_v21, %v3981_v8 }
 0x2d6   :  { %v425_v22 = vpop.permute.xlu1 %424  ;;  %v707_v27 = vpop.permute.xlu0 %706 }
 0x2d7   :  { %v754_v23 = vcombine.low %v730_v16, %v746_v18  ;;  %v755_v24 = vcombine.high %v730_v16, %v746_v18  ;;  %v770_v25 = vcombine.low %v737_v17, %v753_v19  ;;  %v771_v26 = vcombine.high %v737_v17, %v753_v19 }
 0x2d8   :  { %v446_v28 = vcombine.low %v413_v0, %v425_v22  ;;  %v447_v29 = vcombine.high %v413_v0, %v425_v22 }
 0x2d9   :  { %v762_v30 = vrot.slane %v754_v23, %v3983_v15  ;;  %v769_v31 = vrot.slane %v755_v24, %v3983_v15  ;;  %v778_v32 = vrot.slane %v770_v25, %v3983_v15  ;;  %v785_v33 = vrot.slane %v771_v26, %v3983_v15 }
 0x2da   :  { %v454_v36 = vrot.slane %v446_v28, %v3981_v8  ;;  %v461_v37 = vrot.slane %v447_v29, %v3981_v8  ;;  %v713_v38 = vpop.permute.xlu1 %712  ;;  %v719_v53 = vpop.permute.xlu0 %718 }
 0x2db   :  { %v858_v39 = vcombine.low %v762_v30, %v769_v31  ;;  %v3245_v40 = vcombine.high %v762_v30, %v769_v31  ;;  %v874_v41 = vcombine.low %v778_v32, %v785_v33  ;;  %v3246_v42 = vcombine.high %v778_v32, %v785_v33 }
 0x2dc   :  { %v462_v43 = vcombine.low %v438_v34, %v454_v36  ;;  %v463_v44 = vcombine.high %v438_v34, %v454_v36  ;;  %v478_v45 = vcombine.low %v445_v35, %v461_v37  ;;  %v479_v46 = vcombine.high %v445_v35, %v461_v37 }
 0x2dd   :  { %v4000_v47 = vrot.slane %v858_v39, %v3981_v8  ;;  %v4003_v48 = vrot.slane %v3245_v40, %v3981_v8  ;;  %v4006_v49 = vrot.slane %v874_v41, %v3981_v8  ;;  %v4009_v51 = vrot.slane %v3246_v42, %v3981_v8 }
 0x2de   :  { %v470_v54 = vrot.slane %v462_v43, %v3983_v15  ;;  %v477_v55 = vrot.slane %v463_v44, %v3983_v15  ;;  %v486_v56 = vrot.slane %v478_v45, %v3983_v15  ;;  %v493_v57 = vrot.slane %v479_v46, %v3983_v15  ;;  %v415_v61 = vpop.permute.xlu1 %414  ;;  %v421_v17 = vpop.permute.xlu0 %420 }
 0x2df   :  { %v890_v62 = vcombine.low %v4000_v47, %v4003_v48  ;;  %v891_v63 = vcombine.high %v4000_v47, %v4003_v48  ;;  %v806_v4 = vcombine.low %v707_v27, %v719_v53  ;;  %v807_v5 = vcombine.high %v707_v27, %v719_v53 }
 0x2e0   :  { %v566_v0 = vcombine.low %v470_v54, %v477_v55  ;;  %v3241_v1 = vcombine.high %v470_v54, %v477_v55  ;;  %v582_v2 = vcombine.low %v486_v56, %v493_v57  ;;  %v3242_v3 = vcombine.high %v486_v56, %v493_v57 }
 0x2e1   :  { %v790_v6 = vcombine.low %v3957_v58, %v713_v38  ;;  %v791_v7 = vcombine.high %v3957_v58, %v713_v38  ;;  %v906_v9 = vcombine.low %v4006_v49, %v4009_v51  ;;  %v907_v10 = vcombine.high %v4006_v49, %v4009_v51 }
 0x2e2   :  { %v4026_v11 = vrot.slane %v566_v0, %v3981_v8  ;;  %v4029_v12 = vrot.slane %v3241_v1, %v3981_v8  ;;  %v814_v13 = vrot.slane %v806_v4, %v3981_v8  ;;  %v821_v14 = vrot.slane %v807_v5, %v3981_v8  ;;  %v427_v18 = vpop.permute.xlu1 %426 }
 0x2e3   :  { %v798_v16 = vrot.slane %v790_v6, %v3981_v8  ;;  %v805_v58 = vrot.slane %v791_v7, %v3981_v8  ;;  %v4036_v19 = vrot.slane %v582_v2, %v3981_v8  ;;  %v4039_v20 = vrot.slane %v3242_v3, %v3981_v8 }
 0x2e4   :  { %v598_v21 = vcombine.low %v4026_v11, %v4029_v12  ;;  %v599_v22 = vcombine.high %v4026_v11, %v4029_v12  ;;  %v498_v27 = vcombine.low %v3967_v59, %v421_v17  ;;  %v499_v28 = vcombine.high %v3967_v59, %v421_v17 }
 0x2e5   :  { %v822_v23 = vcombine.low %v798_v16, %v814_v13  ;;  %v823_v24 = vcombine.high %v798_v16, %v814_v13  ;;  %v838_v25 = vcombine.low %v805_v58, %v821_v14  ;;  %v839_v26 = vcombine.high %v805_v58, %v821_v14 }
 0x2e6   :  { %v514_v29 = vcombine.low %v415_v61, %v427_v18  ;;  %v515_v30 = vcombine.high %v415_v61, %v427_v18  ;;  %v506_v35 = vrot.slane %v498_v27, %v3981_v8  ;;  %v513_v36 = vrot.slane %v499_v28, %v3981_v8 }
 0x2e7   :  { %v830_v31 = vrot.slane %v822_v23, %v3983_v15  ;;  %v837_v32 = vrot.slane %v823_v24, %v3983_v15  ;;  %v846_v33 = vrot.slane %v838_v25, %v3983_v15  ;;  %v853_v34 = vrot.slane %v839_v26, %v3983_v15 }
 0x2e8   :  { %v522_v37 = vrot.slane %v514_v29, %v3981_v8  ;;  %v529_v38 = vrot.slane %v515_v30, %v3981_v8  ;;  %v614_v61 = vcombine.low %v4036_v19, %v4039_v20  ;;  %v615_v0 = vcombine.high %v4036_v19, %v4039_v20 }
 0x2e9   :  { %v926_v59 = vcombine.low %v830_v31, %v837_v32  ;;  %v3247_v39 = vcombine.high %v830_v31, %v837_v32  ;;  %v942_v40 = vcombine.low %v846_v33, %v853_v34  ;;  %v3248_v41 = vcombine.high %v846_v33, %v853_v34 }
 0x2ea   :  { %v530_v42 = vcombine.low %v506_v35, %v522_v37  ;;  %v531_v43 = vcombine.high %v506_v35, %v522_v37  ;;  %v546_v44 = vcombine.low %v513_v36, %v529_v38  ;;  %v547_v45 = vcombine.high %v513_v36, %v529_v38 }
 0x2eb   :  { %v933_v46 = vrot.slane %v926_v59, %v3981_v8  ;;  %v941_v49 = vrot.slane %v3247_v39, %v3981_v8  ;;  %v949_v51 = vrot.slane %v942_v40, %v3981_v8  ;;  %v957_v53 = vrot.slane %v3248_v41, %v3981_v8 }
 0x2ec   :  { %v538_v54 = vrot.slane %v530_v42, %v3983_v15  ;;  %v545_v55 = vrot.slane %v531_v43, %v3983_v15  ;;  %v554_v56 = vrot.slane %v546_v44, %v3983_v15  ;;  %v561_v57 = vrot.slane %v547_v45, %v3983_v15 }
 0x2ed   :  { %v958_v1 = vcombine.low %v933_v46, %v941_v49  ;;  %v974_v2 = vcombine.low %v949_v51, %v957_v53  ;;  %v898_v7 = vrot.slane %v890_v62, %v3983_v15  ;;  %v914_v11 = vrot.slane %v906_v9, %v3983_v15 }
 0x2ee   :  { %v634_v3 = vcombine.low %v538_v54, %v545_v55  ;;  %v3243_v4 = vcombine.high %v538_v54, %v545_v55  ;;  %v650_v5 = vcombine.low %v554_v56, %v561_v57  ;;  %v3244_v6 = vcombine.high %v554_v56, %v561_v57 }
 0x2ef   :  { %v905_v12 = vrot.slane %v891_v63, %v3983_v15  ;;  %v921_v13 = vrot.slane %v907_v10, %v3983_v15  ;;  %v922_v18 = vcombine.low %v898_v7, %v914_v11  ;;  %v606_v62 = vrot.slane %v598_v21, %v3983_v15 }
 0x2f0   :  { %v641_v14 = vrot.slane %v634_v3, %v3981_v8  ;;  %v649_v16 = vrot.slane %v3243_v4, %v3981_v8  ;;  %v657_v58 = vrot.slane %v650_v5, %v3981_v8  ;;  %v665_v17 = vrot.slane %v3244_v6, %v3981_v8 }
 0x2f1   :  { %v924_v19 = vcombine.low %v905_v12, %v921_v13  ;;  %v622_v9 = vrot.slane %v614_v61, %v3983_v15  ;;  %v959_v20 = vcombine.high %v933_v46, %v941_v49  ;;  %v975_v48 = vcombine.high %v949_v51, %v957_v53  ;;  %3398 = vmatpush3.xpose.msk.msra.mxu1 %vm1286_vm2, %v922_v18 }
 0x2f2   :  { %v666_v23 = vcombine.low %v641_v14, %v649_v16  ;;  %v682_v47 = vcombine.low %v657_v58, %v665_v17  ;;  %v613_v10 = vrot.slane %v599_v22, %v3983_v15  ;;  %3402 = vmatprep.subr.mxu1 %v3737_v60  ;;  %v923_v24 = vcombine.high %v898_v7, %v914_v11 }
 0x2f3   :  { %3408 = vmatpush3.xpose.msk.msra.mxu0 %vm1286_vm2, %v924_v19  ;;  %v630_v63 = vcombine.low %v606_v62, %v622_v9  ;;  %v629_v25 = vrot.slane %v615_v0, %v3983_v15  ;;  %v966_v21 = vrot.slane %v958_v1, %v3983_v15  ;;  %v982_v26 = vrot.slane %v974_v2, %v3983_v15 }
 0x2f4   :  { %3417 = vmatprep.subr.mxu0 %v3737_v60  ;;  %v674_v27 = vrot.slane %v666_v23, %v3983_v15  ;;  %v690_v28 = vrot.slane %v682_v47, %v3983_v15  ;;  %v667_v29 = vcombine.high %v641_v14, %v649_v16  ;;  %v683_v30 = vcombine.high %v657_v58, %v665_v17  ;;  %v3238_v16 = vld [vmem:[%s4399_s9] ss:$0 sm:$0xff]  ;;  %s3741_s9 = smov 16  }
 0x2f5   :  { %3400 = vmatmul.mubr.msk.f32.vlgmr.msra.gmra.mrb[4].mxu1 %vm1286_vm2, %v630_v63  ;;  %v632_v22 = vcombine.low %v613_v10, %v629_v25  ;;  %v990_v31 = vcombine.low %v966_v21, %v982_v26  ;;  %v973_v32 = vrot.slane %v959_v20, %v3983_v15  ;;  %v989_v33 = vrot.slane %v975_v48, %v3983_v15 }
 0x2f6   :  { %3403 = vmatpush3.xpose.msk.msra.mxu1 %vm1286_vm2, %v923_v24  ;;  %3404 = vmatprep.mubr.msk.f32.mxu1 %vm3738_vm1, %v3737_v60  ;;  %v631_v34 = vcombine.high %v606_v62, %v622_v9  ;;  %v698_v35 = vcombine.low %v674_v27, %v690_v28  ;;  %v925_v36 = vcombine.high %v905_v12, %v921_v13 }
 0x2f7   :  { %3410 = vmatmul.mubr.msk.f32.vlgmr.msra.gmra.mrb[2].mxu0 %vm1286_vm2, %v632_v22  ;;  %3412 = vmatprep.subr.mxu1 %v3737_v60  ;;  %v681_v37 = vrot.slane %v667_v29, %v3983_v15  ;;  %v697_v38 = vrot.slane %v683_v30, %v3983_v15  ;;  %v992_v59 = vcombine.low %v973_v32, %v989_v33 }
 0x2f8   :  { %3418 = vmatpush3.xpose.msk.msra.mxu0 %vm1286_vm2, %v990_v31  ;;  %3419 = vmatprep.mubr.msk.f32.mxu0 %vm3738_vm1, %v3737_v60  ;;  %v633_v39 = vcombine.high %v613_v10, %v629_v25  ;;  %v991_v40 = vcombine.high %v966_v21, %v982_v26  ;;  %v699_v41 = vcombine.high %v674_v27, %v690_v28 }
 0x2f9   :  { %3405 = vmatmul.mubr.msk.f32.vlgmr.msra.gmra.mrb[6].mxu1 %vm1286_vm2, %v631_v34  ;;  %3427 = vmatprep.subr.mxu0 %v3737_v60  ;;  %v700_v42 = vcombine.low %v681_v37, %v697_v38  ;;  %v993_v43 = vcombine.high %v973_v32, %v989_v33  ;;  %v701_v44 = vcombine.high %v681_v37, %v697_v38 }
 0x2fa   :  { %3413 = vmatpush3.xpose.msk.msra.mxu1 %vm1286_vm2, %v925_v36  ;;  %3414 = vmatprep.mubr.msk.f32.mxu1 %vm3738_vm1, %v3737_v60  ;;  %v402_v58 = vadd.f32 %v3238_v16, %v3943_v52  ;;  %v4155_v19 = vadd.f32 %v3941_v50, %v3238_v16 }
 0x2fb   :  { %3422 = vmatprep.subr.mxu1 %v3737_v60  ;;  %3420 = vmatmul.mubr.msk.f32.vlgmr.msra.gmra.mrb[4].mxu0 %vm1286_vm2, %v698_v35 }
 0x2fc   :  { %3428 = vmatpush3.xpose.msk.msra.mxu0 %vm1286_vm2, %v992_v59  ;;  %3429 = vmatprep.mubr.msk.f32.mxu0 %vm3738_vm1, %v3737_v60 }
 0x2fd   :  { %3415 = vmatmul.mubr.msk.f32.vlgmr.msra.gmra.mrb[8].mxu1 %vm1286_vm2, %v633_v39  ;;  %3437 = vmatprep.subr.mxu0 %v3737_v60 }
 0x2fe   :  { %3423 = vmatpush3.xpose.msk.msra.mxu1 %vm1286_vm2, %v991_v40  ;;  %3424 = vmatprep.mubr.msk.f32.mxu1 %vm3738_vm1, %v3737_v60 }
 0x2ff   :  { %3432 = vmatprep.subr.mxu1 %v3737_v60  ;;  %3430 = vmatmul.mubr.msk.f32.vlgmr.msra.gmra.mrb[6].mxu0 %vm1286_vm2, %v700_v42 }
 0x300   :  { %3439 = vmatprep.mubr.msk.f32.mxu0 %vm3738_vm1, %v3737_v60 }
 0x301   :  { %3425 = vmatmul.mubr.msk.f32.vlgmr.msra.gmra.mrb[10].mxu1 %vm1286_vm2, %v699_v41 }
 0x302   :  { %3433 = vmatpush3.xpose.msk.msra.mxu1 %vm1286_vm2, %v993_v43  ;;  %3434 = vmatprep.mubr.msk.f32.mxu1 %vm3738_vm1, %v3737_v60 }
 0x303   :  { %3442 = vmatprep.subr.mxu1 %v3737_v60 }
 0x305   :  { %3435 = vmatmul.mubr.msk.f32.vlgmr.msra.gmra.mrb[12].mxu1 %vm1286_vm2, %v701_v44 }
 0x306   :  { %3444 = vmatprep.mubr.msk.f32.mxu1 %vm3738_vm1, %v3737_v60 }
 0x3c8   :  { %v1359_v45 = vpop.f32.mrb[4].mxu1 }
 0x3c9   :  { %v3401_v46 = vpop.f32.mrb[5].mxu1  ;;  %v1895_v49 = vsel %vm1286_vm2, %v1359_v45, -inf }
 0x3ca   :  { %v1511_v51 = vpop.f32.mrb[2].mxu0  ;;  %1896 = vmax.xlane.f32.xlu0 %v1895_v49 }
 0x3cb   :  { %v3411_v53 = vpop.f32.mrb[3].mxu0  ;;  %v1901_v56 = vsel %vm1286_vm2, %v1511_v51, -inf }
 0x3cc   :  { %v1435_v54 = vpop.f32.mrb[6].mxu1 }
 0x3cd   :  { %v3406_v55 = vpop.f32.mrb[7].mxu1  ;;  %v1898_v57 = vsel %vm1286_vm2, %v1435_v54, -inf }
 0x3ce   :  { %1902 = vmax.xlane.f32.xlu0 %v1901_v56  ;;  %1899 = vmax.xlane.f32.xlu1 %v1898_v57  ;;  %v1663_v61 = vpop.f32.mrb[4].mxu0 }
 0x3cf   :  { %v3421_v0 = vpop.f32.mrb[5].mxu0  ;;  %v1907_v1 = vsel %vm1286_vm2, %v1663_v61, -inf }
 0x3d0   :  { %v1587_v2 = vpop.f32.mrb[8].mxu1 }
 0x3d1   :  { %v3416_v3 = vpop.f32.mrb[9].mxu1  ;;  %v1904_v11 = vsel %vm1286_vm2, %v1587_v2, -inf }
 0x3d2   :  { %1908 = vmax.xlane.f32.xlu0 %v1907_v1  ;;  %v1815_v4 = vpop.f32.mrb[6].mxu0 }
 0x3d3   :  { %v3431_v5 = vpop.f32.mrb[7].mxu0  ;;  %v1913_v14 = vsel %vm1286_vm2, %v1815_v4, -inf }
 0x3d4   :  { %v4137_v6 = vpop.f32.mrb[10].mxu1 }
 0x3d5   :  { %v3426_v7 = vpop.f32.mrb[11].mxu1  ;;  %v1910_v17 = vsel %vm1286_vm2, %v4137_v6, -inf }
 0x3d6   :  { %1905 = vmax.xlane.f32.xlu0 %v1904_v11 }
 0x3d8   :  { %v4140_v12 = vpop.f32.mrb[12].mxu1 }
 0x3d9   :  { %v3436_v13 = vpop.f32.mrb[13].mxu1  ;;  %v1916_v18 = vsel %vm1286_vm2, %v4140_v12, -inf }
 0x3da   :  { %1914 = vmax.xlane.f32.xlu0 %v1913_v14 }
 0x3df   :  { %1002 = vrot.lane.b32.xlu1 %v402_v58, %s3735_s7 }
 0x3e3   :  { %1008 = vrot.lane.b32.xlu1 %v402_v58, %s3736_s13 }
 0x3f0   :  { %996 = vrot.lane.b32.xlu0 %v402_v58, %s3734_s20 }
 0x407   :  { %1911 = vmax.xlane.f32.xlu1 %v1910_v17 }
 0x40b   :  { %1917 = vmax.xlane.f32.xlu1 %v1916_v18 }
 0x41c   :  { %998 = vrot.lane.b32.xlu1 %v4155_v19, %s3734_s20 }
 0x457   :  { %v1897_v52 = vpop.xlane.xlu0 %1896 }
 0x458   :  { %v1919_v62 = vsub.f32 %v1359_v45, %v1897_v52 }
 0x45a   :  { %v1927_v9 = vmul.f32 1.442695, %v1919_v62 }
 0x45b   :  { %v1903_v20 = vpop.xlane.xlu0 %1902  ;;  %v1900_v23 = vpop.xlane.xlu1 %1899 }
 0x45c   :  { %3593 = vpow2.f32 %v1927_v9  ;;  %v1921_v47 = vsub.f32 %v1511_v51, %v1903_v20  ;;  %v1920_v48 = vsub.f32 %v1435_v54, %v1900_v23 }
 0x45e   :  { %v1931_v63 = vmul.f32 1.442695, %v1921_v47  ;;  %v1929_v10 = vmul.f32 1.442695, %v1920_v48 }
 0x45f   :  { %v1909_v24 = vpop.xlane.xlu0 %1908  ;;  %v1003_v27 = vpop.permute.xlu1 %1002 }
 0x460   :  { %3595 = vpow2.f32 %v1931_v63  ;;  %v1923_v25 = vsub.f32 %v1663_v61, %v1909_v24  ;;  %v1014_v33 = vcombine.low %v402_v58, %v1003_v27  ;;  %v1015_v34 = vcombine.high %v402_v58, %v1003_v27 }
 0x461   :  { %3597 = vpow2.f32 %v1929_v10 }
 0x462   :  { %v1935_v21 = vmul.f32 1.442695, %v1923_v25  ;;  %v1022_v43 = vrot.slane %v1014_v33, %v3981_v8  ;;  %v1029_v44 = vrot.slane %v1015_v34, %v3981_v8 }
 0x463   :  { %v1906_v50 = vpop.xlane.xlu0 %1905  ;;  %v1009_v37 = vpop.permute.xlu1 %1008 }
 0x464   :  { %3599 = vpow2.f32 %v1935_v21  ;;  %v1922_v26 = vsub.f32 %v1587_v2, %v1906_v50 }
 0x466   :  { %v4159_v28 = vpop.eup %3593  ;;  %v1933_v29 = vmul.f32 1.442695, %v1922_v26 }
 0x467   :  { %v1943_v30 = vsel %vm1286_vm2, %v4159_v28, 0.0  ;;  %v1915_v22 = vpop.xlane.xlu0 %1914 }
 0x468   :  { %3601 = vpow2.f32 %v1933_v29  ;;  %1944 = vadd.xlane.f32.xlu0 %v1943_v30  ;;  %v1925_v31 = vsub.f32 %v1815_v4, %v1915_v22 }
 0x46a   :  { %v4163_v32 = vpop.eup %3595  ;;  %v1939_v35 = vmul.f32 1.442695, %v1925_v31 }
 0x46b   :  { %v4165_v36 = vpop.eup %3597  ;;  %v1949_v38 = vsel %vm1286_vm2, %v4163_v32, 0.0  ;;  %v997_v59 = vpop.permute.xlu0 %996 }
 0x46c   :  { %3603 = vpow2.f32 %v1939_v35  ;;  %1950 = vadd.xlane.f32.xlu0 %v1949_v38  ;;  %v1946_v39 = vsel %vm1286_vm2, %v4165_v36, 0.0  ;;  %v1030_v40 = vcombine.low %v997_v59, %v1009_v37  ;;  %v1031_v41 = vcombine.high %v997_v59, %v1009_v37 }
 0x46d   :  { %1947 = vadd.xlane.f32.xlu1 %v1946_v39 }
 0x46e   :  { %v4171_v42 = vpop.eup %3599  ;;  %v1038_v45 = vrot.slane %v1030_v40, %v3981_v8  ;;  %v1045_v46 = vrot.slane %v1031_v41, %v3981_v8 }
 0x46f   :  { %v1955_v49 = vsel %vm1286_vm2, %v4171_v42, 0.0 }
 0x470   :  { %v1046_v51 = vcombine.low %v1022_v43, %v1038_v45  ;;  %v1047_v53 = vcombine.high %v1022_v43, %v1038_v45  ;;  %v1062_v54 = vcombine.low %v1029_v44, %v1045_v46  ;;  %v1063_v55 = vcombine.high %v1029_v44, %v1045_v46 }
 0x471   :  { %1956 = vadd.xlane.f32.xlu1 %v1955_v49 }
 0x472   :  { %v4179_v56 = vpop.eup %3601  ;;  %v1054_v57 = vrot.slane %v1046_v51, %v3983_v15  ;;  %v1061_v61 = vrot.slane %v1047_v53, %v3983_v15  ;;  %v1070_v0 = vrot.slane %v1062_v54, %v3983_v15  ;;  %v1077_v1 = vrot.slane %v1063_v55, %v3983_v15 }
 0x473   :  { %v1952_v2 = vsel %vm1286_vm2, %v4179_v56, 0.0 }
 0x474   :  { %v1150_v3 = vcombine.low %v1054_v57, %v1061_v61  ;;  %v3249_v4 = vcombine.high %v1054_v57, %v1061_v61  ;;  %v1166_v5 = vcombine.low %v1070_v0, %v1077_v1  ;;  %v3250_v7 = vcombine.high %v1070_v0, %v1077_v1 }
 0x475   :  { %1953 = vadd.xlane.f32.xlu1 %v1952_v2 }
 0x476   :  { %v4187_v11 = vpop.eup %3603  ;;  %v1157_v13 = vrot.slane %v1150_v3, %v3981_v8  ;;  %v1165_v14 = vrot.slane %v3249_v4, %v3981_v8  ;;  %v1173_v16 = vrot.slane %v1166_v5, %v3981_v8  ;;  %v1181_v58 = vrot.slane %v3250_v7, %v3981_v8 }
 0x477   :  { %v1961_v17 = vsel %vm1286_vm2, %v4187_v11, 0.0 }
 0x478   :  { %1962 = vadd.xlane.f32.xlu0 %v1961_v17  ;;  %v1182_v18 = vcombine.low %v1157_v13, %v1165_v14  ;;  %v1198_v52 = vcombine.low %v1173_v16, %v1181_v58  ;;  %v1183_v62 = vcombine.high %v1157_v13, %v1165_v14  ;;  %v1199_v9 = vcombine.high %v1173_v16, %v1181_v58 }
 0x47a   :  { %v1190_v20 = vrot.slane %v1182_v18, %v3983_v15  ;;  %v1206_v23 = vrot.slane %v1198_v52, %v3983_v15  ;;  %v1197_v47 = vrot.slane %v1183_v62, %v3983_v15  ;;  %v1213_v48 = vrot.slane %v1199_v9, %v3983_v15 }
 0x47c   :  { %v1214_v63 = vcombine.low %v1190_v20, %v1206_v23  ;;  %v1215_v10 = vcombine.high %v1190_v20, %v1206_v23  ;;  %v1216_v24 = vcombine.low %v1197_v47, %v1213_v48  ;;  %v1217_v25 = vcombine.high %v1197_v47, %v1213_v48 }
 0x47e   :  { %3438 = vmatpush3.msra.mxu0 %v1214_v63  ;;  %3443 = vmatpush3.msra.mxu1 %v1215_v10 }
 0x47f   :  { %3447 = vmatprep.subr.mxu0 %v3737_v60  ;;  %3452 = vmatprep.subr.mxu1 %v3737_v60 }
 0x486   :  { %1010 = vrot.lane.b32.xlu1 %v4155_v19, %s3736_s13 }
 0x494   :  { %v1912_v21 = vpop.xlane.xlu1 %1911 }
 0x495   :  { %v1924_v50 = vsub.f32 %v4137_v6, %v1912_v21 }
 0x497   :  { %v1937_v26 = vmul.f32 1.442695, %v1924_v50 }
 0x498   :  { %v1918_v27 = vpop.xlane.xlu1 %1917 }
 0x499   :  { %3605 = vpow2.f32 %v1937_v26  ;;  %v1926_v29 = vsub.f32 %v4140_v12, %v1918_v27 }
 0x49b   :  { %v1941_v30 = vmul.f32 1.442695, %v1926_v29 }
 0x49c   :  { %v999_v35 = vpop.permute.xlu1 %998 }
 0x49d   :  { %3607 = vpow2.f32 %v1941_v30 }
 0x4a3   :  { %v4205_v22 = vpop.eup %3605 }
 0x4a4   :  { %v1958_v31 = vsel %vm1286_vm2, %v4205_v22, 0.0 }
 0x4a5   :  { %1959 = vadd.xlane.f32.xlu0 %v1958_v31 }
 0x4a7   :  { %v4209_v33 = vpop.eup %3607 }
 0x4a8   :  { %v1964_v34 = vsel %vm1286_vm2, %v4209_v33, 0.0 }
 0x4a9   :  { %1965 = vadd.xlane.f32.xlu0 %v1964_v34 }
 0x4bf   :  { %1004 = vrot.lane.b32.xlu0 %v4155_v19, %s3735_s7 }
 0x4f5   :  { %v1945_v6 = vpop.xlane.xlu0 %1944 }
 0x4f6   :  { %3609 = vrcp.f32 %v1945_v6 }
 0x4f9   :  { %v1951_v12 = vpop.xlane.xlu0 %1950 }
 0x4fa   :  { %3611 = vrcp.f32 %v1951_v12  ;;  %v1948_v37 = vpop.xlane.xlu1 %1947 }
 0x4fb   :  { %3613 = vrcp.f32 %v1948_v37 }
 0x4fe   :  { %v1957_v38 = vpop.xlane.xlu1 %1956 }
 0x500   :  { %v3610_v59 = vpop.eup %3609 }
 0x501   :  { %v1968_v39 = vmul.f32 %v3610_v59, %v4159_v28 }
 0x502   :  { %v1954_v40 = vpop.xlane.xlu1 %1953 }
 0x503   :  { %3440 = vmatmul.mubr.msk.f32.vlgmr.msra.gmra.mrb[8].mxu0 %vm1286_vm2, %v1968_v39  ;;  %3615 = vrcp.f32 %v1954_v40 }
 0x504   :  { %v3612_v41 = vpop.eup %3611  ;;  %3448 = vmatpush3.msra.mxu0 %v1216_v24  ;;  %3449 = vmatprep.mubr.msk.f32.mxu0 %vm3738_vm1, %v3737_v60  ;;  %3617 = vrcp.f32 %v1957_v38 }
 0x505   :  { %v3614_v43 = vpop.eup %3613  ;;  %v1972_v44 = vmul.f32 %v3612_v41, %v4163_v32  ;;  %3457 = vmatprep.subr.mxu0 %v3737_v60 }
 0x506   :  { %v1970_v45 = vmul.f32 %v3614_v43, %v4165_v36  ;;  %v1963_v36 = vpop.xlane.xlu0 %1962  ;;  %v1011_v49 = vpop.permute.xlu1 %1010 }
 0x507   :  { %3450 = vmatmul.mubr.msk.f32.vlgmr.msra.gmra.mrb[10].mxu0 %vm1286_vm2, %v1972_v44  ;;  %v1098_v53 = vcombine.low %v999_v35, %v1011_v49  ;;  %v1099_v54 = vcombine.high %v999_v35, %v1011_v49 }
 0x508   :  { %3445 = vmatmul.mubr.msk.f32.vlgmr.msra.gmra.mrb[14].mxu1 %vm1286_vm2, %v1970_v45  ;;  %3459 = vmatprep.mubr.msk.f32.mxu0 %vm3738_vm1, %v3737_v60 }
 0x509   :  { %3453 = vmatpush3.msra.mxu1 %v1217_v25  ;;  %3454 = vmatprep.mubr.msk.f32.mxu1 %vm3738_vm1, %v3737_v60  ;;  %v1106_v0 = vrot.slane %v1098_v53, %v3981_v8 }
 0x50a   :  { %3462 = vmatprep.subr.mxu1 %v3737_v60 }
 0x50d   :  { %v3616_v28 = vpop.eup %3615 }
 0x50e   :  { %v1974_v32 = vmul.f32 %v3616_v28, %v4179_v56  ;;  %v1113_v56 = vrot.slane %v1099_v54, %v3981_v8  ;;  %v3618_v47 = vpop.eup %3617 }
 0x50f   :  { %v1976_v6 = vmul.f32 %v3618_v47, %v4171_v42 }
 0x510   :  { %3455 = vmatmul.mubr.msk.f32.vlgmr.msra.gmra.mrb[16].mxu1 %vm1286_vm2, %v1974_v32 }
 0x511   :  { %3464 = vmatprep.mubr.msk.f32.mxu1 %vm3738_vm1, %v3737_v60 }
 0x532   :  { %v1960_v46 = vpop.xlane.xlu0 %1959 }
 0x533   :  { %3619 = vrcp.f32 %v1960_v46 }
 0x534   :  { %3621 = vrcp.f32 %v1963_v36 }
 0x536   :  { %v1966_v51 = vpop.xlane.xlu0 %1965 }
 0x537   :  { %3623 = vrcp.f32 %v1966_v51 }
 0x53a   :  { %v1005_v55 = vpop.permute.xlu0 %1004 }
 0x53b   :  { %v1082_v57 = vcombine.low %v4155_v19, %v1005_v55  ;;  %v1083_v61 = vcombine.high %v4155_v19, %v1005_v55 }
 0x53d   :  { %v1090_v1 = vrot.slane %v1082_v57, %v3981_v8  ;;  %v1097_v2 = vrot.slane %v1083_v61, %v3981_v8  ;;  %v3620_v25 = vpop.eup %3619 }
 0x53e   :  { %v3622_v26 = vpop.eup %3621  ;;  %v1978_v35 = vmul.f32 %v3620_v25, %v4205_v22 }
 0x53f   :  { %v1114_v3 = vcombine.low %v1090_v1, %v1106_v0  ;;  %v1115_v4 = vcombine.high %v1090_v1, %v1106_v0  ;;  %v1130_v5 = vcombine.low %v1097_v2, %v1113_v56  ;;  %v1131_v7 = vcombine.high %v1097_v2, %v1113_v56 }
 0x540   :  { %v1980_v38 = vmul.f32 %v3622_v26, %v4187_v11 }
 0x541   :  { %v1122_v13 = vrot.slane %v1114_v3, %v3983_v15  ;;  %v1129_v14 = vrot.slane %v1115_v4, %v3983_v15  ;;  %v1138_v19 = vrot.slane %v1130_v5, %v3983_v15  ;;  %v1145_v16 = vrot.slane %v1131_v7, %v3983_v15  ;;  %v3624_v34 = vpop.eup %3623 }
 0x542   :  { %v1982_v59 = vmul.f32 %v3624_v34, %v4209_v33 }
 0x543   :  { %v1218_v58 = vcombine.low %v1122_v13, %v1129_v14  ;;  %v3251_v17 = vcombine.high %v1122_v13, %v1129_v14  ;;  %v1234_v18 = vcombine.low %v1138_v19, %v1145_v16  ;;  %v3252_v52 = vcombine.high %v1138_v19, %v1145_v16 }
 0x545   :  { %v1225_v62 = vrot.slane %v1218_v58, %v3981_v8  ;;  %v1233_v9 = vrot.slane %v3251_v17, %v3981_v8  ;;  %v1241_v20 = vrot.slane %v1234_v18, %v3981_v8  ;;  %v1249_v23 = vrot.slane %v3252_v52, %v3981_v8 }
 0x547   :  { %v1250_v48 = vcombine.low %v1225_v62, %v1233_v9  ;;  %v1266_v63 = vcombine.low %v1241_v20, %v1249_v23  ;;  %v1251_v10 = vcombine.high %v1225_v62, %v1233_v9  ;;  %v1267_v24 = vcombine.high %v1241_v20, %v1249_v23 }
 0x549   :  { %v1258_v21 = vrot.slane %v1250_v48, %v3983_v15  ;;  %v1274_v50 = vrot.slane %v1266_v63, %v3983_v15  ;;  %v1265_v27 = vrot.slane %v1251_v10, %v3983_v15  ;;  %v1281_v29 = vrot.slane %v1267_v24, %v3983_v15 }
 0x54b   :  { %v1282_v30 = vcombine.low %v1258_v21, %v1274_v50  ;;  %v1283_v31 = vcombine.high %v1258_v21, %v1274_v50  ;;  %v1284_v12 = vcombine.low %v1265_v27, %v1281_v29  ;;  %v1285_v37 = vcombine.high %v1265_v27, %v1281_v29 }
 0x54d   :  { %3458 = vmatpush3.msra.mxu0 %v1282_v30  ;;  %3463 = vmatpush3.msra.mxu1 %v1283_v31 }
 0x54e   :  { %3460 = vmatmul.mubr.msk.f32.vlgmr.msra.gmra.mrb[12].mxu0 %vm1286_vm2, %v1976_v6  ;;  %3465 = vmatmul.mubr.msk.f32.vlgmr.msra.gmra.mrb[18].mxu1 %vm1286_vm2, %v1978_v35 }
 0x54f   :  { %3467 = vmatprep.subr.mxu0 %v3737_v60  ;;  %3472 = vmatprep.subr.mxu1 %v3737_v60 }
 0x550   :  { %3468 = vmatpush3.msra.mxu0 %v1284_v12  ;;  %3473 = vmatpush3.msra.mxu1 %v1285_v37 }
 0x551   :  { %3469 = vmatprep.mubr.msk.f32.mxu0 %vm3738_vm1, %v3737_v60  ;;  %3474 = vmatprep.mubr.msk.f32.mxu1 %vm3738_vm1, %v3737_v60 }
 0x552   :  { %3470 = vmatmul.mubr.msk.f32.vlgmr.msra.gmra.mrb[14].mxu0 %vm1286_vm2, %v1980_v38  ;;  %3475 = vmatmul.mubr.msk.f32.vlgmr.msra.gmra.mrb[20].mxu1 %vm1286_vm2, %v1982_v59 }
 0x5d6   :  { %v2052_v42 = vpop.f32.mrb[8].mxu0 }
 0x5d7   :  { %v3441_v22 = vpop.f32.mrb[9].mxu0 }
 0x5da   :  { %v2198_v39 = vpop.f32.mrb[10].mxu0 }
 0x5db   :  { %v2125_v40 = vpop.f32.mrb[14].mxu1  ;;  %v2567_v41 = vcombine.low %v2052_v42, %v2198_v39  ;;  %v2568_v11 = vcombine.high %v2052_v42, %v2198_v39  ;;  %v3451_v43 = vpop.f32.mrb[11].mxu0  ;;  %v2871_v39 = vld [vmem:[#allocation5] sm:$0xff] }
 0x5dc   :  { %v3446_v33 = vpop.f32.mrb[15].mxu1 }
 0x5dd   :  { %v2575_v36 = vrot.slane %v2567_v41, %v3981_v8  ;;  %v2582_v60 = vrot.slane %v2568_v11, %v3981_v8 }
 0x5e3   :  { %v2271_v44 = vpop.f32.mrb[16].mxu1 }
 0x5e4   :  { %v2583_v45 = vcombine.low %v2125_v40, %v2271_v44  ;;  %v2584_v28 = vcombine.high %v2125_v40, %v2271_v44  ;;  %v3456_v32 = vpop.f32.mrb[17].mxu1  ;;  %v2872_v40 = vld [vmem:[#allocation5 + $0x8] sm:$0xff] }
 0x5e5   :  { %v3542_v44 = vpack.c.bf16 %v2872_v40, %v2871_v39  ;;  %v3010_v39 = vld [vmem:[#allocation7 + $0x8] sm:$0xff] }
 0x5e6   :  { %v2591_v46 = vrot.slane %v2583_v45, %v3981_v8  ;;  %v2598_v49 = vrot.slane %v2584_v28, %v3981_v8 }
 0x5e7   :  { %3543 = vmatprep.subr.bf16.mxu0 %v3542_v44 }
 0x5e8   :  { %v2599_v51 = vcombine.low %v2575_v36, %v2591_v46  ;;  %v2600_v53 = vcombine.high %v2575_v36, %v2591_v46  ;;  %v2615_v54 = vcombine.low %v2582_v60, %v2598_v49  ;;  %v2616_v55 = vcombine.high %v2582_v60, %v2598_v49  ;;  %v2873_v60 = vld [vmem:[#allocation5 + $0x10] sm:$0xff]  ;;  %v2874_v46 = vld [vmem:[#allocation5 + $0x18] sm:$0xff]  ;;  %3545 = vmatpush3.bf16.msra.mxu0 %v3542_v44 }
 0x5ea   :  { %v2607_v57 = vrot.slane %v2599_v51, %v3983_v15  ;;  %v2614_v61 = vrot.slane %v2600_v53, %v3983_v15  ;;  %v2623_v0 = vrot.slane %v2615_v54, %v3983_v15  ;;  %v2630_v56 = vrot.slane %v2616_v55, %v3983_v15 }
 0x5eb   :  { %v3546_v55 = vpack.c.bf16 %v2874_v46, %v2873_v60  ;;  %v3284_v46 = vld [vmem:[%s4401_s11] ss:$0 sm:$0xff] }
 0x5ec   :  { %v2703_v1 = vcombine.low %v2607_v57, %v2614_v61  ;;  %v3277_v2 = vcombine.high %v2607_v57, %v2614_v61  ;;  %v2719_v3 = vcombine.low %v2623_v0, %v2630_v56  ;;  %v3278_v4 = vcombine.high %v2623_v0, %v2630_v56 }
 0x5ed   :  { %3547 = vmatprep.subr.bf16.mxu0 %v3546_v55 }
 0x5ee   :  { %v2710_v5 = vrot.slane %v2703_v1, %v3981_v8  ;;  %v2718_v7 = vrot.slane %v3277_v2, %v3981_v8  ;;  %v2726_v13 = vrot.slane %v2719_v3, %v3981_v8  ;;  %v2734_v14 = vrot.slane %v3278_v4, %v3981_v8  ;;  %3549 = vmatpush3.bf16.msra.mxu0 %v3546_v55 }
 0x5f0   :  { %v2736_v19 = vcombine.high %v2710_v5, %v2718_v7  ;;  %v2752_v16 = vcombine.high %v2726_v13, %v2734_v14  ;;  %v2735_v58 = vcombine.low %v2710_v5, %v2718_v7  ;;  %v2751_v17 = vcombine.low %v2726_v13, %v2734_v14 }
 0x5f2   :  { %v2750_v18 = vrot.slane %v2736_v19, %v3983_v15  ;;  %v2766_v52 = vrot.slane %v2752_v16, %v3983_v15  ;;  %v4280_v62 = vrot.slane %v2735_v58, %v3983_v15  ;;  %v4283_v9 = vrot.slane %v2751_v17, %v3983_v15 }
 0x5f4   :  { %v2769_v20 = vcombine.low %v2750_v18, %v2766_v52  ;;  %v2768_v23 = vcombine.high %v4280_v62, %v4283_v9  ;;  %v2767_v47 = vcombine.low %v4280_v62, %v4283_v9  ;;  %v2770_v48 = vcombine.high %v2750_v18, %v2766_v52  ;;  %v3281_v62 = vld [vmem:[%s4400_s10] ss:$0 sm:$0xff] }
 0x5f6   :  { %2849 = vrot.lane.b32.xlu0 %v2769_v20, %s3741_s9  ;;  %2841 = vrot.lane.b32.xlu1 %v2768_v23, %s3732_s22 }
 0x5fa   :  { %2857 = vrot.lane.b32.xlu0 %v2770_v48, %s3742_s3 }
 0x621   :  { %v2344_v63 = vpop.f32.mrb[12].mxu0  ;;  %v2417_v10 = vpop.f32.mrb[18].mxu1 }
 0x622   :  { %v3461_v24 = vpop.f32.mrb[13].mxu0  ;;  %v3466_v25 = vpop.f32.mrb[19].mxu1 }
 0x623   :  { %v3633_v25 = vld [vmem:[#allocation2 + $0x8] sm:$0xff] }
 0x625   :  { %v2490_v21 = vpop.f32.mrb[14].mxu0  ;;  %v2563_v50 = vpop.f32.mrb[20].mxu1 }
 0x626   :  { %v2635_v26 = vcombine.low %v2344_v63, %v2490_v21  ;;  %v2636_v27 = vcombine.high %v2344_v63, %v2490_v21  ;;  %v2651_v29 = vcombine.low %v2417_v10, %v2563_v50  ;;  %v2652_v30 = vcombine.high %v2417_v10, %v2563_v50  ;;  %v3471_v31 = vpop.f32.mrb[15].mxu0  ;;  %v3476_v34 = vpop.f32.mrb[21].mxu1  ;;  %v3634_v50 = vld [vmem:[#allocation2] sm:$0xff] }
 0x628   :  { %v2643_v6 = vrot.slane %v2635_v26, %v3981_v8  ;;  %v2650_v35 = vrot.slane %v2636_v27, %v3981_v8  ;;  %v2659_v12 = vrot.slane %v2651_v29, %v3981_v8  ;;  %v2666_v37 = vrot.slane %v2652_v30, %v3981_v8 }
 0x62a   :  { %v2667_v38 = vcombine.low %v2643_v6, %v2659_v12  ;;  %v2668_v59 = vcombine.high %v2643_v6, %v2659_v12  ;;  %v2683_v42 = vcombine.low %v2650_v35, %v2666_v37  ;;  %v2684_v22 = vcombine.high %v2650_v35, %v2666_v37 }
 0x62c   :  { %v2675_v41 = vrot.slane %v2667_v38, %v3983_v15  ;;  %v2682_v11 = vrot.slane %v2668_v59, %v3983_v15  ;;  %v2691_v43 = vrot.slane %v2683_v42, %v3983_v15  ;;  %v2698_v33 = vrot.slane %v2684_v22, %v3983_v15  ;;  %v3009_v22 = vld [vmem:[#allocation7] sm:$0xff] }
 0x62d   :  { %v3550_v40 = vpack.c.bf16 %v3010_v39, %v3009_v22 }
 0x62e   :  { %v2771_v45 = vcombine.low %v2675_v41, %v2682_v11  ;;  %v3279_v28 = vcombine.high %v2675_v41, %v2682_v11  ;;  %v2787_v32 = vcombine.low %v2691_v43, %v2698_v33  ;;  %v3280_v36 = vcombine.high %v2691_v43, %v2698_v33  ;;  %v3011_v41 = vld [vmem:[#allocation7 + $0x10] sm:$0xff]  ;;  %v3012_v11 = vld [vmem:[#allocation7 + $0x18] sm:$0xff] }
 0x62f   :  { %v3554_v43 = vpack.c.bf16 %v3012_v11, %v3011_v41  ;;  %3551 = vmatprep.subr.bf16.mxu1 %v3550_v40 }
 0x630   :  { %v2778_v49 = vrot.slane %v2771_v45, %v3981_v8  ;;  %v2786_v51 = vrot.slane %v3279_v28, %v3981_v8  ;;  %v2794_v53 = vrot.slane %v2787_v32, %v3981_v8  ;;  %v2802_v54 = vrot.slane %v3280_v36, %v3981_v8  ;;  %3553 = vmatpush3.bf16.msra.mxu1 %v3550_v40 }
 0x631   :  { %3555 = vmatprep.subr.bf16.mxu1 %v3554_v43 }
 0x632   :  { %v2803_v57 = vcombine.low %v2778_v49, %v2786_v51  ;;  %v2819_v61 = vcombine.low %v2794_v53, %v2802_v54  ;;  %v2804_v0 = vcombine.high %v2778_v49, %v2786_v51  ;;  %v2820_v56 = vcombine.high %v2794_v53, %v2802_v54  ;;  %v3285_v51 = vld [vmem:[%s4402_s12] ss:$0 sm:$0xff] }
 0x634   :  { %v2811_v1 = vrot.slane %v2803_v57, %v3983_v15  ;;  %v2827_v2 = vrot.slane %v2819_v61, %v3983_v15  ;;  %v2818_v3 = vrot.slane %v2804_v0, %v3983_v15  ;;  %v2834_v4 = vrot.slane %v2820_v56, %v3983_v15  ;;  %3557 = vmatpush3.bf16.msra.mxu1 %v3554_v43  ;;  %v3111_v56 = vld [vmem:[%s4405_s15] sm:$0xff] }
 0x636   :  { %v2836_v5 = vcombine.high %v2811_v1, %v2827_v2  ;;  %v2835_v7 = vcombine.low %v2811_v1, %v2827_v2  ;;  %v2837_v13 = vcombine.low %v2818_v3, %v2834_v4  ;;  %v2838_v8 = vcombine.high %v2818_v3, %v2834_v4  ;;  %v3112_v1 = vld [vmem:[%s4405_s15 + $0x8] sm:$0xff]  ;;  %v3113_v3 = vld [vmem:[%s4405_s15 + $0x10] sm:$0xff]  ;;  %v3114_v4 = vld [vmem:[%s4405_s15 + $0x18] sm:$0xff] }
 0x637   :  { %v3558_v2 = vpack.c.bf16 %v3112_v1, %v3111_v56 }
 0x638   :  { %2843 = vrot.lane.b32.xlu1 %v2836_v5, %s3732_s22  ;;  %v3562_v5 = vpack.c.bf16 %v3114_v4, %v3113_v3 }
 0x639   :  { %3559 = vmatprep.subr.bf16.mxu0 %v3558_v2 }
 0x63c   :  { %2851 = vrot.lane.b32.xlu1 %v2837_v13, %s3741_s9  ;;  %v3116_v13 = vld [vmem:[%s4405_s15 + $0x28] sm:$0xff] }
 0x640   :  { %2859 = vrot.lane.b32.xlu1 %v2838_v8, %s3742_s3  ;;  %s3743_s3 = smov [#allocation8]  }
 0x641   :  { %s3217_s25 = sshll.u32 %s3743_s3, 4  ;;  %s3218_s25 = int_to_ptr.vmem [resolvable:$true] %s3217_s25 }
 0x642   :  { %s3701_s23 = scalar_lea.vmem %s3218_s25, 256  ;;  %p3706_p11 = scmp.lt.s32.totalorder %s3218_s25, %s3218_s25 }
 0x643   :  { %p3702_p10 = scmp.ne.s32.totalorder %s3218_s25, %s3701_s23  ;;  %p3707_p12 = scmp.lt.s32.totalorder %s3701_s23, %s3701_s23 }
 0x645   :  { %p3708_p13 = por %p3707_p12, %p3706_p11 }
 0x647   :  { %p3709_p0 = pnand %p3708_p13, %p3702_p10 }
 0x668   :  { %v2850_v14 = vpop.permute.xlu0 %2849  ;;  %v2842_v19 = vpop.permute.xlu1 %2841 }
 0x669   :  { %v2863_v16 = vsel %vm1286_vm2, %v2767_v47, %v2842_v19  ;;  %v3118_v19 = vld [vmem:[%s4405_s15 + $0x38] sm:$0xff] }
 0x66a   :  { %v2866_v58 = vsel %vm2865_vm3, %v2863_v16, %v2850_v14  ;;  %v3117_v14 = vld [vmem:[%s4405_s15 + $0x30] sm:$0xff] }
 0x66b   :  { %v3570_v16 = vpack.c.bf16 %v3118_v19, %v3117_v14 }
 0x66c   :  { %v2858_v15 = vpop.permute.xlu0 %2857 }
 0x66d   :  { %v2869_v17 = vsel %vm2868_vm4, %v2866_v58, %v2858_v15  ;;  %v3286_v15 = vld [vmem:[%s4404_s14] ss:$0 sm:$0xff] }
 0x66e   :  { %3485 = vmatprep.mubr.msk.f32.mxu0 %vm100_vm0, %v2869_v17 }
 0x6aa   :  { %v2844_v18 = vpop.permute.xlu1 %2843 }
 0x6ab   :  { %v2864_v20 = vsel %vm1286_vm2, %v2835_v7, %v2844_v18  ;;  %v3115_v7 = vld [vmem:[%s4405_s15 + $0x20] sm:$0xff] }
 0x6ac   :  { %v3566_v8 = vpack.c.bf16 %v3116_v13, %v3115_v7 }
 0x6ae   :  { %v2852_v52 = vpop.permute.xlu1 %2851 }
 0x6af   :  { %v2867_v23 = vsel %vm2865_vm3, %v2864_v20, %v2852_v52 }
 0x6b2   :  { %v2860_v48 = vpop.permute.xlu1 %2859 }
 0x6b3   :  { %v2870_v63 = vsel %vm2868_vm4, %v2867_v23, %v2860_v48 }
 0x6b4   :  { %3486 = vmatmul.mubr.msk.f32.vlgmr.msra.gmra.mrb[16].mxu0 %vm100_vm0, %v2870_v63 }
 0x6b5   :  { %3561 = vmatpush3.bf16.msra.mxu0 %v3558_v2 }
 0x6b6   :  { %3563 = vmatprep.subr.bf16.mxu0 %v3562_v5 }
 0x6b9   :  { %3565 = vmatpush3.bf16.msra.mxu0 %v3562_v5 }
 0x6ba   :  { %3567 = vmatprep.subr.bf16.mxu0 %v3566_v8 }
 0x6bd   :  { %3569 = vmatpush3.bf16.msra.mxu0 %v3566_v8 }
 0x6be   :  { %3571 = vmatprep.subr.bf16.mxu0 %v3570_v16 }
 0x6c1   :  { %3573 = vmatpush3.bf16.msra.mxu0 %v3570_v16 }
 0x787   :  { %v3487_v9 = vpop.f32.mrb[16].mxu0 }
 0x788   :  { %v2960_v47 = vadd.f32 %v3487_v9, %v3281_v62  ;;  %v2954_v10 = vpop.f32.mrb[17].mxu0 }
 0x789   :  { %v2955_v24 = vadd.f32 %v3281_v62, %v2954_v10 }
 0x78a   :  { %v4321_v21 = vadd.f32 %v3633_v25, %v2960_v47 }
 0x78b   :  { %v4323_v26 = vadd.f32 %v3634_v50, %v2955_v24  ;;  %v3289_v50 = vld [vmem:[%s4406_s16] ss:$0 sm:$0xff] }
 0x78c   :  { %v2968_v27 = vsel %vm100_vm0, %v4321_v21, 0.0 }
 0x78d   :  { %2969 = vadd.xlane.f32.xlu1 %v2968_v27  ;;  %v2965_v29 = vsel %vm100_vm0, %v4323_v26, 0.0 }
 0x78e   :  { %2966 = vadd.xlane.f32.xlu0 %v2965_v29 }
 0x81a   :  { %v2970_v30 = vpop.xlane.xlu1 %2969 }
 0x81b   :  { %v2972_v31 = vmul.f32 0.03125, %v2970_v30  ;;  %v2967_v34 = vpop.xlane.xlu0 %2966 }
 0x81c   :  { %v2971_v6 = vmul.f32 0.03125, %v2967_v34 }
 0x81d   :  { %v2974_v35 = vsub.f32 %v4321_v21, %v2972_v31 }
 0x81e   :  { %v2973_v12 = vsub.f32 %v4323_v26, %v2971_v6 }
 0x81f   :  { %v2976_v59 = vmul.f32 %v2974_v35, %v2974_v35 }
 0x820   :  { %v2975_v37 = vmul.f32 %v2973_v12, %v2973_v12 }
 0x821   :  { %v2980_v42 = vsel %vm100_vm0, %v2976_v59, 0.0 }
 0x822   :  { %v2977_v38 = vsel %vm100_vm0, %v2975_v37, 0.0 }
 0x823   :  { %2978 = vadd.xlane.f32.xlu0 %v2977_v38 }
 0x827   :  { %2981 = vadd.xlane.f32.xlu0 %v2980_v42 }
 0x8b0   :  { %v2979_v33 = vpop.xlane.xlu0 %2978 }
 0x8b1   :  { %v2983_v44 = vmul.f32 0.03125, %v2979_v33 }
 0x8b3   :  { %v2985_v45 = vadd.f32 1e-05, %v2983_v44 }
 0x8b4   :  { %v2982_v28 = vpop.xlane.xlu0 %2981 }
 0x8b5   :  { %3625 = vrsqrt.f32 %v2985_v45  ;;  %v2984_v32 = vmul.f32 0.03125, %v2982_v28 }
 0x8b7   :  { %v2986_v36 = vadd.f32 1e-05, %v2984_v32 }
 0x8b9   :  { %3627 = vrsqrt.f32 %v2986_v36 }
 0x8bf   :  { %v3626_v60 = vpop.eup %3625 }
 0x8c0   :  { %v2989_v49 = vmul.f32 %v3626_v60, %v2973_v12 }
 0x8c2   :  { %v2998_v53 = vmul.f32 %v3284_v46, %v2989_v49 }
 0x8c3   :  { %v3628_v54 = vpop.eup %3627 }
 0x8c4   :  { %v2990_v55 = vmul.f32 %v3628_v54, %v2974_v35  ;;  %v3007_v57 = vadd.f32 %v3285_v51, %v2998_v53 }
 0x8c6   :  { %v2999_v61 = vmul.f32 %v3284_v46, %v2990_v55  ;;  %3496 = vmatprep.mubr.msk.f32.mxu1 %vm100_vm0, %v3007_v57 }
 0x8c8   :  { %v3008_v0 = vadd.f32 %v3285_v51, %v2999_v61 }
 0x8ca   :  { %3497 = vmatmul.mubr.msk.f32.vlgmr.msra.gmra.mrb[22].mxu1 %vm100_vm0, %v3008_v0 }
 0x99d   :  { %v3498_v58 = vpop.f32.mrb[22].mxu1 }
 0x99e   :  { %v3098_v17 = vadd.f32 %v3498_v58, %v3286_v15  ;;  %v3092_v18 = vpop.f32.mrb[23].mxu1 }
 0x99f   :  { %v3093_v52 = vadd.f32 %v3286_v15, %v3092_v18 }
 0x9a0   :  { %v3104_v20 = vmul.f32 0.70710677, %v3098_v17  ;;  %v3102_v10 = vmul.f32 0.5, %v3098_v17 }
 0x9a1   :  { %v3103_v23 = vmul.f32 0.70710677, %v3093_v52  ;;  %v3101_v9 = vmul.f32 0.5, %v3093_v52 }
 0x9a2   :  { %3629 = verf.f32 %v3104_v20 }
 0x9a3   :  { %3631 = verf.f32 %v3103_v23 }
 0x9ac   :  { %v3630_v48 = vpop.eup %3629 }
 0x9ad   :  { %v3632_v63 = vpop.eup %3631  ;;  %v3108_v62 = vadd.f32 1.0, %v3630_v48 }
 0x9ae   :  { %v3107_v47 = vadd.f32 1.0, %v3632_v63 }
 0x9af   :  { %v3110_v25 = vmul.f32 %v3108_v62, %v3102_v10 }
 0x9b0   :  { %v3109_v24 = vmul.f32 %v3107_v47, %v3101_v9 }
 0x9b2   :  { %3515 = vmatprep.mubr.msk.f32.mxu0 %vm3126_vm5, %v3109_v24 }
 0x9b3   :  { %3516 = vmatmul.mubr.msk.f32.vlgmr.msra.gmra.mrb[18].mxu0 %vm3126_vm5, %v3110_v25 }
 0xa86   :  { %v3517_v27 = vpop.f32.mrb[18].mxu0 }
 0xa87   :  { %v3205_v29 = vadd.f32 %v3517_v27, %v3289_v50  ;;  %v3199_v30 = vpop.f32.mrb[19].mxu0 }
 0xa88   :  { %v3200_v31 = vadd.f32 %v3289_v50, %v3199_v30 }
 0xa89   :  { %v3209_v34 = vadd.f32 %v3205_v29, %v4321_v21 }
 0xa8a   :  { %v3208_v6 = vadd.f32 %v3200_v31, %v4323_v26 }
 0xa8b   :  { %3211 = vst.msk [vmem:[#allocation8 + $0x8] sm:$0xff] %vm100_vm0, %v3209_v34 }
 0xa8c   :  { %3210 = vst.msk [vmem:[#allocation8] sm:$0xff] %vm100_vm0, %v3208_v6 }
 0xa8d   :  { %3712 = shalt.err (!%p3709_p0)
}
 0xa8e   :  { %s3713_s5 = scalar_lea.hbm %s4407_s17, 256 }
 0xa8f   :  { %p3714_p1 = scmp.ne.s32.totalorder %s4407_s17, %s3713_s5  ;;  %p3717_p2 = scmp.lt.u32.totalorder %s3713_s5, %s4407_s17 }
 0xa91   :  { %p3719_p3 = pnand %p3717_p2, %p3714_p1 }
 0xa93   :  { %3722 = shalt.err (!%p3719_p3)
}
 0xa94   :  { %3223 = dma.vmem_to_hbm [thread:$0]  %s3218_s25, 256, %s4407_s17, [#allocation4], %s3731_s21, %s3731_s21, %s3732_s22  }
 0xa95   :  { %3727 = dma.done.wait [#allocation4], 256  }
 0xa96   :  { %3728 = vsyncadd [#allocation4], 4294967040 }
 0xa97   :  { %3227 = vsyncpa [#allocation3], 1 }
 0xa98   :  { %3228 = vsyncpa [#allocation6], 1 }
 0xa99   :  { %3229 = vsyncpa [#allocation4], 1 }

</bundles_post_ra>
